<compile_context>
chip_gen: v7x
topology: tpu7x:2x2x1
jax: 0.10.0
libtpu: 0.0.40
codegen_flags: <defaults>
</compile_context>

<pallas_src>
import numpy as np
import jax
import jax.numpy as jnp
from jax import lax
from jax.experimental import pallas as pl
from jax.experimental.pallas import tpu as pltpu


# ----------------------------- Pallas kernel --------------------------------

def _lstm_cell(gates, c, H):
    """Elementwise LSTM cell math. Gate column order (wrapper-permuted): f, i, g, o."""
    f = jax.nn.sigmoid(gates[:, 0 * H:1 * H])
    i = jax.nn.sigmoid(gates[:, 1 * H:2 * H])
    g = jnp.tanh(gates[:, 2 * H:3 * H])
    o = jax.nn.sigmoid(gates[:, 3 * H:4 * H])
    c_new = f * c + i * g
    h_new = o * jnp.tanh(c_new)
    return h_new, c_new


def rnn_lstm_kernel(x_ref,                       # (T*BP, E) time-major flat, batch-padded
                    w_ih0_ref, b0_ref,           # (E, 8H), (1, 8H)   columns [fwd 4H | bwd 4H]
                    w_hh0_ref,                   # (2H, 8H) block-diag(w_hh0f, w_hh0b)
                    w_ih1_ref, b1_ref,           # (2H, 8H), (1, 8H)
                    w_hh1_ref,                   # (2H, 8H) block-diag(w_hh1f, w_hh1b)
                    w_fc_ref, b_fc_ref,          # (2H, OP), (1, OP)
                    out_ref,                     # (BP, OP)
                    xz_ref, y0_ref):             # scratch: (T*BP, 8H), (T*BP, 2H)
    H2 = w_hh0_ref.shape[0]
    H = H2 // 2
    H4 = 4 * H
    BP = out_ref.shape[0]
    T = x_ref.shape[0] // BP

    zeros_h = jnp.zeros((BP, H), jnp.float32)
    h_cat0 = jnp.zeros((BP, H2), jnp.float32)

    # Recurrent (block-diagonal) weights loaded once; stay resident in vregs/VMEM.
    w_hh0 = w_hh0_ref[...]
    w_hh1 = w_hh1_ref[...]

    # ---- layer 0: input projection for ALL time steps in one matmul,
    #      fused (b_ih + b_hh) bias folded in here (not per step) --------------
    xz_ref[...] = (jnp.dot(x_ref[...], w_ih0_ref[...],
                           preferred_element_type=jnp.float32) + b0_ref[...])

    # ---- layer 0: fwd+bwd recurrence with ONE fused MXU push per step --------
    def l0_body(t, carry):
        h_cat, cf, cb = carry            # h_cat = [hf | hb]  (BP, 2H)
        rf = t * BP                      # row block of forward time step t
        rb = (T - 1 - t) * BP            # row block of backward time step T-1-t
        g_all = jnp.dot(h_cat, w_hh0, preferred_element_type=jnp.float32)  # (BP, 8H)
        gf = xz_ref[pl.ds(rf, BP), :H4] + g_all[:, :H4]
        gb = xz_ref[pl.ds(rb, BP), H4:] + g_all[:, H4:]
        hf, cf = _lstm_cell(gf, cf, H)
        hb, cb = _lstm_cell(gb, cb, H)
        y0_ref[pl.ds(rf, BP), :H] = hf   # layer-1 input, fwd half
        y0_ref[pl.ds(rb, BP), H:] = hb   # layer-1 input, bwd half
        return (jnp.concatenate([hf, hb], axis=1), cf, cb)

    lax.fori_loop(0, T, l0_body, (h_cat0, zeros_h, zeros_h), unroll=True)

    # ---- layer 1: input projection over all T steps; the "concat(y0f, y0b)"
    #      input is the merged (T*BP, 2H) y0 buffer -> ONE K=2H matmul ---------
    xz_ref[...] = (jnp.dot(y0_ref[...], w_ih1_ref[...],
                           preferred_element_type=jnp.float32) + b1_ref[...])

    # ---- layer 1: fused fwd+bwd recurrence; only final hidden states kept ----
    def l1_body(t, carry):
        h_cat, cf, cb = carry
        rf = t * BP
        rb = (T - 1 - t) * BP
        g_all = jnp.dot(h_cat, w_hh1, preferred_element_type=jnp.float32)
        gf = xz_ref[pl.ds(rf, BP), :H4] + g_all[:, :H4]
        gb = xz_ref[pl.ds(rb, BP), H4:] + g_all[:, H4:]
        hf, cf = _lstm_cell(gf, cf, H)
        hb, cb = _lstm_cell(gb, cb, H)
        return (jnp.concatenate([hf, hb], axis=1), cf, cb)

    h_cat, _, _ = lax.fori_loop(0, T, l1_body, (h_cat0, zeros_h, zeros_h),
                                unroll=True)

    # ---- fc(cat(hf, hb)) = h_cat @ Wfc + b  (lane-dense, unmasked (8,128) vst) --
    out_ref[...] = (jnp.dot(h_cat, w_fc_ref[...],
                            preferred_element_type=jnp.float32) + b_fc_ref[...])


# ------------------------------- Wrapper -------------------------------------

def _perm_gates(w):
    """Permute gate columns [i|f|g|o] -> [f|i|g|o] (zero-runtime weight prep)."""
    i, f, g, o = jnp.split(w, 4, axis=-1)
    return jnp.concatenate([f, i, g, o], axis=-1)


def _block_diag(wf, wb):
    """(H,4H),(H,4H) -> (2H,8H) block-diagonal so [hf|hb] @ W gives [hf@wf | hb@wb]."""
    z = jnp.zeros_like(wf)
    top = jnp.concatenate([wf, z], axis=1)
    bot = jnp.concatenate([z, wb], axis=1)
    return jnp.concatenate([top, bot], axis=0)


def rnn_forward(text, params, *, out_pad=128):
    """text: (B, T, E) float32 -> logits (B, O)."""
    B, T, E = text.shape
    H = params["w_hh0f"].shape[0]
    O = params["w_fc"].shape[1]
    OP = max(out_pad, O)
    BP = ((B + 7) // 8) * 8            # pad batch to the sublane size

    # time-major, batch padded to BP, flattened: row index = t * BP + b.
    # TODO(synk): at production shapes feed (B,T,E) through a BlockSpec index_map
    #             instead of materializing this transpose in the wrapper.
    x_tm = jnp.transpose(text, (1, 0, 2))                       # (T, B, E)
    x_tm = jnp.pad(x_tm, ((0, 0), (0, BP - B), (0, 0)))         # (T, BP, E)
    x2d = x_tm.reshape(T * BP, E)

    # Layer-0: per-direction gate columns permuted to [f|i|g|o], directions fused
    # column-wise [fwd 4H | bwd 4H]; recurrent weights block-diagonalized.
    w_ih0 = jnp.concatenate([_perm_gates(params["w_ih0f"]),
                             _perm_gates(params["w_ih0b"])], axis=1)        # (E, 8H)
    b0 = jnp.concatenate([_perm_gates(params["b0f"]),
                          _perm_gates(params["b0b"])], axis=1)              # (1, 8H)
    w_hh0 = _block_diag(_perm_gates(params["w_hh0f"]),
                        _perm_gates(params["w_hh0b"]))                      # (2H, 8H)

    # Layer-1: input rows are [y0f ; y0b] (matches merged y0 scratch columns).
    w_ih1 = jnp.concatenate([_perm_gates(params["w_ih1f"]),
                             _perm_gates(params["w_ih1b"])], axis=1)        # (2H, 8H)
    b1 = jnp.concatenate([_perm_gates(params["b1f"]),
                          _perm_gates(params["b1b"])], axis=1)              # (1, 8H)
    w_hh1 = _block_diag(_perm_gates(params["w_hh1f"]),
                        _perm_gates(params["w_hh1b"]))                      # (2H, 8H)

    # FC: hidden = [hf | hb]; pad columns to a lane-dense width (128).
    pad = OP - O
    w_fc_p = jnp.pad(params["w_fc"], ((0, 0), (0, pad)))                    # (2H, OP)
    b_fc_p = jnp.pad(params["b_fc"], ((0, 0), (0, pad)))                    # (1, OP)

    flat = (x2d, w_ih0, b0, w_hh0, w_ih1, b1, w_hh1, w_fc_p, b_fc_p)

    vmem = pl.BlockSpec(memory_space=pltpu.MemorySpace.VMEM)

    out_padded = pl.pallas_call(
        rnn_lstm_kernel,
        out_shape=jax.ShapeDtypeStruct((BP, OP), jnp.float32),
        in_specs=[vmem] * len(flat),
        out_specs=vmem,
        scratch_shapes=[pltpu.VMEM((T * BP, 8 * H), jnp.float32),   # gate input projections
                        pltpu.VMEM((T * BP, 2 * H), jnp.float32)],  # merged layer-0 outputs
    )(*flat)
    # TODO(synk): production shapes — add a ("parallel",) batch grid + BlockSpecs and
    #             pltpu.CompilerParams(vmem_limit_bytes=...) sized per generation.
    return out_padded[:B, :O]


# ----------------------- Params (deterministic init) -------------------------

def init_params(key, E, H, O):
    k = 1.0 / np.sqrt(H)
    keys = jax.random.split(key, 20)
    u = lambda kk, shape: jax.random.uniform(kk, shape, jnp.float32, -k, k)
    p = {}
    # Layer 0 (input size E), forward / backward. Biases are (b_ih + b_hh) fused.
    p["w_ih0f"], p["w_hh0f"], p["b0f"] = u(keys[0], (E, 4 * H)), u(keys[1], (H, 4 * H)), u(keys[2], (1, 4 * H))
    p["w_ih0b"], p["w_hh0b"], p["b0b"] = u(keys[3], (E, 4 * H)), u(keys[4], (H, 4 * H)), u(keys[5], (1, 4 * H))
    # Layer 1 (input size 2H), forward / backward.
    p["w_ih1f"], p["w_hh1f"], p["b1f"] = u(keys[6], (2 * H, 4 * H)), u(keys[7], (H, 4 * H)), u(keys[8], (1, 4 * H))
    p["w_ih1b"], p["w_hh1b"], p["b1b"] = u(keys[9], (2 * H, 4 * H)), u(keys[10], (H, 4 * H)), u(keys[11], (1, 4 * H))
    # fc: init_weight() -> normal(0, 0.01) weight, zero bias.
    p["w_fc"] = 0.01 * jax.random.normal(keys[12], (2 * H, O), jnp.float32)
    p["b_fc"] = jnp.zeros((1, O), jnp.float32)
    return p


# ------------------------- Pure-JAX reference --------------------------------

def ref_forward(text, p):
    B, T, E = text.shape
    H = p["w_hh0f"].shape[0]

    def run(xs, w_ih, w_hh, b, reverse):
        h = jnp.zeros((B, H), jnp.float32)
        c = jnp.zeros((B, H), jnp.float32)
        outs = [None] * T
        order = range(T - 1, -1, -1) if reverse else range(T)
        for t in order:
            x_t = xs[:, t, :]
            gates = x_t @ w_ih + h @ w_hh + b
            i = jax.nn.sigmoid(gates[:, :H])
            f = jax.nn.sigmoid(gates[:, H:2 * H])
            g = jnp.tanh(gates[:, 2 * H:3 * H])
            o = jax.nn.sigmoid(gates[:, 3 * H:4 * H])
            c = f * c + i * g
            h = o * jnp.tanh(c)
            outs[t] = h
        return jnp.stack(outs, axis=1), h

    y0f, _ = run(text, p["w_ih0f"], p["w_hh0f"], p["b0f"], False)
    y0b, _ = run(text, p["w_ih0b"], p["w_hh0b"], p["b0b"], True)
    y0 = jnp.concatenate([y0f, y0b], axis=-1)
    _, hf = run(y0, p["w_ih1f"], p["w_hh1f"], p["b1f"], False)
    _, hb = run(y0, p["w_ih1b"], p["w_hh1b"], p["b1b"], True)
    hidden = jnp.concatenate([hf, hb], axis=-1)
    return hidden @ p["w_fc"] + p["b_fc"]


# --------------------------------- Main ---------------------------------------

if __name__ == "__main__":
    B, T, E, H, O = 2, 8, 64, 32, 5   # small shapes consistent with the module

    key = jax.random.PRNGKey(0)
    k_x, k_p = jax.random.split(key)
    text = jax.random.normal(k_x, (B, T, E), jnp.float32)   # already-embedded input
    params = init_params(k_p, E, H, O)

    out = rnn_forward(text, params)
    out = jax.block_until_ready(out)

    ref = np.asarray(ref_forward(text, params))
    np.testing.assert_allclose(np.asarray(out), ref, rtol=2e-2, atol=2e-3)

    print("KERNEL_OK")
</pallas_src>

<mosaic_0001>
module attributes {stable_mosaic.version = 11 : i64} {
  func.func @rnn_lstm_kernel(%arg0: memref<64x64xf32, #tpu.memory_space<vmem>>, %arg1: memref<64x256xf32, #tpu.memory_space<vmem>>, %arg2: memref<1x256xf32, #tpu.memory_space<vmem>>, %arg3: memref<64x256xf32, #tpu.memory_space<vmem>>, %arg4: memref<64x256xf32, #tpu.memory_space<vmem>>, %arg5: memref<1x256xf32, #tpu.memory_space<vmem>>, %arg6: memref<64x256xf32, #tpu.memory_space<vmem>>, %arg7: memref<64x128xf32, #tpu.memory_space<vmem>>, %arg8: memref<1x128xf32, #tpu.memory_space<vmem>>, %arg9: memref<8x128xf32, #tpu.memory_space<vmem>>, %arg10: memref<64x256xf32, #tpu.memory_space<vmem>>, %arg11: memref<64x64xf32, #tpu.memory_space<vmem>>) attributes {dimension_semantics = [], scalar_prefetch = 0 : i64, scratch_operands = 2 : i64, tpu.core_type = #tpu.core_type<tc>} {
    %cst = arith.constant 0.000000e+00 : f32
    %0 = vector.broadcast %cst : f32 to vector<8x32xf32>
    %cst_0 = arith.constant 0.000000e+00 : f32
    %1 = vector.broadcast %cst_0 : f32 to vector<8x64xf32>
    %c0 = arith.constant 0 : index
    %c0_1 = arith.constant 0 : index
    %2 = vector.load %arg3[%c0, %c0_1] : memref<64x256xf32, #tpu.memory_space<vmem>>, vector<64x256xf32>
    %c0_2 = arith.constant 0 : index
    %c0_3 = arith.constant 0 : index
    %3 = vector.load %arg6[%c0_2, %c0_3] : memref<64x256xf32, #tpu.memory_space<vmem>>, vector<64x256xf32>
    %c0_4 = arith.constant 0 : index
    %c0_5 = arith.constant 0 : index
    %4 = vector.load %arg0[%c0_4, %c0_5] : memref<64x64xf32, #tpu.memory_space<vmem>>, vector<64x64xf32>
    %c0_6 = arith.constant 0 : index
    %c0_7 = arith.constant 0 : index
    %5 = vector.load %arg1[%c0_6, %c0_7] : memref<64x256xf32, #tpu.memory_space<vmem>>, vector<64x256xf32>
    %cst_8 = arith.constant dense<0.000000e+00> : vector<64x256xf32>
    %6 = tpu.matmul %4, %5, %cst_8 {dimension_numbers = #tpu.dot_dimension_numbers<[1], [0], [0], [1], [0, 0, 1, 1], [], []>} : vector<64x64xf32>, vector<64x256xf32>, vector<64x256xf32> -> vector<64x256xf32>
    %c0_9 = arith.constant 0 : index
    %c0_10 = arith.constant 0 : index
    %7 = vector.load %arg2[%c0_9, %c0_10] : memref<1x256xf32, #tpu.memory_space<vmem>>, vector<1x256xf32>
    %8 = vector.broadcast %7 : vector<1x256xf32> to vector<64x256xf32>
    %9 = arith.addf %6, %8 : vector<64x256xf32>
    %c0_11 = arith.constant 0 : index
    %c0_12 = arith.constant 0 : index
    %10 = vector.load %arg10[%c0_11, %c0_12] : memref<64x256xf32, #tpu.memory_space<vmem>>, vector<64x256xf32>
    tpu.vector_store %arg10[%c0_11, %c0_12], %9 {strides = array<i32>} : memref<64x256xf32, #tpu.memory_space<vmem>>, vector<64x256xf32>,
    %c0_i32 = arith.constant 0 : i32
    %c8_i32 = arith.constant 8 : i32
    %11 = arith.muli %c0_i32, %c8_i32 : i32
    %c7_i32 = arith.constant 7 : i32
    %12 = arith.subi %c7_i32, %c0_i32 : i32
    %c8_i32_13 = arith.constant 8 : i32
    %13 = arith.muli %12, %c8_i32_13 : i32
    %cst_14 = arith.constant dense<0.000000e+00> : vector<8x256xf32>
    %14 = tpu.matmul %1, %2, %cst_14 {dimension_numbers = #tpu.dot_dimension_numbers<[1], [0], [0], [1], [0, 0, 1, 1], [], []>} : vector<8x64xf32>, vector<64x256xf32>, vector<8x256xf32> -> vector<8x256xf32>
    %15 = arith.index_cast %11 : i32 to index
    %c0_15 = arith.constant 0 : index
    %16 = vector.load %arg10[%15, %c0_15] : memref<64x256xf32, #tpu.memory_space<vmem>>, vector<8x128xf32>
    %17 = vector.extract_strided_slice %14 {offsets = [0, 0], sizes = [8, 128], strides = [1, 1]} : vector<8x256xf32> to vector<8x128xf32>
    %18 = arith.addf %16, %17 : vector<8x128xf32>
    %19 = arith.index_cast %13 : i32 to index
    %c128 = arith.constant 128 : index
    %20 = vector.load %arg10[%19, %c128] : memref<64x256xf32, #tpu.memory_space<vmem>>, vector<8x128xf32>
    %21 = vector.extract_strided_slice %14 {offsets = [0, 128], sizes = [8, 128], strides = [1, 1]} : vector<8x256xf32> to vector<8x128xf32>
    %22 = arith.addf %20, %21 : vector<8x128xf32>
    %23 = vector.extract_strided_slice %18 {offsets = [0, 0], sizes = [8, 32], strides = [1, 1]} : vector<8x128xf32> to vector<8x32xf32>
    %24 = arith.negf %23 : vector<8x32xf32>
    %25 = math.exp %24 : vector<8x32xf32>
    %cst_16 = arith.constant 1.000000e+00 : f32
    %26 = vector.broadcast %cst_16 : f32 to vector<8x32xf32>
    %27 = arith.addf %26, %25 : vector<8x32xf32>
    %28 = arith.divf %26, %27 : vector<8x32xf32>
    %29 = vector.extract_strided_slice %18 {offsets = [0, 32], sizes = [8, 32], strides = [1, 1]} : vector<8x128xf32> to vector<8x32xf32>
    %30 = arith.negf %29 : vector<8x32xf32>
    %31 = math.exp %30 : vector<8x32xf32>
    %cst_17 = arith.constant 1.000000e+00 : f32
    %32 = vector.broadcast %cst_17 : f32 to vector<8x32xf32>
    %33 = arith.addf %32, %31 : vector<8x32xf32>
    %34 = arith.divf %32, %33 : vector<8x32xf32>
    %35 = vector.extract_strided_slice %18 {offsets = [0, 64], sizes = [8, 32], strides = [1, 1]} : vector<8x128xf32> to vector<8x32xf32>
    %36 = math.tanh %35 : vector<8x32xf32>
    %37 = vector.extract_strided_slice %18 {offsets = [0, 96], sizes = [8, 32], strides = [1, 1]} : vector<8x128xf32> to vector<8x32xf32>
    %38 = arith.negf %37 : vector<8x32xf32>
    %39 = math.exp %38 : vector<8x32xf32>
    %cst_18 = arith.constant 1.000000e+00 : f32
    %40 = vector.broadcast %cst_18 : f32 to vector<8x32xf32>
    %41 = arith.addf %40, %39 : vector<8x32xf32>
    %42 = arith.divf %40, %41 : vector<8x32xf32>
    %43 = arith.mulf %28, %0 : vector<8x32xf32>
    %44 = arith.mulf %34, %36 : vector<8x32xf32>
    %45 = arith.addf %43, %44 : vector<8x32xf32>
    %46 = math.tanh %45 : vector<8x32xf32>
    %47 = arith.mulf %42, %46 : vector<8x32xf32>
    %48 = vector.extract_strided_slice %22 {offsets = [0, 0], sizes = [8, 32], strides = [1, 1]} : vector<8x128xf32> to vector<8x32xf32>
    %49 = arith.negf %48 : vector<8x32xf32>
    %50 = math.exp %49 : vector<8x32xf32>
    %cst_19 = arith.constant 1.000000e+00 : f32
    %51 = vector.broadcast %cst_19 : f32 to vector<8x32xf32>
    %52 = arith.addf %51, %50 : vector<8x32xf32>
    %53 = arith.divf %51, %52 : vector<8x32xf32>
    %54 = vector.extract_strided_slice %22 {offsets = [0, 32], sizes = [8, 32], strides = [1, 1]} : vector<8x128xf32> to vector<8x32xf32>
    %55 = arith.negf %54 : vector<8x32xf32>
    %56 = math.exp %55 : vector<8x32xf32>
    %cst_20 = arith.constant 1.000000e+00 : f32
    %57 = vector.broadcast %cst_20 : f32 to vector<8x32xf32>
    %58 = arith.addf %57, %56 : vector<8x32xf32>
    %59 = arith.divf %57, %58 : vector<8x32xf32>
    %60 = vector.extract_strided_slice %22 {offsets = [0, 64], sizes = [8, 32], strides = [1, 1]} : vector<8x128xf32> to vector<8x32xf32>
    %61 = math.tanh %60 : vector<8x32xf32>
    %62 = vector.extract_strided_slice %22 {offsets = [0, 96], sizes = [8, 32], strides = [1, 1]} : vector<8x128xf32> to vector<8x32xf32>
    %63 = arith.negf %62 : vector<8x32xf32>
    %64 = math.exp %63 : vector<8x32xf32>
    %cst_21 = arith.constant 1.000000e+00 : f32
    %65 = vector.broadcast %cst_21 : f32 to vector<8x32xf32>
    %66 = arith.addf %65, %64 : vector<8x32xf32>
    %67 = arith.divf %65, %66 : vector<8x32xf32>
    %68 = arith.mulf %53, %0 : vector<8x32xf32>
    %69 = arith.mulf %59, %61 : vector<8x32xf32>
    %70 = arith.addf %68, %69 : vector<8x32xf32>
    %71 = math.tanh %70 : vector<8x32xf32>
    %72 = arith.mulf %67, %71 : vector<8x32xf32>
    %73 = arith.index_cast %11 : i32 to index
    %c0_22 = arith.constant 0 : index
    %74 = vector.load %arg11[%73, %c0_22] : memref<64x64xf32, #tpu.memory_space<vmem>>, vector<8x32xf32>
    tpu.vector_store %arg11[%73, %c0_22], %47 {strides = array<i32>} : memref<64x64xf32, #tpu.memory_space<vmem>>, vector<8x32xf32>,
    %75 = arith.index_cast %13 : i32 to index
    %c32 = arith.constant 32 : index
    %76 = vector.load %arg11[%75, %c32] : memref<64x64xf32, #tpu.memory_space<vmem>>, vector<8x32xf32>
    tpu.vector_store %arg11[%75, %c32], %72 {strides = array<i32>} : memref<64x64xf32, #tpu.memory_space<vmem>>, vector<8x32xf32>,
    %77 = tpu.concatenate %47, %72 in 1 : vector<8x32xf32>, vector<8x32xf32> -> vector<8x64xf32>
    %c1_i32 = arith.constant 1 : i32
    %c8_i32_23 = arith.constant 8 : i32
    %78 = arith.muli %c1_i32, %c8_i32_23 : i32
    %c7_i32_24 = arith.constant 7 : i32
    %79 = arith.subi %c7_i32_24, %c1_i32 : i32
    %c8_i32_25 = arith.constant 8 : i32
    %80 = arith.muli %79, %c8_i32_25 : i32
    %cst_26 = arith.constant dense<0.000000e+00> : vector<8x256xf32>
    %81 = tpu.matmul %77, %2, %cst_26 {dimension_numbers = #tpu.dot_dimension_numbers<[1], [0], [0], [1], [0, 0, 1, 1], [], []>} : vector<8x64xf32>, vector<64x256xf32>, vector<8x256xf32> -> vector<8x256xf32>
    %82 = arith.index_cast %78 : i32 to index
    %c0_27 = arith.constant 0 : index
    %83 = vector.load %arg10[%82, %c0_27] : memref<64x256xf32, #tpu.memory_space<vmem>>, vector<8x128xf32>
    %84 = vector.extract_strided_slice %81 {offsets = [0, 0], sizes = [8, 128], strides = [1, 1]} : vector<8x256xf32> to vector<8x128xf32>
    %85 = arith.addf %83, %84 : vector<8x128xf32>
    %86 = arith.index_cast %80 : i32 to index
    %c128_28 = arith.constant 128 : index
    %87 = vector.load %arg10[%86, %c128_28] : memref<64x256xf32, #tpu.memory_space<vmem>>, vector<8x128xf32>
    %88 = vector.extract_strided_slice %81 {offsets = [0, 128], sizes = [8, 128], strides = [1, 1]} : vector<8x256xf32> to vector<8x128xf32>
    %89 = arith.addf %87, %88 : vector<8x128xf32>
    %90 = vector.extract_strided_slice %85 {offsets = [0, 0], sizes = [8, 32], strides = [1, 1]} : vector<8x128xf32> to vector<8x32xf32>
    %91 = arith.negf %90 : vector<8x32xf32>
    %92 = math.exp %91 : vector<8x32xf32>
    %cst_29 = arith.constant 1.000000e+00 : f32
    %93 = vector.broadcast %cst_29 : f32 to vector<8x32xf32>
    %94 = arith.addf %93, %92 : vector<8x32xf32>
    %95 = arith.divf %93, %94 : vector<8x32xf32>
    %96 = vector.extract_strided_slice %85 {offsets = [0, 32], sizes = [8, 32], strides = [1, 1]} : vector<8x128xf32> to vector<8x32xf32>
    %97 = arith.negf %96 : vector<8x32xf32>
    %98 = math.exp %97 : vector<8x32xf32>
    %cst_30 = arith.constant 1.000000e+00 : f32
    %99 = vector.broadcast %cst_30 : f32 to vector<8x32xf32>
    %100 = arith.addf %99, %98 : vector<8x32xf32>
    %101 = arith.divf %99, %100 : vector<8x32xf32>
    %102 = vector.extract_strided_slice %85 {offsets = [0, 64], sizes = [8, 32], strides = [1, 1]} : vector<8x128xf32> to vector<8x32xf32>
    %103 = math.tanh %102 : vector<8x32xf32>
    %104 = vector.extract_strided_slice %85 {offsets = [0, 96], sizes = [8, 32], strides = [1, 1]} : vector<8x128xf32> to vector<8x32xf32>
    %105 = arith.negf %104 : vector<8x32xf32>
    %106 = math.exp %105 : vector<8x32xf32>
    %cst_31 = arith.constant 1.000000e+00 : f32
    %107 = vector.broadcast %cst_31 : f32 to vector<8x32xf32>
    %108 = arith.addf %107, %106 : vector<8x32xf32>
    %109 = arith.divf %107, %108 : vector<8x32xf32>
    %110 = arith.mulf %95, %45 : vector<8x32xf32>
    %111 = arith.mulf %101, %103 : vector<8x32xf32>
    %112 = arith.addf %110, %111 : vector<8x32xf32>
    %113 = math.tanh %112 : vector<8x32xf32>
    %114 = arith.mulf %109, %113 : vector<8x32xf32>
    %115 = vector.extract_strided_slice %89 {offsets = [0, 0], sizes = [8, 32], strides = [1, 1]} : vector<8x128xf32> to vector<8x32xf32>
    %116 = arith.negf %115 : vector<8x32xf32>
    %117 = math.exp %116 : vector<8x32xf32>
    %cst_32 = arith.constant 1.000000e+00 : f32
    %118 = vector.broadcast %cst_32 : f32 to vector<8x32xf32>
    %119 = arith.addf %118, %117 : vector<8x32xf32>
    %120 = arith.divf %118, %119 : vector<8x32xf32>
    %121 = vector.extract_strided_slice %89 {offsets = [0, 32], sizes = [8, 32], strides = [1, 1]} : vector<8x128xf32> to vector<8x32xf32>
    %122 = arith.negf %121 : vector<8x32xf32>
    %123 = math.exp %122 : vector<8x32xf32>
    %cst_33 = arith.constant 1.000000e+00 : f32
    %124 = vector.broadcast %cst_33 : f32 to vector<8x32xf32>
    %125 = arith.addf %124, %123 : vector<8x32xf32>
    %126 = arith.divf %124, %125 : vector<8x32xf32>
    %127 = vector.extract_strided_slice %89 {offsets = [0, 64], sizes = [8, 32], strides = [1, 1]} : vector<8x128xf32> to vector<8x32xf32>
    %128 = math.tanh %127 : vector<8x32xf32>
    %129 = vector.extract_strided_slice %89 {offsets = [0, 96], sizes = [8, 32], strides = [1, 1]} : vector<8x128xf32> to vector<8x32xf32>
    %130 = arith.negf %129 : vector<8x32xf32>
    %131 = math.exp %130 : vector<8x32xf32>
    %cst_34 = arith.constant 1.000000e+00 : f32
    %132 = vector.broadcast %cst_34 : f32 to vector<8x32xf32>
    %133 = arith.addf %132, %131 : vector<8x32xf32>
    %134 = arith.divf %132, %133 : vector<8x32xf32>
    %135 = arith.mulf %120, %70 : vector<8x32xf32>
    %136 = arith.mulf %126, %128 : vector<8x32xf32>
    %137 = arith.addf %135, %136 : vector<8x32xf32>
    %138 = math.tanh %137 : vector<8x32xf32>
    %139 = arith.mulf %134, %138 : vector<8x32xf32>
    %140 = arith.index_cast %78 : i32 to index
    %c0_35 = arith.constant 0 : index
    %141 = vector.load %arg11[%140, %c0_35] : memref<64x64xf32, #tpu.memory_space<vmem>>, vector<8x32xf32>
    tpu.vector_store %arg11[%140, %c0_35], %114 {strides = array<i32>} : memref<64x64xf32, #tpu.memory_space<vmem>>, vector<8x32xf32>,
    %142 = arith.index_cast %80 : i32 to index
    %c32_36 = arith.constant 32 : index
    %143 = vector.load %arg11[%142, %c32_36] : memref<64x64xf32, #tpu.memory_space<vmem>>, vector<8x32xf32>
    tpu.vector_store %arg11[%142, %c32_36], %139 {strides = array<i32>} : memref<64x64xf32, #tpu.memory_space<vmem>>, vector<8x32xf32>,
    %144 = tpu.concatenate %114, %139 in 1 : vector<8x32xf32>, vector<8x32xf32> -> vector<8x64xf32>
    %c2_i32 = arith.constant 2 : i32
    %c8_i32_37 = arith.constant 8 : i32
    %145 = arith.muli %c2_i32, %c8_i32_37 : i32
    %c7_i32_38 = arith.constant 7 : i32
    %146 = arith.subi %c7_i32_38, %c2_i32 : i32
    %c8_i32_39 = arith.constant 8 : i32
    %147 = arith.muli %146, %c8_i32_39 : i32
    %cst_40 = arith.constant dense<0.000000e+00> : vector<8x256xf32>
    %148 = tpu.matmul %144, %2, %cst_40 {dimension_numbers = #tpu.dot_dimension_numbers<[1], [0], [0], [1], [0, 0, 1, 1], [], []>} : vector<8x64xf32>, vector<64x256xf32>, vector<8x256xf32> -> vector<8x256xf32>
    %149 = arith.index_cast %145 : i32 to index
    %c0_41 = arith.constant 0 : index
    %150 = vector.load %arg10[%149, %c0_41] : memref<64x256xf32, #tpu.memory_space<vmem>>, vector<8x128xf32>
    %151 = vector.extract_strided_slice %148 {offsets = [0, 0], sizes = [8, 128], strides = [1, 1]} : vector<8x256xf32> to vector<8x128xf32>
    %152 = arith.addf %150, %151 : vector<8x128xf32>
    %153 = arith.index_cast %147 : i32 to index
    %c128_42 = arith.constant 128 : index
    %154 = vector.load %arg10[%153, %c128_42] : memref<64x256xf32, #tpu.memory_space<vmem>>, vector<8x128xf32>
    %155 = vector.extract_strided_slice %148 {offsets = [0, 128], sizes = [8, 128], strides = [1, 1]} : vector<8x256xf32> to vector<8x128xf32>
    %156 = arith.addf %154, %155 : vector<8x128xf32>
    %157 = vector.extract_strided_slice %152 {offsets = [0, 0], sizes = [8, 32], strides = [1, 1]} : vector<8x128xf32> to vector<8x32xf32>
    %158 = arith.negf %157 : vector<8x32xf32>
    %159 = math.exp %158 : vector<8x32xf32>
    %cst_43 = arith.constant 1.000000e+00 : f32
    %160 = vector.broadcast %cst_43 : f32 to vector<8x32xf32>
    %161 = arith.addf %160, %159 : vector<8x32xf32>
    %162 = arith.divf %160, %161 : vector<8x32xf32>
    %163 = vector.extract_strided_slice %152 {offsets = [0, 32], sizes = [8, 32], strides = [1, 1]} : vector<8x128xf32> to vector<8x32xf32>
    %164 = arith.negf %163 : vector<8x32xf32>
    %165 = math.exp %164 : vector<8x32xf32>
    %cst_44 = arith.constant 1.000000e+00 : f32
    %166 = vector.broadcast %cst_44 : f32 to vector<8x32xf32>
    %167 = arith.addf %166, %165 : vector<8x32xf32>
    %168 = arith.divf %166, %167 : vector<8x32xf32>
    %169 = vector.extract_strided_slice %152 {offsets = [0, 64], sizes = [8, 32], strides = [1, 1]} : vector<8x128xf32> to vector<8x32xf32>
    %170 = math.tanh %169 : vector<8x32xf32>
    %171 = vector.extract_strided_slice %152 {offsets = [0, 96], sizes = [8, 32], strides = [1, 1]} : vector<8x128xf32> to vector<8x32xf32>
    %172 = arith.negf %171 : vector<8x32xf32>
    %173 = math.exp %172 : vector<8x32xf32>
    %cst_45 = arith.constant 1.000000e+00 : f32
    %174 = vector.broadcast %cst_45 : f32 to vector<8x32xf32>
    %175 = arith.addf %174, %173 : vector<8x32xf32>
    %176 = arith.divf %174, %175 : vector<8x32xf32>
    %177 = arith.mulf %162, %112 : vector<8x32xf32>
    %178 = arith.mulf %168, %170 : vector<8x32xf32>
    %179 = arith.addf %177, %178 : vector<8x32xf32>
    %180 = math.tanh %179 : vector<8x32xf32>
    %181 = arith.mulf %176, %180 : vector<8x32xf32>
    %182 = vector.extract_strided_slice %156 {offsets = [0, 0], sizes = [8, 32], strides = [1, 1]} : vector<8x128xf32> to vector<8x32xf32>
    %183 = arith.negf %182 : vector<8x32xf32>
    %184 = math.exp %183 : vector<8x32xf32>
    %cst_46 = arith.constant 1.000000e+00 : f32
    %185 = vector.broadcast %cst_46 : f32 to vector<8x32xf32>
    %186 = arith.addf %185, %184 : vector<8x32xf32>
    %187 = arith.divf %185, %186 : vector<8x32xf32>
    %188 = vector.extract_strided_slice %156 {offsets = [0, 32], sizes = [8, 32], strides = [1, 1]} : vector<8x128xf32> to vector<8x32xf32>
    %189 = arith.negf %188 : vector<8x32xf32>
    %190 = math.exp %189 : vector<8x32xf32>
    %cst_47 = arith.constant 1.000000e+00 : f32
    %191 = vector.broadcast %cst_47 : f32 to vector<8x32xf32>
    %192 = arith.addf %191, %190 : vector<8x32xf32>
    %193 = arith.divf %191, %192 : vector<8x32xf32>
    %194 = vector.extract_strided_slice %156 {offsets = [0, 64], sizes = [8, 32], strides = [1, 1]} : vector<8x128xf32> to vector<8x32xf32>
    %195 = math.tanh %194 : vector<8x32xf32>
    %196 = vector.extract_strided_slice %156 {offsets = [0, 96], sizes = [8, 32], strides = [1, 1]} : vector<8x128xf32> to vector<8x32xf32>
    %197 = arith.negf %196 : vector<8x32xf32>
    %198 = math.exp %197 : vector<8x32xf32>
    %cst_48 = arith.constant 1.000000e+00 : f32
    %199 = vector.broadcast %cst_48 : f32 to vector<8x32xf32>
    %200 = arith.addf %199, %198 : vector<8x32xf32>
    %201 = arith.divf %199, %200 : vector<8x32xf32>
    %202 = arith.mulf %187, %137 : vector<8x32xf32>
    %203 = arith.mulf %193, %195 : vector<8x32xf32>
    %204 = arith.addf %202, %203 : vector<8x32xf32>
    %205 = math.tanh %204 : vector<8x32xf32>
    %206 = arith.mulf %201, %205 : vector<8x32xf32>
    %207 = arith.index_cast %145 : i32 to index
    %c0_49 = arith.constant 0 : index
    %208 = vector.load %arg11[%207, %c0_49] : memref<64x64xf32, #tpu.memory_space<vmem>>, vector<8x32xf32>
    tpu.vector_store %arg11[%207, %c0_49], %181 {strides = array<i32>} : memref<64x64xf32, #tpu.memory_space<vmem>>, vector<8x32xf32>,
    %209 = arith.index_cast %147 : i32 to index
    %c32_50 = arith.constant 32 : index
    %210 = vector.load %arg11[%209, %c32_50] : memref<64x64xf32, #tpu.memory_space<vmem>>, vector<8x32xf32>
    tpu.vector_store %arg11[%209, %c32_50], %206 {strides = array<i32>} : memref<64x64xf32, #tpu.memory_space<vmem>>, vector<8x32xf32>,
    %211 = tpu.concatenate %181, %206 in 1 : vector<8x32xf32>, vector<8x32xf32> -> vector<8x64xf32>
    %c3_i32 = arith.constant 3 : i32
    %c8_i32_51 = arith.constant 8 : i32
    %212 = arith.muli %c3_i32, %c8_i32_51 : i32
    %c7_i32_52 = arith.constant 7 : i32
    %213 = arith.subi %c7_i32_52, %c3_i32 : i32
    %c8_i32_53 = arith.constant 8 : i32
    %214 = arith.muli %213, %c8_i32_53 : i32
    %cst_54 = arith.constant dense<0.000000e+00> : vector<8x256xf32>
    %215 = tpu.matmul %211, %2, %cst_54 {dimension_numbers = #tpu.dot_dimension_numbers<[1], [0], [0], [1], [0, 0, 1, 1], [], []>} : vector<8x64xf32>, vector<64x256xf32>, vector<8x256xf32> -> vector<8x256xf32>
    %216 = arith.index_cast %212 : i32 to index
    %c0_55 = arith.constant 0 : index
    %217 = vector.load %arg10[%216, %c0_55] : memref<64x256xf32, #tpu.memory_space<vmem>>, vector<8x128xf32>
    %218 = vector.extract_strided_slice %215 {offsets = [0, 0], sizes = [8, 128], strides = [1, 1]} : vector<8x256xf32> to vector<8x128xf32>
    %219 = arith.addf %217, %218 : vector<8x128xf32>
    %220 = arith.index_cast %214 : i32 to index
    %c128_56 = arith.constant 128 : index
    %221 = vector.load %arg10[%220, %c128_56] : memref<64x256xf32, #tpu.memory_space<vmem>>, vector<8x128xf32>
    %222 = vector.extract_strided_slice %215 {offsets = [0, 128], sizes = [8, 128], strides = [1, 1]} : vector<8x256xf32> to vector<8x128xf32>
    %223 = arith.addf %221, %222 : vector<8x128xf32>
    %224 = vector.extract_strided_slice %219 {offsets = [0, 0], sizes = [8, 32], strides = [1, 1]} : vector<8x128xf32> to vector<8x32xf32>
    %225 = arith.negf %224 : vector<8x32xf32>
    %226 = math.exp %225 : vector<8x32xf32>
    %cst_57 = arith.constant 1.000000e+00 : f32
    %227 = vector.broadcast %cst_57 : f32 to vector<8x32xf32>
    %228 = arith.addf %227, %226 : vector<8x32xf32>
    %229 = arith.divf %227, %228 : vector<8x32xf32>
    %230 = vector.extract_strided_slice %219 {offsets = [0, 32], sizes = [8, 32], strides = [1, 1]} : vector<8x128xf32> to vector<8x32xf32>
    %231 = arith.negf %230 : vector<8x32xf32>
    %232 = math.exp %231 : vector<8x32xf32>
    %cst_58 = arith.constant 1.000000e+00 : f32
    %233 = vector.broadcast %cst_58 : f32 to vector<8x32xf32>
    %234 = arith.addf %233, %232 : vector<8x32xf32>
    %235 = arith.divf %233, %234 : vector<8x32xf32>
    %236 = vector.extract_strided_slice %219 {offsets = [0, 64], sizes = [8, 32], strides = [1, 1]} : vector<8x128xf32> to vector<8x32xf32>
    %237 = math.tanh %236 : vector<8x32xf32>
    %238 = vector.extract_strided_slice %219 {offsets = [0, 96], sizes = [8, 32], strides = [1, 1]} : vector<8x128xf32> to vector<8x32xf32>
    %239 = arith.negf %238 : vector<8x32xf32>
    %240 = math.exp %239 : vector<8x32xf32>
    %cst_59 = arith.constant 1.000000e+00 : f32
    %241 = vector.broadcast %cst_59 : f32 to vector<8x32xf32>
    %242 = arith.addf %241, %240 : vector<8x32xf32>
    %243 = arith.divf %241, %242 : vector<8x32xf32>
    %244 = arith.mulf %229, %179 : vector<8x32xf32>
    %245 = arith.mulf %235, %237 : vector<8x32xf32>
    %246 = arith.addf %244, %245 : vector<8x32xf32>
    %247 = math.tanh %246 : vector<8x32xf32>
    %248 = arith.mulf %243, %247 : vector<8x32xf32>
    %249 = vector.extract_strided_slice %223 {offsets = [0, 0], sizes = [8, 32], strides = [1, 1]} : vector<8x128xf32> to vector<8x32xf32>
    %250 = arith.negf %249 : vector<8x32xf32>
    %251 = math.exp %250 : vector<8x32xf32>
    %cst_60 = arith.constant 1.000000e+00 : f32
    %252 = vector.broadcast %cst_60 : f32 to vector<8x32xf32>
    %253 = arith.addf %252, %251 : vector<8x32xf32>
    %254 = arith.divf %252, %253 : vector<8x32xf32>
    %255 = vector.extract_strided_slice %223 {offsets = [0, 32], sizes = [8, 32], strides = [1, 1]} : vector<8x128xf32> to vector<8x32xf32>
    %256 = arith.negf %255 : vector<8x32xf32>
    %257 = math.exp %256 : vector<8x32xf32>
    %cst_61 = arith.constant 1.000000e+00 : f32
    %258 = vector.broadcast %cst_61 : f32 to vector<8x32xf32>
    %259 = arith.addf %258, %257 : vector<8x32xf32>
    %260 = arith.divf %258, %259 : vector<8x32xf32>
    %261 = vector.extract_strided_slice %223 {offsets = [0, 64], sizes = [8, 32], strides = [1, 1]} : vector<8x128xf32> to vector<8x32xf32>
    %262 = math.tanh %261 : vector<8x32xf32>
    %263 = vector.extract_strided_slice %223 {offsets = [0, 96], sizes = [8, 32], strides = [1, 1]} : vector<8x128xf32> to vector<8x32xf32>
    %264 = arith.negf %263 : vector<8x32xf32>
    %265 = math.exp %264 : vector<8x32xf32>
    %cst_62 = arith.constant 1.000000e+00 : f32
    %266 = vector.broadcast %cst_62 : f32 to vector<8x32xf32>
    %267 = arith.addf %266, %265 : vector<8x32xf32>
    %268 = arith.divf %266, %267 : vector<8x32xf32>
    %269 = arith.mulf %254, %204 : vector<8x32xf32>
    %270 = arith.mulf %260, %262 : vector<8x32xf32>
    %271 = arith.addf %269, %270 : vector<8x32xf32>
    %272 = math.tanh %271 : vector<8x32xf32>
    %273 = arith.mulf %268, %272 : vector<8x32xf32>
    %274 = arith.index_cast %212 : i32 to index
    %c0_63 = arith.constant 0 : index
    %275 = vector.load %arg11[%274, %c0_63] : memref<64x64xf32, #tpu.memory_space<vmem>>, vector<8x32xf32>
    tpu.vector_store %arg11[%274, %c0_63], %248 {strides = array<i32>} : memref<64x64xf32, #tpu.memory_space<vmem>>, vector<8x32xf32>,
    %276 = arith.index_cast %214 : i32 to index
    %c32_64 = arith.constant 32 : index
    %277 = vector.load %arg11[%276, %c32_64] : memref<64x64xf32, #tpu.memory_space<vmem>>, vector<8x32xf32>
    tpu.vector_store %arg11[%276, %c32_64], %273 {strides = array<i32>} : memref<64x64xf32, #tpu.memory_space<vmem>>, vector<8x32xf32>,
    %278 = tpu.concatenate %248, %273 in 1 : vector<8x32xf32>, vector<8x32xf32> -> vector<8x64xf32>
    %c4_i32 = arith.constant 4 : i32
    %c8_i32_65 = arith.constant 8 : i32
    %279 = arith.muli %c4_i32, %c8_i32_65 : i32
    %c7_i32_66 = arith.constant 7 : i32
    %280 = arith.subi %c7_i32_66, %c4_i32 : i32
    %c8_i32_67 = arith.constant 8 : i32
    %281 = arith.muli %280, %c8_i32_67 : i32
    %cst_68 = arith.constant dense<0.000000e+00> : vector<8x256xf32>
    %282 = tpu.matmul %278, %2, %cst_68 {dimension_numbers = #tpu.dot_dimension_numbers<[1], [0], [0], [1], [0, 0, 1, 1], [], []>} : vector<8x64xf32>, vector<64x256xf32>, vector<8x256xf32> -> vector<8x256xf32>
    %283 = arith.index_cast %279 : i32 to index
    %c0_69 = arith.constant 0 : index
    %284 = vector.load %arg10[%283, %c0_69] : memref<64x256xf32, #tpu.memory_space<vmem>>, vector<8x128xf32>
    %285 = vector.extract_strided_slice %282 {offsets = [0, 0], sizes = [8, 128], strides = [1, 1]} : vector<8x256xf32> to vector<8x128xf32>
    %286 = arith.addf %284, %285 : vector<8x128xf32>
    %287 = arith.index_cast %281 : i32 to index
    %c128_70 = arith.constant 128 : index
    %288 = vector.load %arg10[%287, %c128_70] : memref<64x256xf32, #tpu.memory_space<vmem>>, vector<8x128xf32>
    %289 = vector.extract_strided_slice %282 {offsets = [0, 128], sizes = [8, 128], strides = [1, 1]} : vector<8x256xf32> to vector<8x128xf32>
    %290 = arith.addf %288, %289 : vector<8x128xf32>
    %291 = vector.extract_strided_slice %286 {offsets = [0, 0], sizes = [8, 32], strides = [1, 1]} : vector<8x128xf32> to vector<8x32xf32>
    %292 = arith.negf %291 : vector<8x32xf32>
    %293 = math.exp %292 : vector<8x32xf32>
    %cst_71 = arith.constant 1.000000e+00 : f32
    %294 = vector.broadcast %cst_71 : f32 to vector<8x32xf32>
    %295 = arith.addf %294, %293 : vector<8x32xf32>
    %296 = arith.divf %294, %295 : vector<8x32xf32>
    %297 = vector.extract_strided_slice %286 {offsets = [0, 32], sizes = [8, 32], strides = [1, 1]} : vector<8x128xf32> to vector<8x32xf32>
    %298 = arith.negf %297 : vector<8x32xf32>
    %299 = math.exp %298 : vector<8x32xf32>
    %cst_72 = arith.constant 1.000000e+00 : f32
    %300 = vector.broadcast %cst_72 : f32 to vector<8x32xf32>
    %301 = arith.addf %300, %299 : vector<8x32xf32>
    %302 = arith.divf %300, %301 : vector<8x32xf32>
    %303 = vector.extract_strided_slice %286 {offsets = [0, 64], sizes = [8, 32], strides = [1, 1]} : vector<8x128xf32> to vector<8x32xf32>
    %304 = math.tanh %303 : vector<8x32xf32>
    %305 = vector.extract_strided_slice %286 {offsets = [0, 96], sizes = [8, 32], strides = [1, 1]} : vector<8x128xf32> to vector<8x32xf32>
    %306 = arith.negf %305 : vector<8x32xf32>
    %307 = math.exp %306 : vector<8x32xf32>
    %cst_73 = arith.constant 1.000000e+00 : f32
    %308 = vector.broadcast %cst_73 : f32 to vector<8x32xf32>
    %309 = arith.addf %308, %307 : vector<8x32xf32>
    %310 = arith.divf %308, %309 : vector<8x32xf32>
    %311 = arith.mulf %296, %246 : vector<8x32xf32>
    %312 = arith.mulf %302, %304 : vector<8x32xf32>
    %313 = arith.addf %311, %312 : vector<8x32xf32>
    %314 = math.tanh %313 : vector<8x32xf32>
    %315 = arith.mulf %310, %314 : vector<8x32xf32>
    %316 = vector.extract_strided_slice %290 {offsets = [0, 0], sizes = [8, 32], strides = [1, 1]} : vector<8x128xf32> to vector<8x32xf32>
    %317 = arith.negf %316 : vector<8x32xf32>
    %318 = math.exp %317 : vector<8x32xf32>
    %cst_74 = arith.constant 1.000000e+00 : f32
    %319 = vector.broadcast %cst_74 : f32 to vector<8x32xf32>
    %320 = arith.addf %319, %318 : vector<8x32xf32>
    %321 = arith.divf %319, %320 : vector<8x32xf32>
    %322 = vector.extract_strided_slice %290 {offsets = [0, 32], sizes = [8, 32], strides = [1, 1]} : vector<8x128xf32> to vector<8x32xf32>
    %323 = arith.negf %322 : vector<8x32xf32>
    %324 = math.exp %323 : vector<8x32xf32>
    %cst_75 = arith.constant 1.000000e+00 : f32
    %325 = vector.broadcast %cst_75 : f32 to vector<8x32xf32>
    %326 = arith.addf %325, %324 : vector<8x32xf32>
    %327 = arith.divf %325, %326 : vector<8x32xf32>
    %328 = vector.extract_strided_slice %290 {offsets = [0, 64], sizes = [8, 32], strides = [1, 1]} : vector<8x128xf32> to vector<8x32xf32>
    %329 = math.tanh %328 : vector<8x32xf32>
    %330 = vector.extract_strided_slice %290 {offsets = [0, 96], sizes = [8, 32], strides = [1, 1]} : vector<8x128xf32> to vector<8x32xf32>
    %331 = arith.negf %330 : vector<8x32xf32>
    %332 = math.exp %331 : vector<8x32xf32>
    %cst_76 = arith.constant 1.000000e+00 : f32
    %333 = vector.broadcast %cst_76 : f32 to vector<8x32xf32>
    %334 = arith.addf %333, %332 : vector<8x32xf32>
    %335 = arith.divf %333, %334 : vector<8x32xf32>
    %336 = arith.mulf %321, %271 : vector<8x32xf32>
    %337 = arith.mulf %327, %329 : vector<8x32xf32>
    %338 = arith.addf %336, %337 : vector<8x32xf32>
    %339 = math.tanh %338 : vector<8x32xf32>
    %340 = arith.mulf %335, %339 : vector<8x32xf32>
    %341 = arith.index_cast %279 : i32 to index
    %c0_77 = arith.constant 0 : index
    %342 = vector.load %arg11[%341, %c0_77] : memref<64x64xf32, #tpu.memory_space<vmem>>, vector<8x32xf32>
    tpu.vector_store %arg11[%341, %c0_77], %315 {strides = array<i32>} : memref<64x64xf32, #tpu.memory_space<vmem>>, vector<8x32xf32>,
    %343 = arith.index_cast %281 : i32 to index
    %c32_78 = arith.constant 32 : index
    %344 = vector.load %arg11[%343, %c32_78] : memref<64x64xf32, #tpu.memory_space<vmem>>, vector<8x32xf32>
    tpu.vector_store %arg11[%343, %c32_78], %340 {strides = array<i32>} : memref<64x64xf32, #tpu.memory_space<vmem>>, vector<8x32xf32>,
    %345 = tpu.concatenate %315, %340 in 1 : vector<8x32xf32>, vector<8x32xf32> -> vector<8x64xf32>
    %c5_i32 = arith.constant 5 : i32
    %c8_i32_79 = arith.constant 8 : i32
    %346 = arith.muli %c5_i32, %c8_i32_79 : i32
    %c7_i32_80 = arith.constant 7 : i32
    %347 = arith.subi %c7_i32_80, %c5_i32 : i32
    %c8_i32_81 = arith.constant 8 : i32
    %348 = arith.muli %347, %c8_i32_81 : i32
    %cst_82 = arith.constant dense<0.000000e+00> : vector<8x256xf32>
    %349 = tpu.matmul %345, %2, %cst_82 {dimension_numbers = #tpu.dot_dimension_numbers<[1], [0], [0], [1], [0, 0, 1, 1], [], []>} : vector<8x64xf32>, vector<64x256xf32>, vector<8x256xf32> -> vector<8x256xf32>
    %350 = arith.index_cast %346 : i32 to index
    %c0_83 = arith.constant 0 : index
    %351 = vector.load %arg10[%350, %c0_83] : memref<64x256xf32, #tpu.memory_space<vmem>>, vector<8x128xf32>
    %352 = vector.extract_strided_slice %349 {offsets = [0, 0], sizes = [8, 128], strides = [1, 1]} : vector<8x256xf32> to vector<8x128xf32>
    %353 = arith.addf %351, %352 : vector<8x128xf32>
    %354 = arith.index_cast %348 : i32 to index
    %c128_84 = arith.constant 128 : index
    %355 = vector.load %arg10[%354, %c128_84] : memref<64x256xf32, #tpu.memory_space<vmem>>, vector<8x128xf32>
    %356 = vector.extract_strided_slice %349 {offsets = [0, 128], sizes = [8, 128], strides = [1, 1]} : vector<8x256xf32> to vector<8x128xf32>
    %357 = arith.addf %355, %356 : vector<8x128xf32>
    %358 = vector.extract_strided_slice %353 {offsets = [0, 0], sizes = [8, 32], strides = [1, 1]} : vector<8x128xf32> to vector<8x32xf32>
    %359 = arith.negf %358 : vector<8x32xf32>
    %360 = math.exp %359 : vector<8x32xf32>
    %cst_85 = arith.constant 1.000000e+00 : f32
    %361 = vector.broadcast %cst_85 : f32 to vector<8x32xf32>
    %362 = arith.addf %361, %360 : vector<8x32xf32>
    %363 = arith.divf %361, %362 : vector<8x32xf32>
    %364 = vector.extract_strided_slice %353 {offsets = [0, 32], sizes = [8, 32], strides = [1, 1]} : vector<8x128xf32> to vector<8x32xf32>
    %365 = arith.negf %364 : vector<8x32xf32>
    %366 = math.exp %365 : vector<8x32xf32>
    %cst_86 = arith.constant 1.000000e+00 : f32
    %367 = vector.broadcast %cst_86 : f32 to vector<8x32xf32>
    %368 = arith.addf %367, %366 : vector<8x32xf32>
    %369 = arith.divf %367, %368 : vector<8x32xf32>
    %370 = vector.extract_strided_slice %353 {offsets = [0, 64], sizes = [8, 32], strides = [1, 1]} : vector<8x128xf32> to vector<8x32xf32>
    %371 = math.tanh %370 : vector<8x32xf32>
    %372 = vector.extract_strided_slice %353 {offsets = [0, 96], sizes = [8, 32], strides = [1, 1]} : vector<8x128xf32> to vector<8x32xf32>
    %373 = arith.negf %372 : vector<8x32xf32>
    %374 = math.exp %373 : vector<8x32xf32>
    %cst_87 = arith.constant 1.000000e+00 : f32
    %375 = vector.broadcast %cst_87 : f32 to vector<8x32xf32>
    %376 = arith.addf %375, %374 : vector<8x32xf32>
    %377 = arith.divf %375, %376 : vector<8x32xf32>
    %378 = arith.mulf %363, %313 : vector<8x32xf32>
    %379 = arith.mulf %369, %371 : vector<8x32xf32>
    %380 = arith.addf %378, %379 : vector<8x32xf32>
    %381 = math.tanh %380 : vector<8x32xf32>
    %382 = arith.mulf %377, %381 : vector<8x32xf32>
    %383 = vector.extract_strided_slice %357 {offsets = [0, 0], sizes = [8, 32], strides = [1, 1]} : vector<8x128xf32> to vector<8x32xf32>
    %384 = arith.negf %383 : vector<8x32xf32>
    %385 = math.exp %384 : vector<8x32xf32>
    %cst_88 = arith.constant 1.000000e+00 : f32
    %386 = vector.broadcast %cst_88 : f32 to vector<8x32xf32>
    %387 = arith.addf %386, %385 : vector<8x32xf32>
    %388 = arith.divf %386, %387 : vector<8x32xf32>
    %389 = vector.extract_strided_slice %357 {offsets = [0, 32], sizes = [8, 32], strides = [1, 1]} : vector<8x128xf32> to vector<8x32xf32>
    %390 = arith.negf %389 : vector<8x32xf32>
    %391 = math.exp %390 : vector<8x32xf32>
    %cst_89 = arith.constant 1.000000e+00 : f32
    %392 = vector.broadcast %cst_89 : f32 to vector<8x32xf32>
    %393 = arith.addf %392, %391 : vector<8x32xf32>
    %394 = arith.divf %392, %393 : vector<8x32xf32>
    %395 = vector.extract_strided_slice %357 {offsets = [0, 64], sizes = [8, 32], strides = [1, 1]} : vector<8x128xf32> to vector<8x32xf32>
    %396 = math.tanh %395 : vector<8x32xf32>
    %397 = vector.extract_strided_slice %357 {offsets = [0, 96], sizes = [8, 32], strides = [1, 1]} : vector<8x128xf32> to vector<8x32xf32>
    %398 = arith.negf %397 : vector<8x32xf32>
    %399 = math.exp %398 : vector<8x32xf32>
    %cst_90 = arith.constant 1.000000e+00 : f32
    %400 = vector.broadcast %cst_90 : f32 to vector<8x32xf32>
    %401 = arith.addf %400, %399 : vector<8x32xf32>
    %402 = arith.divf %400, %401 : vector<8x32xf32>
    %403 = arith.mulf %388, %338 : vector<8x32xf32>
    %404 = arith.mulf %394, %396 : vector<8x32xf32>
    %405 = arith.addf %403, %404 : vector<8x32xf32>
    %406 = math.tanh %405 : vector<8x32xf32>
    %407 = arith.mulf %402, %406 : vector<8x32xf32>
    %408 = arith.index_cast %346 : i32 to index
    %c0_91 = arith.constant 0 : index
    %409 = vector.load %arg11[%408, %c0_91] : memref<64x64xf32, #tpu.memory_space<vmem>>, vector<8x32xf32>
    tpu.vector_store %arg11[%408, %c0_91], %382 {strides = array<i32>} : memref<64x64xf32, #tpu.memory_space<vmem>>, vector<8x32xf32>,
    %410 = arith.index_cast %348 : i32 to index
    %c32_92 = arith.constant 32 : index
    %411 = vector.load %arg11[%410, %c32_92] : memref<64x64xf32, #tpu.memory_space<vmem>>, vector<8x32xf32>
    tpu.vector_store %arg11[%410, %c32_92], %407 {strides = array<i32>} : memref<64x64xf32, #tpu.memory_space<vmem>>, vector<8x32xf32>,
    %412 = tpu.concatenate %382, %407 in 1 : vector<8x32xf32>, vector<8x32xf32> -> vector<8x64xf32>
    %c6_i32 = arith.constant 6 : i32
    %c8_i32_93 = arith.constant 8 : i32
    %413 = arith.muli %c6_i32, %c8_i32_93 : i32
    %c7_i32_94 = arith.constant 7 : i32
    %414 = arith.subi %c7_i32_94, %c6_i32 : i32
    %c8_i32_95 = arith.constant 8 : i32
    %415 = arith.muli %414, %c8_i32_95 : i32
    %cst_96 = arith.constant dense<0.000000e+00> : vector<8x256xf32>
    %416 = tpu.matmul %412, %2, %cst_96 {dimension_numbers = #tpu.dot_dimension_numbers<[1], [0], [0], [1], [0, 0, 1, 1], [], []>} : vector<8x64xf32>, vector<64x256xf32>, vector<8x256xf32> -> vector<8x256xf32>
    %417 = arith.index_cast %413 : i32 to index
    %c0_97 = arith.constant 0 : index
    %418 = vector.load %arg10[%417, %c0_97] : memref<64x256xf32, #tpu.memory_space<vmem>>, vector<8x128xf32>
    %419 = vector.extract_strided_slice %416 {offsets = [0, 0], sizes = [8, 128], strides = [1, 1]} : vector<8x256xf32> to vector<8x128xf32>
    %420 = arith.addf %418, %419 : vector<8x128xf32>
    %421 = arith.index_cast %415 : i32 to index
    %c128_98 = arith.constant 128 : index
    %422 = vector.load %arg10[%421, %c128_98] : memref<64x256xf32, #tpu.memory_space<vmem>>, vector<8x128xf32>
    %423 = vector.extract_strided_slice %416 {offsets = [0, 128], sizes = [8, 128], strides = [1, 1]} : vector<8x256xf32> to vector<8x128xf32>
    %424 = arith.addf %422, %423 : vector<8x128xf32>
    %425 = vector.extract_strided_slice %420 {offsets = [0, 0], sizes = [8, 32], strides = [1, 1]} : vector<8x128xf32> to vector<8x32xf32>
    %426 = arith.negf %425 : vector<8x32xf32>
    %427 = math.exp %426 : vector<8x32xf32>
    %cst_99 = arith.constant 1.000000e+00 : f32
    %428 = vector.broadcast %cst_99 : f32 to vector<8x32xf32>
    %429 = arith.addf %428, %427 : vector<8x32xf32>
    %430 = arith.divf %428, %429 : vector<8x32xf32>
    %431 = vector.extract_strided_slice %420 {offsets = [0, 32], sizes = [8, 32], strides = [1, 1]} : vector<8x128xf32> to vector<8x32xf32>
    %432 = arith.negf %431 : vector<8x32xf32>
    %433 = math.exp %432 : vector<8x32xf32>
    %cst_100 = arith.constant 1.000000e+00 : f32
    %434 = vector.broadcast %cst_100 : f32 to vector<8x32xf32>
    %435 = arith.addf %434, %433 : vector<8x32xf32>
    %436 = arith.divf %434, %435 : vector<8x32xf32>
    %437 = vector.extract_strided_slice %420 {offsets = [0, 64], sizes = [8, 32], strides = [1, 1]} : vector<8x128xf32> to vector<8x32xf32>
    %438 = math.tanh %437 : vector<8x32xf32>
    %439 = vector.extract_strided_slice %420 {offsets = [0, 96], sizes = [8, 32], strides = [1, 1]} : vector<8x128xf32> to vector<8x32xf32>
    %440 = arith.negf %439 : vector<8x32xf32>
    %441 = math.exp %440 : vector<8x32xf32>
    %cst_101 = arith.constant 1.000000e+00 : f32
    %442 = vector.broadcast %cst_101 : f32 to vector<8x32xf32>
    %443 = arith.addf %442, %441 : vector<8x32xf32>
    %444 = arith.divf %442, %443 : vector<8x32xf32>
    %445 = arith.mulf %430, %380 : vector<8x32xf32>
    %446 = arith.mulf %436, %438 : vector<8x32xf32>
    %447 = arith.addf %445, %446 : vector<8x32xf32>
    %448 = math.tanh %447 : vector<8x32xf32>
    %449 = arith.mulf %444, %448 : vector<8x32xf32>
    %450 = vector.extract_strided_slice %424 {offsets = [0, 0], sizes = [8, 32], strides = [1, 1]} : vector<8x128xf32> to vector<8x32xf32>
    %451 = arith.negf %450 : vector<8x32xf32>
    %452 = math.exp %451 : vector<8x32xf32>
    %cst_102 = arith.constant 1.000000e+00 : f32
    %453 = vector.broadcast %cst_102 : f32 to vector<8x32xf32>
    %454 = arith.addf %453, %452 : vector<8x32xf32>
    %455 = arith.divf %453, %454 : vector<8x32xf32>
    %456 = vector.extract_strided_slice %424 {offsets = [0, 32], sizes = [8, 32], strides = [1, 1]} : vector<8x128xf32> to vector<8x32xf32>
    %457 = arith.negf %456 : vector<8x32xf32>
    %458 = math.exp %457 : vector<8x32xf32>
    %cst_103 = arith.constant 1.000000e+00 : f32
    %459 = vector.broadcast %cst_103 : f32 to vector<8x32xf32>
    %460 = arith.addf %459, %458 : vector<8x32xf32>
    %461 = arith.divf %459, %460 : vector<8x32xf32>
    %462 = vector.extract_strided_slice %424 {offsets = [0, 64], sizes = [8, 32], strides = [1, 1]} : vector<8x128xf32> to vector<8x32xf32>
    %463 = math.tanh %462 : vector<8x32xf32>
    %464 = vector.extract_strided_slice %424 {offsets = [0, 96], sizes = [8, 32], strides = [1, 1]} : vector<8x128xf32> to vector<8x32xf32>
    %465 = arith.negf %464 : vector<8x32xf32>
    %466 = math.exp %465 : vector<8x32xf32>
    %cst_104 = arith.constant 1.000000e+00 : f32
    %467 = vector.broadcast %cst_104 : f32 to vector<8x32xf32>
    %468 = arith.addf %467, %466 : vector<8x32xf32>
    %469 = arith.divf %467, %468 : vector<8x32xf32>
    %470 = arith.mulf %455, %405 : vector<8x32xf32>
    %471 = arith.mulf %461, %463 : vector<8x32xf32>
    %472 = arith.addf %470, %471 : vector<8x32xf32>
    %473 = math.tanh %472 : vector<8x32xf32>
    %474 = arith.mulf %469, %473 : vector<8x32xf32>
    %475 = arith.index_cast %413 : i32 to index
    %c0_105 = arith.constant 0 : index
    %476 = vector.load %arg11[%475, %c0_105] : memref<64x64xf32, #tpu.memory_space<vmem>>, vector<8x32xf32>
    tpu.vector_store %arg11[%475, %c0_105], %449 {strides = array<i32>} : memref<64x64xf32, #tpu.memory_space<vmem>>, vector<8x32xf32>,
    %477 = arith.index_cast %415 : i32 to index
    %c32_106 = arith.constant 32 : index
    %478 = vector.load %arg11[%477, %c32_106] : memref<64x64xf32, #tpu.memory_space<vmem>>, vector<8x32xf32>
    tpu.vector_store %arg11[%477, %c32_106], %474 {strides = array<i32>} : memref<64x64xf32, #tpu.memory_space<vmem>>, vector<8x32xf32>,
    %479 = tpu.concatenate %449, %474 in 1 : vector<8x32xf32>, vector<8x32xf32> -> vector<8x64xf32>
    %c7_i32_107 = arith.constant 7 : i32
    %c8_i32_108 = arith.constant 8 : i32
    %480 = arith.muli %c7_i32_107, %c8_i32_108 : i32
    %c7_i32_109 = arith.constant 7 : i32
    %481 = arith.subi %c7_i32_109, %c7_i32_107 : i32
    %c8_i32_110 = arith.constant 8 : i32
    %482 = arith.muli %481, %c8_i32_110 : i32
    %cst_111 = arith.constant dense<0.000000e+00> : vector<8x256xf32>
    %483 = tpu.matmul %479, %2, %cst_111 {dimension_numbers = #tpu.dot_dimension_numbers<[1], [0], [0], [1], [0, 0, 1, 1], [], []>} : vector<8x64xf32>, vector<64x256xf32>, vector<8x256xf32> -> vector<8x256xf32>
    %484 = arith.index_cast %480 : i32 to index
    %c0_112 = arith.constant 0 : index
    %485 = vector.load %arg10[%484, %c0_112] : memref<64x256xf32, #tpu.memory_space<vmem>>, vector<8x128xf32>
    %486 = vector.extract_strided_slice %483 {offsets = [0, 0], sizes = [8, 128], strides = [1, 1]} : vector<8x256xf32> to vector<8x128xf32>
    %487 = arith.addf %485, %486 : vector<8x128xf32>
    %488 = arith.index_cast %482 : i32 to index
    %c128_113 = arith.constant 128 : index
    %489 = vector.load %arg10[%488, %c128_113] : memref<64x256xf32, #tpu.memory_space<vmem>>, vector<8x128xf32>
    %490 = vector.extract_strided_slice %483 {offsets = [0, 128], sizes = [8, 128], strides = [1, 1]} : vector<8x256xf32> to vector<8x128xf32>
    %491 = arith.addf %489, %490 : vector<8x128xf32>
    %492 = vector.extract_strided_slice %487 {offsets = [0, 0], sizes = [8, 32], strides = [1, 1]} : vector<8x128xf32> to vector<8x32xf32>
    %493 = arith.negf %492 : vector<8x32xf32>
    %494 = math.exp %493 : vector<8x32xf32>
    %cst_114 = arith.constant 1.000000e+00 : f32
    %495 = vector.broadcast %cst_114 : f32 to vector<8x32xf32>
    %496 = arith.addf %495, %494 : vector<8x32xf32>
    %497 = arith.divf %495, %496 : vector<8x32xf32>
    %498 = vector.extract_strided_slice %487 {offsets = [0, 32], sizes = [8, 32], strides = [1, 1]} : vector<8x128xf32> to vector<8x32xf32>
    %499 = arith.negf %498 : vector<8x32xf32>
    %500 = math.exp %499 : vector<8x32xf32>
    %cst_115 = arith.constant 1.000000e+00 : f32
    %501 = vector.broadcast %cst_115 : f32 to vector<8x32xf32>
    %502 = arith.addf %501, %500 : vector<8x32xf32>
    %503 = arith.divf %501, %502 : vector<8x32xf32>
    %504 = vector.extract_strided_slice %487 {offsets = [0, 64], sizes = [8, 32], strides = [1, 1]} : vector<8x128xf32> to vector<8x32xf32>
    %505 = math.tanh %504 : vector<8x32xf32>
    %506 = vector.extract_strided_slice %487 {offsets = [0, 96], sizes = [8, 32], strides = [1, 1]} : vector<8x128xf32> to vector<8x32xf32>
    %507 = arith.negf %506 : vector<8x32xf32>
    %508 = math.exp %507 : vector<8x32xf32>
    %cst_116 = arith.constant 1.000000e+00 : f32
    %509 = vector.broadcast %cst_116 : f32 to vector<8x32xf32>
    %510 = arith.addf %509, %508 : vector<8x32xf32>
    %511 = arith.divf %509, %510 : vector<8x32xf32>
    %512 = arith.mulf %497, %447 : vector<8x32xf32>
    %513 = arith.mulf %503, %505 : vector<8x32xf32>
    %514 = arith.addf %512, %513 : vector<8x32xf32>
    %515 = math.tanh %514 : vector<8x32xf32>
    %516 = arith.mulf %511, %515 : vector<8x32xf32>
    %517 = vector.extract_strided_slice %491 {offsets = [0, 0], sizes = [8, 32], strides = [1, 1]} : vector<8x128xf32> to vector<8x32xf32>
    %518 = arith.negf %517 : vector<8x32xf32>
    %519 = math.exp %518 : vector<8x32xf32>
    %cst_117 = arith.constant 1.000000e+00 : f32
    %520 = vector.broadcast %cst_117 : f32 to vector<8x32xf32>
    %521 = arith.addf %520, %519 : vector<8x32xf32>
    %522 = arith.divf %520, %521 : vector<8x32xf32>
    %523 = vector.extract_strided_slice %491 {offsets = [0, 32], sizes = [8, 32], strides = [1, 1]} : vector<8x128xf32> to vector<8x32xf32>
    %524 = arith.negf %523 : vector<8x32xf32>
    %525 = math.exp %524 : vector<8x32xf32>
    %cst_118 = arith.constant 1.000000e+00 : f32
    %526 = vector.broadcast %cst_118 : f32 to vector<8x32xf32>
    %527 = arith.addf %526, %525 : vector<8x32xf32>
    %528 = arith.divf %526, %527 : vector<8x32xf32>
    %529 = vector.extract_strided_slice %491 {offsets = [0, 64], sizes = [8, 32], strides = [1, 1]} : vector<8x128xf32> to vector<8x32xf32>
    %530 = math.tanh %529 : vector<8x32xf32>
    %531 = vector.extract_strided_slice %491 {offsets = [0, 96], sizes = [8, 32], strides = [1, 1]} : vector<8x128xf32> to vector<8x32xf32>
    %532 = arith.negf %531 : vector<8x32xf32>
    %533 = math.exp %532 : vector<8x32xf32>
    %cst_119 = arith.constant 1.000000e+00 : f32
    %534 = vector.broadcast %cst_119 : f32 to vector<8x32xf32>
    %535 = arith.addf %534, %533 : vector<8x32xf32>
    %536 = arith.divf %534, %535 : vector<8x32xf32>
    %537 = arith.mulf %522, %472 : vector<8x32xf32>
    %538 = arith.mulf %528, %530 : vector<8x32xf32>
    %539 = arith.addf %537, %538 : vector<8x32xf32>
    %540 = math.tanh %539 : vector<8x32xf32>
    %541 = arith.mulf %536, %540 : vector<8x32xf32>
    %542 = arith.index_cast %480 : i32 to index
    %c0_120 = arith.constant 0 : index
    %543 = vector.load %arg11[%542, %c0_120] : memref<64x64xf32, #tpu.memory_space<vmem>>, vector<8x32xf32>
    tpu.vector_store %arg11[%542, %c0_120], %516 {strides = array<i32>} : memref<64x64xf32, #tpu.memory_space<vmem>>, vector<8x32xf32>,
    %544 = arith.index_cast %482 : i32 to index
    %c32_121 = arith.constant 32 : index
    %545 = vector.load %arg11[%544, %c32_121] : memref<64x64xf32, #tpu.memory_space<vmem>>, vector<8x32xf32>
    tpu.vector_store %arg11[%544, %c32_121], %541 {strides = array<i32>} : memref<64x64xf32, #tpu.memory_space<vmem>>, vector<8x32xf32>,
    %546 = tpu.concatenate %516, %541 in 1 : vector<8x32xf32>, vector<8x32xf32> -> vector<8x64xf32>
    %c8_i32_122 = arith.constant 8 : i32
    %c0_123 = arith.constant 0 : index
    %c0_124 = arith.constant 0 : index
    %547 = vector.load %arg11[%c0_123, %c0_124] : memref<64x64xf32, #tpu.memory_space<vmem>>, vector<64x64xf32>
    %c0_125 = arith.constant 0 : index
    %c0_126 = arith.constant 0 : index
    %548 = vector.load %arg4[%c0_125, %c0_126] : memref<64x256xf32, #tpu.memory_space<vmem>>, vector<64x256xf32>
    %cst_127 = arith.constant dense<0.000000e+00> : vector<64x256xf32>
    %549 = tpu.matmul %547, %548, %cst_127 {dimension_numbers = #tpu.dot_dimension_numbers<[1], [0], [0], [1], [0, 0, 1, 1], [], []>} : vector<64x64xf32>, vector<64x256xf32>, vector<64x256xf32> -> vector<64x256xf32>
    %c0_128 = arith.constant 0 : index
    %c0_129 = arith.constant 0 : index
    %550 = vector.load %arg5[%c0_128, %c0_129] : memref<1x256xf32, #tpu.memory_space<vmem>>, vector<1x256xf32>
    %551 = vector.broadcast %550 : vector<1x256xf32> to vector<64x256xf32>
    %552 = arith.addf %549, %551 : vector<64x256xf32>
    %c0_130 = arith.constant 0 : index
    %c0_131 = arith.constant 0 : index
    %553 = vector.load %arg10[%c0_130, %c0_131] : memref<64x256xf32, #tpu.memory_space<vmem>>, vector<64x256xf32>
    tpu.vector_store %arg10[%c0_130, %c0_131], %552 {strides = array<i32>} : memref<64x256xf32, #tpu.memory_space<vmem>>, vector<64x256xf32>,
    %c0_i32_132 = arith.constant 0 : i32
    %c8_i32_133 = arith.constant 8 : i32
    %554 = arith.muli %c0_i32_132, %c8_i32_133 : i32
    %c7_i32_134 = arith.constant 7 : i32
    %555 = arith.subi %c7_i32_134, %c0_i32_132 : i32
    %c8_i32_135 = arith.constant 8 : i32
    %556 = arith.muli %555, %c8_i32_135 : i32
    %cst_136 = arith.constant dense<0.000000e+00> : vector<8x256xf32>
    %557 = tpu.matmul %1, %3, %cst_136 {dimension_numbers = #tpu.dot_dimension_numbers<[1], [0], [0], [1], [0, 0, 1, 1], [], []>} : vector<8x64xf32>, vector<64x256xf32>, vector<8x256xf32> -> vector<8x256xf32>
    %558 = arith.index_cast %554 : i32 to index
    %c0_137 = arith.constant 0 : index
    %559 = vector.load %arg10[%558, %c0_137] : memref<64x256xf32, #tpu.memory_space<vmem>>, vector<8x128xf32>
    %560 = vector.extract_strided_slice %557 {offsets = [0, 0], sizes = [8, 128], strides = [1, 1]} : vector<8x256xf32> to vector<8x128xf32>
    %561 = arith.addf %559, %560 : vector<8x128xf32>
    %562 = arith.index_cast %556 : i32 to index
    %c128_138 = arith.constant 128 : index
    %563 = vector.load %arg10[%562, %c128_138] : memref<64x256xf32, #tpu.memory_space<vmem>>, vector<8x128xf32>
    %564 = vector.extract_strided_slice %557 {offsets = [0, 128], sizes = [8, 128], strides = [1, 1]} : vector<8x256xf32> to vector<8x128xf32>
    %565 = arith.addf %563, %564 : vector<8x128xf32>
    %566 = vector.extract_strided_slice %561 {offsets = [0, 0], sizes = [8, 32], strides = [1, 1]} : vector<8x128xf32> to vector<8x32xf32>
    %567 = arith.negf %566 : vector<8x32xf32>
    %568 = math.exp %567 : vector<8x32xf32>
    %cst_139 = arith.constant 1.000000e+00 : f32
    %569 = vector.broadcast %cst_139 : f32 to vector<8x32xf32>
    %570 = arith.addf %569, %568 : vector<8x32xf32>
    %571 = arith.divf %569, %570 : vector<8x32xf32>
    %572 = vector.extract_strided_slice %561 {offsets = [0, 32], sizes = [8, 32], strides = [1, 1]} : vector<8x128xf32> to vector<8x32xf32>
    %573 = arith.negf %572 : vector<8x32xf32>
    %574 = math.exp %573 : vector<8x32xf32>
    %cst_140 = arith.constant 1.000000e+00 : f32
    %575 = vector.broadcast %cst_140 : f32 to vector<8x32xf32>
    %576 = arith.addf %575, %574 : vector<8x32xf32>
    %577 = arith.divf %575, %576 : vector<8x32xf32>
    %578 = vector.extract_strided_slice %561 {offsets = [0, 64], sizes = [8, 32], strides = [1, 1]} : vector<8x128xf32> to vector<8x32xf32>
    %579 = math.tanh %578 : vector<8x32xf32>
    %580 = vector.extract_strided_slice %561 {offsets = [0, 96], sizes = [8, 32], strides = [1, 1]} : vector<8x128xf32> to vector<8x32xf32>
    %581 = arith.negf %580 : vector<8x32xf32>
    %582 = math.exp %581 : vector<8x32xf32>
    %cst_141 = arith.constant 1.000000e+00 : f32
    %583 = vector.broadcast %cst_141 : f32 to vector<8x32xf32>
    %584 = arith.addf %583, %582 : vector<8x32xf32>
    %585 = arith.divf %583, %584 : vector<8x32xf32>
    %586 = arith.mulf %571, %0 : vector<8x32xf32>
    %587 = arith.mulf %577, %579 : vector<8x32xf32>
    %588 = arith.addf %586, %587 : vector<8x32xf32>
    %589 = math.tanh %588 : vector<8x32xf32>
    %590 = arith.mulf %585, %589 : vector<8x32xf32>
    %591 = vector.extract_strided_slice %565 {offsets = [0, 0], sizes = [8, 32], strides = [1, 1]} : vector<8x128xf32> to vector<8x32xf32>
    %592 = arith.negf %591 : vector<8x32xf32>
    %593 = math.exp %592 : vector<8x32xf32>
    %cst_142 = arith.constant 1.000000e+00 : f32
    %594 = vector.broadcast %cst_142 : f32 to vector<8x32xf32>
    %595 = arith.addf %594, %593 : vector<8x32xf32>
    %596 = arith.divf %594, %595 : vector<8x32xf32>
    %597 = vector.extract_strided_slice %565 {offsets = [0, 32], sizes = [8, 32], strides = [1, 1]} : vector<8x128xf32> to vector<8x32xf32>
    %598 = arith.negf %597 : vector<8x32xf32>
    %599 = math.exp %598 : vector<8x32xf32>
    %cst_143 = arith.constant 1.000000e+00 : f32
    %600 = vector.broadcast %cst_143 : f32 to vector<8x32xf32>
    %601 = arith.addf %600, %599 : vector<8x32xf32>
    %602 = arith.divf %600, %601 : vector<8x32xf32>
    %603 = vector.extract_strided_slice %565 {offsets = [0, 64], sizes = [8, 32], strides = [1, 1]} : vector<8x128xf32> to vector<8x32xf32>
    %604 = math.tanh %603 : vector<8x32xf32>
    %605 = vector.extract_strided_slice %565 {offsets = [0, 96], sizes = [8, 32], strides = [1, 1]} : vector<8x128xf32> to vector<8x32xf32>
    %606 = arith.negf %605 : vector<8x32xf32>
    %607 = math.exp %606 : vector<8x32xf32>
    %cst_144 = arith.constant 1.000000e+00 : f32
    %608 = vector.broadcast %cst_144 : f32 to vector<8x32xf32>
    %609 = arith.addf %608, %607 : vector<8x32xf32>
    %610 = arith.divf %608, %609 : vector<8x32xf32>
    %611 = arith.mulf %596, %0 : vector<8x32xf32>
    %612 = arith.mulf %602, %604 : vector<8x32xf32>
    %613 = arith.addf %611, %612 : vector<8x32xf32>
    %614 = math.tanh %613 : vector<8x32xf32>
    %615 = arith.mulf %610, %614 : vector<8x32xf32>
    %616 = tpu.concatenate %590, %615 in 1 : vector<8x32xf32>, vector<8x32xf32> -> vector<8x64xf32>
    %c1_i32_145 = arith.constant 1 : i32
    %c8_i32_146 = arith.constant 8 : i32
    %617 = arith.muli %c1_i32_145, %c8_i32_146 : i32
    %c7_i32_147 = arith.constant 7 : i32
    %618 = arith.subi %c7_i32_147, %c1_i32_145 : i32
    %c8_i32_148 = arith.constant 8 : i32
    %619 = arith.muli %618, %c8_i32_148 : i32
    %cst_149 = arith.constant dense<0.000000e+00> : vector<8x256xf32>
    %620 = tpu.matmul %616, %3, %cst_149 {dimension_numbers = #tpu.dot_dimension_numbers<[1], [0], [0], [1], [0, 0, 1, 1], [], []>} : vector<8x64xf32>, vector<64x256xf32>, vector<8x256xf32> -> vector<8x256xf32>
    %621 = arith.index_cast %617 : i32 to index
    %c0_150 = arith.constant 0 : index
    %622 = vector.load %arg10[%621, %c0_150] : memref<64x256xf32, #tpu.memory_space<vmem>>, vector<8x128xf32>
    %623 = vector.extract_strided_slice %620 {offsets = [0, 0], sizes = [8, 128], strides = [1, 1]} : vector<8x256xf32> to vector<8x128xf32>
    %624 = arith.addf %622, %623 : vector<8x128xf32>
    %625 = arith.index_cast %619 : i32 to index
    %c128_151 = arith.constant 128 : index
    %626 = vector.load %arg10[%625, %c128_151] : memref<64x256xf32, #tpu.memory_space<vmem>>, vector<8x128xf32>
    %627 = vector.extract_strided_slice %620 {offsets = [0, 128], sizes = [8, 128], strides = [1, 1]} : vector<8x256xf32> to vector<8x128xf32>
    %628 = arith.addf %626, %627 : vector<8x128xf32>
    %629 = vector.extract_strided_slice %624 {offsets = [0, 0], sizes = [8, 32], strides = [1, 1]} : vector<8x128xf32> to vector<8x32xf32>
    %630 = arith.negf %629 : vector<8x32xf32>
    %631 = math.exp %630 : vector<8x32xf32>
    %cst_152 = arith.constant 1.000000e+00 : f32
    %632 = vector.broadcast %cst_152 : f32 to vector<8x32xf32>
    %633 = arith.addf %632, %631 : vector<8x32xf32>
    %634 = arith.divf %632, %633 : vector<8x32xf32>
    %635 = vector.extract_strided_slice %624 {offsets = [0, 32], sizes = [8, 32], strides = [1, 1]} : vector<8x128xf32> to vector<8x32xf32>
    %636 = arith.negf %635 : vector<8x32xf32>
    %637 = math.exp %636 : vector<8x32xf32>
    %cst_153 = arith.constant 1.000000e+00 : f32
    %638 = vector.broadcast %cst_153 : f32 to vector<8x32xf32>
    %639 = arith.addf %638, %637 : vector<8x32xf32>
    %640 = arith.divf %638, %639 : vector<8x32xf32>
    %641 = vector.extract_strided_slice %624 {offsets = [0, 64], sizes = [8, 32], strides = [1, 1]} : vector<8x128xf32> to vector<8x32xf32>
    %642 = math.tanh %641 : vector<8x32xf32>
    %643 = vector.extract_strided_slice %624 {offsets = [0, 96], sizes = [8, 32], strides = [1, 1]} : vector<8x128xf32> to vector<8x32xf32>
    %644 = arith.negf %643 : vector<8x32xf32>
    %645 = math.exp %644 : vector<8x32xf32>
    %cst_154 = arith.constant 1.000000e+00 : f32
    %646 = vector.broadcast %cst_154 : f32 to vector<8x32xf32>
    %647 = arith.addf %646, %645 : vector<8x32xf32>
    %648 = arith.divf %646, %647 : vector<8x32xf32>
    %649 = arith.mulf %634, %588 : vector<8x32xf32>
    %650 = arith.mulf %640, %642 : vector<8x32xf32>
    %651 = arith.addf %649, %650 : vector<8x32xf32>
    %652 = math.tanh %651 : vector<8x32xf32>
    %653 = arith.mulf %648, %652 : vector<8x32xf32>
    %654 = vector.extract_strided_slice %628 {offsets = [0, 0], sizes = [8, 32], strides = [1, 1]} : vector<8x128xf32> to vector<8x32xf32>
    %655 = arith.negf %654 : vector<8x32xf32>
    %656 = math.exp %655 : vector<8x32xf32>
    %cst_155 = arith.constant 1.000000e+00 : f32
    %657 = vector.broadcast %cst_155 : f32 to vector<8x32xf32>
    %658 = arith.addf %657, %656 : vector<8x32xf32>
    %659 = arith.divf %657, %658 : vector<8x32xf32>
    %660 = vector.extract_strided_slice %628 {offsets = [0, 32], sizes = [8, 32], strides = [1, 1]} : vector<8x128xf32> to vector<8x32xf32>
    %661 = arith.negf %660 : vector<8x32xf32>
    %662 = math.exp %661 : vector<8x32xf32>
    %cst_156 = arith.constant 1.000000e+00 : f32
    %663 = vector.broadcast %cst_156 : f32 to vector<8x32xf32>
    %664 = arith.addf %663, %662 : vector<8x32xf32>
    %665 = arith.divf %663, %664 : vector<8x32xf32>
    %666 = vector.extract_strided_slice %628 {offsets = [0, 64], sizes = [8, 32], strides = [1, 1]} : vector<8x128xf32> to vector<8x32xf32>
    %667 = math.tanh %666 : vector<8x32xf32>
    %668 = vector.extract_strided_slice %628 {offsets = [0, 96], sizes = [8, 32], strides = [1, 1]} : vector<8x128xf32> to vector<8x32xf32>
    %669 = arith.negf %668 : vector<8x32xf32>
    %670 = math.exp %669 : vector<8x32xf32>
    %cst_157 = arith.constant 1.000000e+00 : f32
    %671 = vector.broadcast %cst_157 : f32 to vector<8x32xf32>
    %672 = arith.addf %671, %670 : vector<8x32xf32>
    %673 = arith.divf %671, %672 : vector<8x32xf32>
    %674 = arith.mulf %659, %613 : vector<8x32xf32>
    %675 = arith.mulf %665, %667 : vector<8x32xf32>
    %676 = arith.addf %674, %675 : vector<8x32xf32>
    %677 = math.tanh %676 : vector<8x32xf32>
    %678 = arith.mulf %673, %677 : vector<8x32xf32>
    %679 = tpu.concatenate %653, %678 in 1 : vector<8x32xf32>, vector<8x32xf32> -> vector<8x64xf32>
    %c2_i32_158 = arith.constant 2 : i32
    %c8_i32_159 = arith.constant 8 : i32
    %680 = arith.muli %c2_i32_158, %c8_i32_159 : i32
    %c7_i32_160 = arith.constant 7 : i32
    %681 = arith.subi %c7_i32_160, %c2_i32_158 : i32
    %c8_i32_161 = arith.constant 8 : i32
    %682 = arith.muli %681, %c8_i32_161 : i32
    %cst_162 = arith.constant dense<0.000000e+00> : vector<8x256xf32>
    %683 = tpu.matmul %679, %3, %cst_162 {dimension_numbers = #tpu.dot_dimension_numbers<[1], [0], [0], [1], [0, 0, 1, 1], [], []>} : vector<8x64xf32>, vector<64x256xf32>, vector<8x256xf32> -> vector<8x256xf32>
    %684 = arith.index_cast %680 : i32 to index
    %c0_163 = arith.constant 0 : index
    %685 = vector.load %arg10[%684, %c0_163] : memref<64x256xf32, #tpu.memory_space<vmem>>, vector<8x128xf32>
    %686 = vector.extract_strided_slice %683 {offsets = [0, 0], sizes = [8, 128], strides = [1, 1]} : vector<8x256xf32> to vector<8x128xf32>
    %687 = arith.addf %685, %686 : vector<8x128xf32>
    %688 = arith.index_cast %682 : i32 to index
    %c128_164 = arith.constant 128 : index
    %689 = vector.load %arg10[%688, %c128_164] : memref<64x256xf32, #tpu.memory_space<vmem>>, vector<8x128xf32>
    %690 = vector.extract_strided_slice %683 {offsets = [0, 128], sizes = [8, 128], strides = [1, 1]} : vector<8x256xf32> to vector<8x128xf32>
    %691 = arith.addf %689, %690 : vector<8x128xf32>
    %692 = vector.extract_strided_slice %687 {offsets = [0, 0], sizes = [8, 32], strides = [1, 1]} : vector<8x128xf32> to vector<8x32xf32>
    %693 = arith.negf %692 : vector<8x32xf32>
    %694 = math.exp %693 : vector<8x32xf32>
    %cst_165 = arith.constant 1.000000e+00 : f32
    %695 = vector.broadcast %cst_165 : f32 to vector<8x32xf32>
    %696 = arith.addf %695, %694 : vector<8x32xf32>
    %697 = arith.divf %695, %696 : vector<8x32xf32>
    %698 = vector.extract_strided_slice %687 {offsets = [0, 32], sizes = [8, 32], strides = [1, 1]} : vector<8x128xf32> to vector<8x32xf32>
    %699 = arith.negf %698 : vector<8x32xf32>
    %700 = math.exp %699 : vector<8x32xf32>
    %cst_166 = arith.constant 1.000000e+00 : f32
    %701 = vector.broadcast %cst_166 : f32 to vector<8x32xf32>
    %702 = arith.addf %701, %700 : vector<8x32xf32>
    %703 = arith.divf %701, %702 : vector<8x32xf32>
    %704 = vector.extract_strided_slice %687 {offsets = [0, 64], sizes = [8, 32], strides = [1, 1]} : vector<8x128xf32> to vector<8x32xf32>
    %705 = math.tanh %704 : vector<8x32xf32>
    %706 = vector.extract_strided_slice %687 {offsets = [0, 96], sizes = [8, 32], strides = [1, 1]} : vector<8x128xf32> to vector<8x32xf32>
    %707 = arith.negf %706 : vector<8x32xf32>
    %708 = math.exp %707 : vector<8x32xf32>
    %cst_167 = arith.constant 1.000000e+00 : f32
    %709 = vector.broadcast %cst_167 : f32 to vector<8x32xf32>
    %710 = arith.addf %709, %708 : vector<8x32xf32>
    %711 = arith.divf %709, %710 : vector<8x32xf32>
    %712 = arith.mulf %697, %651 : vector<8x32xf32>
    %713 = arith.mulf %703, %705 : vector<8x32xf32>
    %714 = arith.addf %712, %713 : vector<8x32xf32>
    %715 = math.tanh %714 : vector<8x32xf32>
    %716 = arith.mulf %711, %715 : vector<8x32xf32>
    %717 = vector.extract_strided_slice %691 {offsets = [0, 0], sizes = [8, 32], strides = [1, 1]} : vector<8x128xf32> to vector<8x32xf32>
    %718 = arith.negf %717 : vector<8x32xf32>
    %719 = math.exp %718 : vector<8x32xf32>
    %cst_168 = arith.constant 1.000000e+00 : f32
    %720 = vector.broadcast %cst_168 : f32 to vector<8x32xf32>
    %721 = arith.addf %720, %719 : vector<8x32xf32>
    %722 = arith.divf %720, %721 : vector<8x32xf32>
    %723 = vector.extract_strided_slice %691 {offsets = [0, 32], sizes = [8, 32], strides = [1, 1]} : vector<8x128xf32> to vector<8x32xf32>
    %724 = arith.negf %723 : vector<8x32xf32>
    %725 = math.exp %724 : vector<8x32xf32>
    %cst_169 = arith.constant 1.000000e+00 : f32
    %726 = vector.broadcast %cst_169 : f32 to vector<8x32xf32>
    %727 = arith.addf %726, %725 : vector<8x32xf32>
    %728 = arith.divf %726, %727 : vector<8x32xf32>
    %729 = vector.extract_strided_slice %691 {offsets = [0, 64], sizes = [8, 32], strides = [1, 1]} : vector<8x128xf32> to vector<8x32xf32>
    %730 = math.tanh %729 : vector<8x32xf32>
    %731 = vector.extract_strided_slice %691 {offsets = [0, 96], sizes = [8, 32], strides = [1, 1]} : vector<8x128xf32> to vector<8x32xf32>
    %732 = arith.negf %731 : vector<8x32xf32>
    %733 = math.exp %732 : vector<8x32xf32>
    %cst_170 = arith.constant 1.000000e+00 : f32
    %734 = vector.broadcast %cst_170 : f32 to vector<8x32xf32>
    %735 = arith.addf %734, %733 : vector<8x32xf32>
    %736 = arith.divf %734, %735 : vector<8x32xf32>
    %737 = arith.mulf %722, %676 : vector<8x32xf32>
    %738 = arith.mulf %728, %730 : vector<8x32xf32>
    %739 = arith.addf %737, %738 : vector<8x32xf32>
    %740 = math.tanh %739 : vector<8x32xf32>
    %741 = arith.mulf %736, %740 : vector<8x32xf32>
    %742 = tpu.concatenate %716, %741 in 1 : vector<8x32xf32>, vector<8x32xf32> -> vector<8x64xf32>
    %c3_i32_171 = arith.constant 3 : i32
    %c8_i32_172 = arith.constant 8 : i32
    %743 = arith.muli %c3_i32_171, %c8_i32_172 : i32
    %c7_i32_173 = arith.constant 7 : i32
    %744 = arith.subi %c7_i32_173, %c3_i32_171 : i32
    %c8_i32_174 = arith.constant 8 : i32
    %745 = arith.muli %744, %c8_i32_174 : i32
    %cst_175 = arith.constant dense<0.000000e+00> : vector<8x256xf32>
    %746 = tpu.matmul %742, %3, %cst_175 {dimension_numbers = #tpu.dot_dimension_numbers<[1], [0], [0], [1], [0, 0, 1, 1], [], []>} : vector<8x64xf32>, vector<64x256xf32>, vector<8x256xf32> -> vector<8x256xf32>
    %747 = arith.index_cast %743 : i32 to index
    %c0_176 = arith.constant 0 : index
    %748 = vector.load %arg10[%747, %c0_176] : memref<64x256xf32, #tpu.memory_space<vmem>>, vector<8x128xf32>
    %749 = vector.extract_strided_slice %746 {offsets = [0, 0], sizes = [8, 128], strides = [1, 1]} : vector<8x256xf32> to vector<8x128xf32>
    %750 = arith.addf %748, %749 : vector<8x128xf32>
    %751 = arith.index_cast %745 : i32 to index
    %c128_177 = arith.constant 128 : index
    %752 = vector.load %arg10[%751, %c128_177] : memref<64x256xf32, #tpu.memory_space<vmem>>, vector<8x128xf32>
    %753 = vector.extract_strided_slice %746 {offsets = [0, 128], sizes = [8, 128], strides = [1, 1]} : vector<8x256xf32> to vector<8x128xf32>
    %754 = arith.addf %752, %753 : vector<8x128xf32>
    %755 = vector.extract_strided_slice %750 {offsets = [0, 0], sizes = [8, 32], strides = [1, 1]} : vector<8x128xf32> to vector<8x32xf32>
    %756 = arith.negf %755 : vector<8x32xf32>
    %757 = math.exp %756 : vector<8x32xf32>
    %cst_178 = arith.constant 1.000000e+00 : f32
    %758 = vector.broadcast %cst_178 : f32 to vector<8x32xf32>
    %759 = arith.addf %758, %757 : vector<8x32xf32>
    %760 = arith.divf %758, %759 : vector<8x32xf32>
    %761 = vector.extract_strided_slice %750 {offsets = [0, 32], sizes = [8, 32], strides = [1, 1]} : vector<8x128xf32> to vector<8x32xf32>
    %762 = arith.negf %761 : vector<8x32xf32>
    %763 = math.exp %762 : vector<8x32xf32>
    %cst_179 = arith.constant 1.000000e+00 : f32
    %764 = vector.broadcast %cst_179 : f32 to vector<8x32xf32>
    %765 = arith.addf %764, %763 : vector<8x32xf32>
    %766 = arith.divf %764, %765 : vector<8x32xf32>
    %767 = vector.extract_strided_slice %750 {offsets = [0, 64], sizes = [8, 32], strides = [1, 1]} : vector<8x128xf32> to vector<8x32xf32>
    %768 = math.tanh %767 : vector<8x32xf32>
    %769 = vector.extract_strided_slice %750 {offsets = [0, 96], sizes = [8, 32], strides = [1, 1]} : vector<8x128xf32> to vector<8x32xf32>
    %770 = arith.negf %769 : vector<8x32xf32>
    %771 = math.exp %770 : vector<8x32xf32>
    %cst_180 = arith.constant 1.000000e+00 : f32
    %772 = vector.broadcast %cst_180 : f32 to vector<8x32xf32>
    %773 = arith.addf %772, %771 : vector<8x32xf32>
    %774 = arith.divf %772, %773 : vector<8x32xf32>
    %775 = arith.mulf %760, %714 : vector<8x32xf32>
    %776 = arith.mulf %766, %768 : vector<8x32xf32>
    %777 = arith.addf %775, %776 : vector<8x32xf32>
    %778 = math.tanh %777 : vector<8x32xf32>
    %779 = arith.mulf %774, %778 : vector<8x32xf32>
    %780 = vector.extract_strided_slice %754 {offsets = [0, 0], sizes = [8, 32], strides = [1, 1]} : vector<8x128xf32> to vector<8x32xf32>
    %781 = arith.negf %780 : vector<8x32xf32>
    %782 = math.exp %781 : vector<8x32xf32>
    %cst_181 = arith.constant 1.000000e+00 : f32
    %783 = vector.broadcast %cst_181 : f32 to vector<8x32xf32>
    %784 = arith.addf %783, %782 : vector<8x32xf32>
    %785 = arith.divf %783, %784 : vector<8x32xf32>
    %786 = vector.extract_strided_slice %754 {offsets = [0, 32], sizes = [8, 32], strides = [1, 1]} : vector<8x128xf32> to vector<8x32xf32>
    %787 = arith.negf %786 : vector<8x32xf32>
    %788 = math.exp %787 : vector<8x32xf32>
    %cst_182 = arith.constant 1.000000e+00 : f32
    %789 = vector.broadcast %cst_182 : f32 to vector<8x32xf32>
    %790 = arith.addf %789, %788 : vector<8x32xf32>
    %791 = arith.divf %789, %790 : vector<8x32xf32>
    %792 = vector.extract_strided_slice %754 {offsets = [0, 64], sizes = [8, 32], strides = [1, 1]} : vector<8x128xf32> to vector<8x32xf32>
    %793 = math.tanh %792 : vector<8x32xf32>
    %794 = vector.extract_strided_slice %754 {offsets = [0, 96], sizes = [8, 32], strides = [1, 1]} : vector<8x128xf32> to vector<8x32xf32>
    %795 = arith.negf %794 : vector<8x32xf32>
    %796 = math.exp %795 : vector<8x32xf32>
    %cst_183 = arith.constant 1.000000e+00 : f32
    %797 = vector.broadcast %cst_183 : f32 to vector<8x32xf32>
    %798 = arith.addf %797, %796 : vector<8x32xf32>
    %799 = arith.divf %797, %798 : vector<8x32xf32>
    %800 = arith.mulf %785, %739 : vector<8x32xf32>
    %801 = arith.mulf %791, %793 : vector<8x32xf32>
    %802 = arith.addf %800, %801 : vector<8x32xf32>
    %803 = math.tanh %802 : vector<8x32xf32>
    %804 = arith.mulf %799, %803 : vector<8x32xf32>
    %805 = tpu.concatenate %779, %804 in 1 : vector<8x32xf32>, vector<8x32xf32> -> vector<8x64xf32>
    %c4_i32_184 = arith.constant 4 : i32
    %c8_i32_185 = arith.constant 8 : i32
    %806 = arith.muli %c4_i32_184, %c8_i32_185 : i32
    %c7_i32_186 = arith.constant 7 : i32
    %807 = arith.subi %c7_i32_186, %c4_i32_184 : i32
    %c8_i32_187 = arith.constant 8 : i32
    %808 = arith.muli %807, %c8_i32_187 : i32
    %cst_188 = arith.constant dense<0.000000e+00> : vector<8x256xf32>
    %809 = tpu.matmul %805, %3, %cst_188 {dimension_numbers = #tpu.dot_dimension_numbers<[1], [0], [0], [1], [0, 0, 1, 1], [], []>} : vector<8x64xf32>, vector<64x256xf32>, vector<8x256xf32> -> vector<8x256xf32>
    %810 = arith.index_cast %806 : i32 to index
    %c0_189 = arith.constant 0 : index
    %811 = vector.load %arg10[%810, %c0_189] : memref<64x256xf32, #tpu.memory_space<vmem>>, vector<8x128xf32>
    %812 = vector.extract_strided_slice %809 {offsets = [0, 0], sizes = [8, 128], strides = [1, 1]} : vector<8x256xf32> to vector<8x128xf32>
    %813 = arith.addf %811, %812 : vector<8x128xf32>
    %814 = arith.index_cast %808 : i32 to index
    %c128_190 = arith.constant 128 : index
    %815 = vector.load %arg10[%814, %c128_190] : memref<64x256xf32, #tpu.memory_space<vmem>>, vector<8x128xf32>
    %816 = vector.extract_strided_slice %809 {offsets = [0, 128], sizes = [8, 128], strides = [1, 1]} : vector<8x256xf32> to vector<8x128xf32>
    %817 = arith.addf %815, %816 : vector<8x128xf32>
    %818 = vector.extract_strided_slice %813 {offsets = [0, 0], sizes = [8, 32], strides = [1, 1]} : vector<8x128xf32> to vector<8x32xf32>
    %819 = arith.negf %818 : vector<8x32xf32>
    %820 = math.exp %819 : vector<8x32xf32>
    %cst_191 = arith.constant 1.000000e+00 : f32
    %821 = vector.broadcast %cst_191 : f32 to vector<8x32xf32>
    %822 = arith.addf %821, %820 : vector<8x32xf32>
    %823 = arith.divf %821, %822 : vector<8x32xf32>
    %824 = vector.extract_strided_slice %813 {offsets = [0, 32], sizes = [8, 32], strides = [1, 1]} : vector<8x128xf32> to vector<8x32xf32>
    %825 = arith.negf %824 : vector<8x32xf32>
    %826 = math.exp %825 : vector<8x32xf32>
    %cst_192 = arith.constant 1.000000e+00 : f32
    %827 = vector.broadcast %cst_192 : f32 to vector<8x32xf32>
    %828 = arith.addf %827, %826 : vector<8x32xf32>
    %829 = arith.divf %827, %828 : vector<8x32xf32>
    %830 = vector.extract_strided_slice %813 {offsets = [0, 64], sizes = [8, 32], strides = [1, 1]} : vector<8x128xf32> to vector<8x32xf32>
    %831 = math.tanh %830 : vector<8x32xf32>
    %832 = vector.extract_strided_slice %813 {offsets = [0, 96], sizes = [8, 32], strides = [1, 1]} : vector<8x128xf32> to vector<8x32xf32>
    %833 = arith.negf %832 : vector<8x32xf32>
    %834 = math.exp %833 : vector<8x32xf32>
    %cst_193 = arith.constant 1.000000e+00 : f32
    %835 = vector.broadcast %cst_193 : f32 to vector<8x32xf32>
    %836 = arith.addf %835, %834 : vector<8x32xf32>
    %837 = arith.divf %835, %836 : vector<8x32xf32>
    %838 = arith.mulf %823, %777 : vector<8x32xf32>
    %839 = arith.mulf %829, %831 : vector<8x32xf32>
    %840 = arith.addf %838, %839 : vector<8x32xf32>
    %841 = math.tanh %840 : vector<8x32xf32>
    %842 = arith.mulf %837, %841 : vector<8x32xf32>
    %843 = vector.extract_strided_slice %817 {offsets = [0, 0], sizes = [8, 32], strides = [1, 1]} : vector<8x128xf32> to vector<8x32xf32>
    %844 = arith.negf %843 : vector<8x32xf32>
    %845 = math.exp %844 : vector<8x32xf32>
    %cst_194 = arith.constant 1.000000e+00 : f32
    %846 = vector.broadcast %cst_194 : f32 to vector<8x32xf32>
    %847 = arith.addf %846, %845 : vector<8x32xf32>
    %848 = arith.divf %846, %847 : vector<8x32xf32>
    %849 = vector.extract_strided_slice %817 {offsets = [0, 32], sizes = [8, 32], strides = [1, 1]} : vector<8x128xf32> to vector<8x32xf32>
    %850 = arith.negf %849 : vector<8x32xf32>
    %851 = math.exp %850 : vector<8x32xf32>
    %cst_195 = arith.constant 1.000000e+00 : f32
    %852 = vector.broadcast %cst_195 : f32 to vector<8x32xf32>
    %853 = arith.addf %852, %851 : vector<8x32xf32>
    %854 = arith.divf %852, %853 : vector<8x32xf32>
    %855 = vector.extract_strided_slice %817 {offsets = [0, 64], sizes = [8, 32], strides = [1, 1]} : vector<8x128xf32> to vector<8x32xf32>
    %856 = math.tanh %855 : vector<8x32xf32>
    %857 = vector.extract_strided_slice %817 {offsets = [0, 96], sizes = [8, 32], strides = [1, 1]} : vector<8x128xf32> to vector<8x32xf32>
    %858 = arith.negf %857 : vector<8x32xf32>
    %859 = math.exp %858 : vector<8x32xf32>
    %cst_196 = arith.constant 1.000000e+00 : f32
    %860 = vector.broadcast %cst_196 : f32 to vector<8x32xf32>
    %861 = arith.addf %860, %859 : vector<8x32xf32>
    %862 = arith.divf %860, %861 : vector<8x32xf32>
    %863 = arith.mulf %848, %802 : vector<8x32xf32>
    %864 = arith.mulf %854, %856 : vector<8x32xf32>
    %865 = arith.addf %863, %864 : vector<8x32xf32>
    %866 = math.tanh %865 : vector<8x32xf32>
    %867 = arith.mulf %862, %866 : vector<8x32xf32>
    %868 = tpu.concatenate %842, %867 in 1 : vector<8x32xf32>, vector<8x32xf32> -> vector<8x64xf32>
    %c5_i32_197 = arith.constant 5 : i32
    %c8_i32_198 = arith.constant 8 : i32
    %869 = arith.muli %c5_i32_197, %c8_i32_198 : i32
    %c7_i32_199 = arith.constant 7 : i32
    %870 = arith.subi %c7_i32_199, %c5_i32_197 : i32
    %c8_i32_200 = arith.constant 8 : i32
    %871 = arith.muli %870, %c8_i32_200 : i32
    %cst_201 = arith.constant dense<0.000000e+00> : vector<8x256xf32>
    %872 = tpu.matmul %868, %3, %cst_201 {dimension_numbers = #tpu.dot_dimension_numbers<[1], [0], [0], [1], [0, 0, 1, 1], [], []>} : vector<8x64xf32>, vector<64x256xf32>, vector<8x256xf32> -> vector<8x256xf32>
    %873 = arith.index_cast %869 : i32 to index
    %c0_202 = arith.constant 0 : index
    %874 = vector.load %arg10[%873, %c0_202] : memref<64x256xf32, #tpu.memory_space<vmem>>, vector<8x128xf32>
    %875 = vector.extract_strided_slice %872 {offsets = [0, 0], sizes = [8, 128], strides = [1, 1]} : vector<8x256xf32> to vector<8x128xf32>
    %876 = arith.addf %874, %875 : vector<8x128xf32>
    %877 = arith.index_cast %871 : i32 to index
    %c128_203 = arith.constant 128 : index
    %878 = vector.load %arg10[%877, %c128_203] : memref<64x256xf32, #tpu.memory_space<vmem>>, vector<8x128xf32>
    %879 = vector.extract_strided_slice %872 {offsets = [0, 128], sizes = [8, 128], strides = [1, 1]} : vector<8x256xf32> to vector<8x128xf32>
    %880 = arith.addf %878, %879 : vector<8x128xf32>
    %881 = vector.extract_strided_slice %876 {offsets = [0, 0], sizes = [8, 32], strides = [1, 1]} : vector<8x128xf32> to vector<8x32xf32>
    %882 = arith.negf %881 : vector<8x32xf32>
    %883 = math.exp %882 : vector<8x32xf32>
    %cst_204 = arith.constant 1.000000e+00 : f32
    %884 = vector.broadcast %cst_204 : f32 to vector<8x32xf32>
    %885 = arith.addf %884, %883 : vector<8x32xf32>
    %886 = arith.divf %884, %885 : vector<8x32xf32>
    %887 = vector.extract_strided_slice %876 {offsets = [0, 32], sizes = [8, 32], strides = [1, 1]} : vector<8x128xf32> to vector<8x32xf32>
    %888 = arith.negf %887 : vector<8x32xf32>
    %889 = math.exp %888 : vector<8x32xf32>
    %cst_205 = arith.constant 1.000000e+00 : f32
    %890 = vector.broadcast %cst_205 : f32 to vector<8x32xf32>
    %891 = arith.addf %890, %889 : vector<8x32xf32>
    %892 = arith.divf %890, %891 : vector<8x32xf32>
    %893 = vector.extract_strided_slice %876 {offsets = [0, 64], sizes = [8, 32], strides = [1, 1]} : vector<8x128xf32> to vector<8x32xf32>
    %894 = math.tanh %893 : vector<8x32xf32>
    %895 = vector.extract_strided_slice %876 {offsets = [0, 96], sizes = [8, 32], strides = [1, 1]} : vector<8x128xf32> to vector<8x32xf32>
    %896 = arith.negf %895 : vector<8x32xf32>
    %897 = math.exp %896 : vector<8x32xf32>
    %cst_206 = arith.constant 1.000000e+00 : f32
    %898 = vector.broadcast %cst_206 : f32 to vector<8x32xf32>
    %899 = arith.addf %898, %897 : vector<8x32xf32>
    %900 = arith.divf %898, %899 : vector<8x32xf32>
    %901 = arith.mulf %886, %840 : vector<8x32xf32>
    %902 = arith.mulf %892, %894 : vector<8x32xf32>
    %903 = arith.addf %901, %902 : vector<8x32xf32>
    %904 = math.tanh %903 : vector<8x32xf32>
    %905 = arith.mulf %900, %904 : vector<8x32xf32>
    %906 = vector.extract_strided_slice %880 {offsets = [0, 0], sizes = [8, 32], strides = [1, 1]} : vector<8x128xf32> to vector<8x32xf32>
    %907 = arith.negf %906 : vector<8x32xf32>
    %908 = math.exp %907 : vector<8x32xf32>
    %cst_207 = arith.constant 1.000000e+00 : f32
    %909 = vector.broadcast %cst_207 : f32 to vector<8x32xf32>
    %910 = arith.addf %909, %908 : vector<8x32xf32>
    %911 = arith.divf %909, %910 : vector<8x32xf32>
    %912 = vector.extract_strided_slice %880 {offsets = [0, 32], sizes = [8, 32], strides = [1, 1]} : vector<8x128xf32> to vector<8x32xf32>
    %913 = arith.negf %912 : vector<8x32xf32>
    %914 = math.exp %913 : vector<8x32xf32>
    %cst_208 = arith.constant 1.000000e+00 : f32
    %915 = vector.broadcast %cst_208 : f32 to vector<8x32xf32>
    %916 = arith.addf %915, %914 : vector<8x32xf32>
    %917 = arith.divf %915, %916 : vector<8x32xf32>
    %918 = vector.extract_strided_slice %880 {offsets = [0, 64], sizes = [8, 32], strides = [1, 1]} : vector<8x128xf32> to vector<8x32xf32>
    %919 = math.tanh %918 : vector<8x32xf32>
    %920 = vector.extract_strided_slice %880 {offsets = [0, 96], sizes = [8, 32], strides = [1, 1]} : vector<8x128xf32> to vector<8x32xf32>
    %921 = arith.negf %920 : vector<8x32xf32>
    %922 = math.exp %921 : vector<8x32xf32>
    %cst_209 = arith.constant 1.000000e+00 : f32
    %923 = vector.broadcast %cst_209 : f32 to vector<8x32xf32>
    %924 = arith.addf %923, %922 : vector<8x32xf32>
    %925 = arith.divf %923, %924 : vector<8x32xf32>
    %926 = arith.mulf %911, %865 : vector<8x32xf32>
    %927 = arith.mulf %917, %919 : vector<8x32xf32>
    %928 = arith.addf %926, %927 : vector<8x32xf32>
    %929 = math.tanh %928 : vector<8x32xf32>
    %930 = arith.mulf %925, %929 : vector<8x32xf32>
    %931 = tpu.concatenate %905, %930 in 1 : vector<8x32xf32>, vector<8x32xf32> -> vector<8x64xf32>
    %c6_i32_210 = arith.constant 6 : i32
    %c8_i32_211 = arith.constant 8 : i32
    %932 = arith.muli %c6_i32_210, %c8_i32_211 : i32
    %c7_i32_212 = arith.constant 7 : i32
    %933 = arith.subi %c7_i32_212, %c6_i32_210 : i32
    %c8_i32_213 = arith.constant 8 : i32
    %934 = arith.muli %933, %c8_i32_213 : i32
    %cst_214 = arith.constant dense<0.000000e+00> : vector<8x256xf32>
    %935 = tpu.matmul %931, %3, %cst_214 {dimension_numbers = #tpu.dot_dimension_numbers<[1], [0], [0], [1], [0, 0, 1, 1], [], []>} : vector<8x64xf32>, vector<64x256xf32>, vector<8x256xf32> -> vector<8x256xf32>
    %936 = arith.index_cast %932 : i32 to index
    %c0_215 = arith.constant 0 : index
    %937 = vector.load %arg10[%936, %c0_215] : memref<64x256xf32, #tpu.memory_space<vmem>>, vector<8x128xf32>
    %938 = vector.extract_strided_slice %935 {offsets = [0, 0], sizes = [8, 128], strides = [1, 1]} : vector<8x256xf32> to vector<8x128xf32>
    %939 = arith.addf %937, %938 : vector<8x128xf32>
    %940 = arith.index_cast %934 : i32 to index
    %c128_216 = arith.constant 128 : index
    %941 = vector.load %arg10[%940, %c128_216] : memref<64x256xf32, #tpu.memory_space<vmem>>, vector<8x128xf32>
    %942 = vector.extract_strided_slice %935 {offsets = [0, 128], sizes = [8, 128], strides = [1, 1]} : vector<8x256xf32> to vector<8x128xf32>
    %943 = arith.addf %941, %942 : vector<8x128xf32>
    %944 = vector.extract_strided_slice %939 {offsets = [0, 0], sizes = [8, 32], strides = [1, 1]} : vector<8x128xf32> to vector<8x32xf32>
    %945 = arith.negf %944 : vector<8x32xf32>
    %946 = math.exp %945 : vector<8x32xf32>
    %cst_217 = arith.constant 1.000000e+00 : f32
    %947 = vector.broadcast %cst_217 : f32 to vector<8x32xf32>
    %948 = arith.addf %947, %946 : vector<8x32xf32>
    %949 = arith.divf %947, %948 : vector<8x32xf32>
    %950 = vector.extract_strided_slice %939 {offsets = [0, 32], sizes = [8, 32], strides = [1, 1]} : vector<8x128xf32> to vector<8x32xf32>
    %951 = arith.negf %950 : vector<8x32xf32>
    %952 = math.exp %951 : vector<8x32xf32>
    %cst_218 = arith.constant 1.000000e+00 : f32
    %953 = vector.broadcast %cst_218 : f32 to vector<8x32xf32>
    %954 = arith.addf %953, %952 : vector<8x32xf32>
    %955 = arith.divf %953, %954 : vector<8x32xf32>
    %956 = vector.extract_strided_slice %939 {offsets = [0, 64], sizes = [8, 32], strides = [1, 1]} : vector<8x128xf32> to vector<8x32xf32>
    %957 = math.tanh %956 : vector<8x32xf32>
    %958 = vector.extract_strided_slice %939 {offsets = [0, 96], sizes = [8, 32], strides = [1, 1]} : vector<8x128xf32> to vector<8x32xf32>
    %959 = arith.negf %958 : vector<8x32xf32>
    %960 = math.exp %959 : vector<8x32xf32>
    %cst_219 = arith.constant 1.000000e+00 : f32
    %961 = vector.broadcast %cst_219 : f32 to vector<8x32xf32>
    %962 = arith.addf %961, %960 : vector<8x32xf32>
    %963 = arith.divf %961, %962 : vector<8x32xf32>
    %964 = arith.mulf %949, %903 : vector<8x32xf32>
    %965 = arith.mulf %955, %957 : vector<8x32xf32>
    %966 = arith.addf %964, %965 : vector<8x32xf32>
    %967 = math.tanh %966 : vector<8x32xf32>
    %968 = arith.mulf %963, %967 : vector<8x32xf32>
    %969 = vector.extract_strided_slice %943 {offsets = [0, 0], sizes = [8, 32], strides = [1, 1]} : vector<8x128xf32> to vector<8x32xf32>
    %970 = arith.negf %969 : vector<8x32xf32>
    %971 = math.exp %970 : vector<8x32xf32>
    %cst_220 = arith.constant 1.000000e+00 : f32
    %972 = vector.broadcast %cst_220 : f32 to vector<8x32xf32>
    %973 = arith.addf %972, %971 : vector<8x32xf32>
    %974 = arith.divf %972, %973 : vector<8x32xf32>
    %975 = vector.extract_strided_slice %943 {offsets = [0, 32], sizes = [8, 32], strides = [1, 1]} : vector<8x128xf32> to vector<8x32xf32>
    %976 = arith.negf %975 : vector<8x32xf32>
    %977 = math.exp %976 : vector<8x32xf32>
    %cst_221 = arith.constant 1.000000e+00 : f32
    %978 = vector.broadcast %cst_221 : f32 to vector<8x32xf32>
    %979 = arith.addf %978, %977 : vector<8x32xf32>
    %980 = arith.divf %978, %979 : vector<8x32xf32>
    %981 = vector.extract_strided_slice %943 {offsets = [0, 64], sizes = [8, 32], strides = [1, 1]} : vector<8x128xf32> to vector<8x32xf32>
    %982 = math.tanh %981 : vector<8x32xf32>
    %983 = vector.extract_strided_slice %943 {offsets = [0, 96], sizes = [8, 32], strides = [1, 1]} : vector<8x128xf32> to vector<8x32xf32>
    %984 = arith.negf %983 : vector<8x32xf32>
    %985 = math.exp %984 : vector<8x32xf32>
    %cst_222 = arith.constant 1.000000e+00 : f32
    %986 = vector.broadcast %cst_222 : f32 to vector<8x32xf32>
    %987 = arith.addf %986, %985 : vector<8x32xf32>
    %988 = arith.divf %986, %987 : vector<8x32xf32>
    %989 = arith.mulf %974, %928 : vector<8x32xf32>
    %990 = arith.mulf %980, %982 : vector<8x32xf32>
    %991 = arith.addf %989, %990 : vector<8x32xf32>
    %992 = math.tanh %991 : vector<8x32xf32>
    %993 = arith.mulf %988, %992 : vector<8x32xf32>
    %994 = tpu.concatenate %968, %993 in 1 : vector<8x32xf32>, vector<8x32xf32> -> vector<8x64xf32>
    %c7_i32_223 = arith.constant 7 : i32
    %c8_i32_224 = arith.constant 8 : i32
    %995 = arith.muli %c7_i32_223, %c8_i32_224 : i32
    %c7_i32_225 = arith.constant 7 : i32
    %996 = arith.subi %c7_i32_225, %c7_i32_223 : i32
    %c8_i32_226 = arith.constant 8 : i32
    %997 = arith.muli %996, %c8_i32_226 : i32
    %cst_227 = arith.constant dense<0.000000e+00> : vector<8x256xf32>
    %998 = tpu.matmul %994, %3, %cst_227 {dimension_numbers = #tpu.dot_dimension_numbers<[1], [0], [0], [1], [0, 0, 1, 1], [], []>} : vector<8x64xf32>, vector<64x256xf32>, vector<8x256xf32> -> vector<8x256xf32>
    %999 = arith.index_cast %995 : i32 to index
    %c0_228 = arith.constant 0 : index
    %1000 = vector.load %arg10[%999, %c0_228] : memref<64x256xf32, #tpu.memory_space<vmem>>, vector<8x128xf32>
    %1001 = vector.extract_strided_slice %998 {offsets = [0, 0], sizes = [8, 128], strides = [1, 1]} : vector<8x256xf32> to vector<8x128xf32>
    %1002 = arith.addf %1000, %1001 : vector<8x128xf32>
    %1003 = arith.index_cast %997 : i32 to index
    %c128_229 = arith.constant 128 : index
    %1004 = vector.load %arg10[%1003, %c128_229] : memref<64x256xf32, #tpu.memory_space<vmem>>, vector<8x128xf32>
    %1005 = vector.extract_strided_slice %998 {offsets = [0, 128], sizes = [8, 128], strides = [1, 1]} : vector<8x256xf32> to vector<8x128xf32>
    %1006 = arith.addf %1004, %1005 : vector<8x128xf32>
    %1007 = vector.extract_strided_slice %1002 {offsets = [0, 0], sizes = [8, 32], strides = [1, 1]} : vector<8x128xf32> to vector<8x32xf32>
    %1008 = arith.negf %1007 : vector<8x32xf32>
    %1009 = math.exp %1008 : vector<8x32xf32>
    %cst_230 = arith.constant 1.000000e+00 : f32
    %1010 = vector.broadcast %cst_230 : f32 to vector<8x32xf32>
    %1011 = arith.addf %1010, %1009 : vector<8x32xf32>
    %1012 = arith.divf %1010, %1011 : vector<8x32xf32>
    %1013 = vector.extract_strided_slice %1002 {offsets = [0, 32], sizes = [8, 32], strides = [1, 1]} : vector<8x128xf32> to vector<8x32xf32>
    %1014 = arith.negf %1013 : vector<8x32xf32>
    %1015 = math.exp %1014 : vector<8x32xf32>
    %cst_231 = arith.constant 1.000000e+00 : f32
    %1016 = vector.broadcast %cst_231 : f32 to vector<8x32xf32>
    %1017 = arith.addf %1016, %1015 : vector<8x32xf32>
    %1018 = arith.divf %1016, %1017 : vector<8x32xf32>
    %1019 = vector.extract_strided_slice %1002 {offsets = [0, 64], sizes = [8, 32], strides = [1, 1]} : vector<8x128xf32> to vector<8x32xf32>
    %1020 = math.tanh %1019 : vector<8x32xf32>
    %1021 = vector.extract_strided_slice %1002 {offsets = [0, 96], sizes = [8, 32], strides = [1, 1]} : vector<8x128xf32> to vector<8x32xf32>
    %1022 = arith.negf %1021 : vector<8x32xf32>
    %1023 = math.exp %1022 : vector<8x32xf32>
    %cst_232 = arith.constant 1.000000e+00 : f32
    %1024 = vector.broadcast %cst_232 : f32 to vector<8x32xf32>
    %1025 = arith.addf %1024, %1023 : vector<8x32xf32>
    %1026 = arith.divf %1024, %1025 : vector<8x32xf32>
    %1027 = arith.mulf %1012, %966 : vector<8x32xf32>
    %1028 = arith.mulf %1018, %1020 : vector<8x32xf32>
    %1029 = arith.addf %1027, %1028 : vector<8x32xf32>
    %1030 = math.tanh %1029 : vector<8x32xf32>
    %1031 = arith.mulf %1026, %1030 : vector<8x32xf32>
    %1032 = vector.extract_strided_slice %1006 {offsets = [0, 0], sizes = [8, 32], strides = [1, 1]} : vector<8x128xf32> to vector<8x32xf32>
    %1033 = arith.negf %1032 : vector<8x32xf32>
    %1034 = math.exp %1033 : vector<8x32xf32>
    %cst_233 = arith.constant 1.000000e+00 : f32
    %1035 = vector.broadcast %cst_233 : f32 to vector<8x32xf32>
    %1036 = arith.addf %1035, %1034 : vector<8x32xf32>
    %1037 = arith.divf %1035, %1036 : vector<8x32xf32>
    %1038 = vector.extract_strided_slice %1006 {offsets = [0, 32], sizes = [8, 32], strides = [1, 1]} : vector<8x128xf32> to vector<8x32xf32>
    %1039 = arith.negf %1038 : vector<8x32xf32>
    %1040 = math.exp %1039 : vector<8x32xf32>
    %cst_234 = arith.constant 1.000000e+00 : f32
    %1041 = vector.broadcast %cst_234 : f32 to vector<8x32xf32>
    %1042 = arith.addf %1041, %1040 : vector<8x32xf32>
    %1043 = arith.divf %1041, %1042 : vector<8x32xf32>
    %1044 = vector.extract_strided_slice %1006 {offsets = [0, 64], sizes = [8, 32], strides = [1, 1]} : vector<8x128xf32> to vector<8x32xf32>
    %1045 = math.tanh %1044 : vector<8x32xf32>
    %1046 = vector.extract_strided_slice %1006 {offsets = [0, 96], sizes = [8, 32], strides = [1, 1]} : vector<8x128xf32> to vector<8x32xf32>
    %1047 = arith.negf %1046 : vector<8x32xf32>
    %1048 = math.exp %1047 : vector<8x32xf32>
    %cst_235 = arith.constant 1.000000e+00 : f32
    %1049 = vector.broadcast %cst_235 : f32 to vector<8x32xf32>
    %1050 = arith.addf %1049, %1048 : vector<8x32xf32>
    %1051 = arith.divf %1049, %1050 : vector<8x32xf32>
    %1052 = arith.mulf %1037, %991 : vector<8x32xf32>
    %1053 = arith.mulf %1043, %1045 : vector<8x32xf32>
    %1054 = arith.addf %1052, %1053 : vector<8x32xf32>
    %1055 = math.tanh %1054 : vector<8x32xf32>
    %1056 = arith.mulf %1051, %1055 : vector<8x32xf32>
    %1057 = tpu.concatenate %1031, %1056 in 1 : vector<8x32xf32>, vector<8x32xf32> -> vector<8x64xf32>
    %c8_i32_236 = arith.constant 8 : i32
    %c0_237 = arith.constant 0 : index
    %c0_238 = arith.constant 0 : index
    %1058 = vector.load %arg7[%c0_237, %c0_238] : memref<64x128xf32, #tpu.memory_space<vmem>>, vector<64x128xf32>
    %cst_239 = arith.constant dense<0.000000e+00> : vector<8x128xf32>
    %1059 = tpu.matmul %1057, %1058, %cst_239 {dimension_numbers = #tpu.dot_dimension_numbers<[1], [0], [0], [1], [0, 0, 1, 1], [], []>} : vector<8x64xf32>, vector<64x128xf32>, vector<8x128xf32> -> vector<8x128xf32>
    %c0_240 = arith.constant 0 : index
    %c0_241 = arith.constant 0 : index
    %1060 = vector.load %arg8[%c0_240, %c0_241] : memref<1x128xf32, #tpu.memory_space<vmem>>, vector<1x128xf32>
    %1061 = vector.broadcast %1060 : vector<1x128xf32> to vector<8x128xf32>
    %1062 = arith.addf %1059, %1061 : vector<8x128xf32>
    %c0_242 = arith.constant 0 : index
    %c0_243 = arith.constant 0 : index
    %1063 = vector.load %arg9[%c0_242, %c0_243] : memref<8x128xf32, #tpu.memory_space<vmem>>, vector<8x128xf32>
    tpu.vector_store %arg9[%c0_242, %c0_243], %1062 {strides = array<i32>} : memref<8x128xf32, #tpu.memory_space<vmem>>, vector<8x128xf32>,
    return
  }
}

</mosaic_0001>

<bundles_post_ra>
// kernel: tpu_custom_call.1
= control target key start
LH: loop header
LB: loop body
LE: loop exit
PB: predicated region body
PF: predicated region fallthrough
CT: control target
= control target key end

     0   :  { %14 = vsyncpa [#allocation5], 0  ;;  %s4306_s0 = inlined_call_operand.hbm [shape: f32[64,64], index: 0, kind: input, shape index: {}]   ;;  %s4307_s1 = inlined_call_operand.hbm [shape: f32[64,256], index: 1, kind: input, shape index: {}]   ;;  %s4308_s2 = inlined_call_operand.vmem [shape: f32[1,256], index: 2, kind: input, shape index: {}]   ;;  %s4309_s3 = inlined_call_operand.hbm [shape: f32[64,256], index: 3, kind: input, shape index: {}]   ;;  %s4310_s4 = inlined_call_operand.hbm [shape: f32[64,256], index: 4, kind: input, shape index: {}]   ;;  %s4311_s5 = inlined_call_operand.vmem [shape: f32[1,256], index: 5, kind: input, shape index: {}]   ;;  %s4312_s6 = inlined_call_operand.hbm [shape: f32[64,256], index: 6, kind: input, shape index: {}]   ;;  %s4313_s7 = inlined_call_operand.hbm [shape: f32[64,128], index: 7, kind: input, shape index: {}]   ;;  %s4314_s8 = inlined_call_operand.vmem [shape: f32[1,128], index: 8, kind: input, shape index: {}]   ;;  %s4315_s9 = inlined_call_operand.hbm [shape: f32[8,128], index: 9, kind: output, shape index: {}]  }
   0x1   :  { %15 = vsyncpa [#allocation8], 0 }
   0x2   :  { %16 = vsyncpa [#allocation11], 0 }
   0x3   :  { %17 = vsyncpa [#allocation14], 0 }
   0x4   :  { %18 = vsyncpa [#allocation6], 0  ;;  %s3636_s30 = smov [#allocation7]   ;;  %s3472_s13 = scalar_lea.hbm %s4307_s1, 2048 }
   0x5   :  { %s36_s10 = sshll.u32 %s3636_s30, 4  ;;  %p3473_p0 = scmp.ne.s32.totalorder %s4307_s1, %s3472_s13  ;;  %s37_s10 = int_to_ptr.vmem [resolvable:$true] %s36_s10 }
   0x6   :  { %p3476_p1 = scmp.lt.u32.totalorder %s3472_s13, %s4307_s1 }
   0x8   :  { %p3478_p2 = pnand %p3476_p1, %p3473_p0 }
   0xa   :  { %3481 = shalt.err (!%p3478_p2)
}
   0xb   :  { %s3482_s18 = scalar_lea.vmem %s37_s10, 2048  ;;  %p3487_p4 = scmp.lt.s32.totalorder %s37_s10, %s37_s10 }
   0xc   :  { %p3483_p3 = scmp.ne.s32.totalorder %s37_s10, %s3482_s18  ;;  %p3488_p5 = scmp.lt.s32.totalorder %s3482_s18, %s3482_s18 }
   0xe   :  { %p3489_p6 = por %p3488_p5, %p3487_p4 }
  0x10   :  { %p3490_p7 = pnand %p3489_p6, %p3483_p3 }
  0x12   :  { %3493 = shalt.err (!%p3490_p7)
}
  0x13   :  { %s3637_s19 = smov 256   ;;  %s3638_s20 = smov 16  }
  0x14   :  { %42 = dma.hbm_to_vmem [thread:$0]  %s4307_s1, 2048, %s37_s10, [#allocation8], %s3637_s19, %s3637_s19, %s3638_s20  }
  0x15   :  { %s3639_s23 = smov [#allocation10]   ;;  %s3640_s25 = smov [#allocation4]  }
  0x16   :  { %s62_s24 = sshll.u32 %s3639_s23, 4  ;;  %s24_s26 = sshll.u32 %s3640_s25, 4  ;;  %s63_s24 = int_to_ptr.vmem [resolvable:$true] %s62_s24  ;;  %s25_s26 = int_to_ptr.vmem [resolvable:$true] %s24_s26 }
  0x17   :  { %s3494_s29 = scalar_lea.hbm %s4310_s4, 2048 }
  0x18   :  { %p3495_p8 = scmp.ne.s32.totalorder %s4310_s4, %s3494_s29  ;;  %p3498_p9 = scmp.lt.u32.totalorder %s3494_s29, %s4310_s4 }
  0x1a   :  { %p3500_p10 = pnand %p3498_p9, %p3495_p8 }
  0x1c   :  { %3503 = shalt.err (!%p3500_p10)
}
  0x1d   :  { %s3504_s1 = scalar_lea.vmem %s63_s24, 2048  ;;  %p3509_p12 = scmp.lt.s32.totalorder %s63_s24, %s63_s24 }
  0x1e   :  { %p3505_p11 = scmp.ne.s32.totalorder %s63_s24, %s3504_s1  ;;  %p3510_p13 = scmp.lt.s32.totalorder %s3504_s1, %s3504_s1 }
  0x20   :  { %p3511_p0 = por %p3510_p13, %p3509_p12 }
  0x22   :  { %p3512_p1 = pnand %p3511_p0, %p3505_p11 }
  0x24   :  { %3515 = shalt.err (!%p3512_p1)
}
  0x25   :  { %68 = dma.hbm_to_vmem [thread:$0]  %s4310_s4, 2048, %s63_s24, [#allocation11], %s3637_s19, %s3637_s19, %s3638_s20  }
  0x26   :  { %s3516_s17 = scalar_lea.hbm %s4306_s0, 1024 }
  0x27   :  { %p3517_p2 = scmp.ne.s32.totalorder %s4306_s0, %s3516_s17  ;;  %p3520_p3 = scmp.lt.u32.totalorder %s3516_s17, %s4306_s0 }
  0x29   :  { %p3522_p4 = pnand %p3520_p3, %p3517_p2 }
  0x2b   :  { %3525 = shalt.err (!%p3522_p4)
}
  0x2c   :  { %s3526_s25 = scalar_lea.vmem %s25_s26, 1024  ;;  %p3531_p6 = scmp.lt.s32.totalorder %s25_s26, %s25_s26 }
  0x2d   :  { %p3527_p5 = scmp.ne.s32.totalorder %s25_s26, %s3526_s25  ;;  %p3532_p7 = scmp.lt.s32.totalorder %s3526_s25, %s3526_s25 }
  0x2f   :  { %p3533_p8 = por %p3532_p7, %p3531_p6 }
  0x31   :  { %p3534_p9 = pnand %p3533_p8, %p3527_p5 }
  0x33   :  { %3537 = shalt.err (!%p3534_p9)
}
  0x34   :  { %s3641_s4 = smov 128   ;;  %s3642_s24 = smov 8  }
  0x35   :  { %30 = dma.hbm_to_vmem [thread:$0]  %s4306_s0, 1024, %s25_s26, [#allocation5], %s3641_s4, %s3641_s4, %s3642_s24  }
  0x36   :  { %s3643_s29 = smov [#allocation9]   ;;  %s3644_s11 = smov [#allocation12]  }
  0x37   :  { %s50_s30 = sshll.u32 %s3643_s29, 4  ;;  %s76_s12 = sshll.u32 %s3644_s11, 4  ;;  %s51_s30 = int_to_ptr.vmem [resolvable:$true] %s50_s30  ;;  %s77_s12 = int_to_ptr.vmem [resolvable:$true] %s76_s12 }
  0x38   :  { %s3538_s10 = scalar_lea.hbm %s4309_s3, 2048 }
  0x39   :  { %p3539_p10 = scmp.ne.s32.totalorder %s4309_s3, %s3538_s10  ;;  %p3542_p11 = scmp.lt.u32.totalorder %s3538_s10, %s4309_s3 }
  0x3b   :  { %p3544_p12 = pnand %p3542_p11, %p3539_p10 }
  0x3d   :  { %3547 = shalt.err (!%p3544_p12)
}
  0x3e   :  { %s3548_s0 = scalar_lea.vmem %s51_s30, 2048  ;;  %p3553_p0 = scmp.lt.s32.totalorder %s51_s30, %s51_s30 }
  0x3f   :  { %p3549_p13 = scmp.ne.s32.totalorder %s51_s30, %s3548_s0  ;;  %p3554_p1 = scmp.lt.s32.totalorder %s3548_s0, %s3548_s0 }
  0x41   :  { %p3555_p2 = por %p3554_p1, %p3553_p0 }
  0x43   :  { %p3556_p3 = pnand %p3555_p2, %p3549_p13 }
  0x45   :  { %3559 = shalt.err (!%p3556_p3)
}
  0x46   :  { %56 = dma.hbm_to_vmem [thread:$0]  %s4309_s3, 2048, %s51_s30, [#allocation8], %s3637_s19, %s3637_s19, %s3638_s20  }
  0x47   :  { %s3560_s23 = scalar_lea.hbm %s4312_s6, 2048 }
  0x48   :  { %p3561_p4 = scmp.ne.s32.totalorder %s4312_s6, %s3560_s23  ;;  %p3564_p5 = scmp.lt.u32.totalorder %s3560_s23, %s4312_s6 }
  0x4a   :  { %p3566_p6 = pnand %p3564_p5, %p3561_p4 }
  0x4c   :  { %3569 = shalt.err (!%p3566_p6)
}
  0x4d   :  { %s3570_s11 = scalar_lea.vmem %s77_s12, 2048  ;;  %p3575_p8 = scmp.lt.s32.totalorder %s77_s12, %s77_s12 }
  0x4e   :  { %p3571_p7 = scmp.ne.s32.totalorder %s77_s12, %s3570_s11  ;;  %p3576_p9 = scmp.lt.s32.totalorder %s3570_s11, %s3570_s11 }
  0x50   :  { %p3577_p10 = por %p3576_p9, %p3575_p8 }
  0x52   :  { %p3578_p11 = pnand %p3577_p10, %p3571_p7 }
  0x54   :  { %3581 = shalt.err (!%p3578_p11)
}
  0x55   :  { %82 = dma.hbm_to_vmem [thread:$0]  %s4312_s6, 2048, %s77_s12, [#allocation11], %s3637_s19, %s3637_s19, %s3638_s20  }
  0x56   :  { %s3645_s13 = smov [#allocation13]   ;;  %s3582_s15 = scalar_lea.hbm %s4313_s7, 1024 }
  0x57   :  { %s88_s1 = sshll.u32 %s3645_s13, 4  ;;  %p3583_p12 = scmp.ne.s32.totalorder %s4313_s7, %s3582_s15  ;;  %s89_s1 = int_to_ptr.vmem [resolvable:$true] %s88_s1 }
  0x58   :  { %p3586_p13 = scmp.lt.u32.totalorder %s3582_s15, %s4313_s7 }
  0x5a   :  { %p3588_p0 = pnand %p3586_p13, %p3583_p12 }
  0x5c   :  { %3591 = shalt.err (!%p3588_p0)
}
  0x5d   :  { %s3592_s18 = scalar_lea.vmem %s89_s1, 1024  ;;  %p3597_p2 = scmp.lt.s32.totalorder %s89_s1, %s89_s1 }
  0x5e   :  { %p3593_p1 = scmp.ne.s32.totalorder %s89_s1, %s3592_s18  ;;  %p3598_p3 = scmp.lt.s32.totalorder %s3592_s18, %s3592_s18 }
  0x60   :  { %p3599_p4 = por %p3598_p3, %p3597_p2 }
  0x62   :  { %p3600_p5 = pnand %p3599_p4, %p3593_p1 }
  0x64   :  { %3603 = shalt.err (!%p3600_p5)
}
  0x65   :  { %94 = dma.hbm_to_vmem [thread:$0]  %s4313_s7, 1024, %s89_s1, [#allocation14], %s3641_s4, %s3641_s4, %s3642_s24  }
  0x66   :  { %3626 = dma.done.wait [#allocation5], 1024  }
  0x67   :  { %3627 = vsyncadd [#allocation5], 4294966272 }
  0x68   :  { %3628 = dma.done.wait [#allocation8], 4096  }
  0x69   :  { %3629 = vsyncadd [#allocation8], 4294963200 }
  0x6a   :  { %3630 = dma.done.wait [#allocation11], 4096  }
  0x6b   :  { %3631 = vsyncadd [#allocation11], 4294963200 }
  0x6c   :  { %3632 = dma.done.wait [#allocation14], 1024  }
  0x6d   :  { %3633 = vsyncadd [#allocation14], 4294966272  ;;  %v3646_v0 = vmov 0.0   ;;  %v156_v1 = vld [vmem:[#allocation7 + $0x8] sm:$0xff]  ;;  %v158_v2 = vld [vmem:[#allocation7 + $0x18] sm:$0xff]  ;;  %vm183_vm0 = vcmask 523264   ;;  %v173_v57 = vlaneseq }
  0x6e   :  { %272 = vmatprep.mubr.f32.mxu0 %v3646_v0  ;;  %404 = vmatprep.mubr.f32.mxu1 %v3646_v0  ;;  %v155_v3 = vld [vmem:[#allocation7] sm:$0xff]  ;;  %v2899_v4 = vpack.c.bf16 %v158_v2, %v156_v1  ;;  %v157_v5 = vld [vmem:[#allocation7 + $0x10] sm:$0xff]  ;;  %v116_v6 = vld [vmem:[#allocation9 + $0x8] sm:$0xff]  ;;  %s3648_s4 = smov 32   ;;  %s3649_s24 = smov 64   ;;  %vm467_vm1 = vcmask 261120  }
  0x6f   :  { %v118_v7 = vld [vmem:[#allocation9 + $0x18] sm:$0xff]  ;;  %v2901_v8 = vpack.c.bf16 %v157_v5, %v155_v3  ;;  %v115_v10 = vld [vmem:[#allocation9] sm:$0xff]  ;;  %v117_v11 = vld [vmem:[#allocation9 + $0x10] sm:$0xff]  ;;  %v3855_v58 = vshrl.u32 %v173_v57, 7  ;;  %vm473_vm2 = vcmask 523520   ;;  %vm3651_vm3 = vmmov 0  }
  0x70   :  { %v3795_v9 = vpack.c.bf16 %v118_v7, %v116_v6  ;;  %v160_v12 = vld [vmem:[#allocation7 + $0x28] sm:$0xff]  ;;  %2900 = vmatprep.subr.bf16.mxu0 %v2899_v4  ;;  %v3797_v13 = vpack.c.bf16 %v117_v11, %v115_v10  ;;  %v162_v14 = vld [vmem:[#allocation7 + $0x38] sm:$0xff]  ;;  %v159_v15 = vld [vmem:[#allocation7 + $0x20] sm:$0xff]  ;;  %s3652_s23 = smov [#allocation15]  }
  0x71   :  { %v161_v16 = vld [vmem:[#allocation7 + $0x30] sm:$0xff]  ;;  %2902 = vmatpush1.bf16.msra.mxu0 %v2901_v8  ;;  %v2903_v17 = vpack.c.bf16 %v162_v14, %v160_v12  ;;  %v120_v19 = vld [vmem:[#allocation9 + $0x28] sm:$0xff]  ;;  %v122_v20 = vld [vmem:[#allocation9 + $0x38] sm:$0xff]  ;;  %v175_v59 = vsub.s32 0, %v3855_v58  ;;  %v179_v61 = vsub.s32 1, %v3855_v58  ;;  %s2795_s25 = sshll.u32 %s3652_s23, 4  ;;  %s2796_s25 = int_to_ptr.vmem [resolvable:$true] %s2795_s25 }
  0x72   :  { %2916 = vmatprep.subr.bf16.mxu1 %v3795_v9  ;;  %v2905_v18 = vpack.c.bf16 %v161_v16, %v159_v15  ;;  %v119_v21 = vld [vmem:[#allocation9 + $0x20] sm:$0xff]  ;;  %v3801_v22 = vpack.c.bf16 %v122_v20, %v120_v19  ;;  %v121_v23 = vld [vmem:[#allocation9 + $0x30] sm:$0xff]  ;;  %v164_v24 = vld [vmem:[#allocation7 + $0x48] sm:$0xff]  ;;  %s3604_s27 = scalar_lea.vmem %s2796_s25, 128  ;;  %p3609_p7 = scmp.lt.s32.totalorder %s2796_s25, %s2796_s25 }
  0x73   :  { %2918 = vmatpush1.bf16.msra.mxu1 %v3797_v13  ;;  %v166_v25 = vld [vmem:[#allocation7 + $0x58] sm:$0xff]  ;;  %2904 = vmatprep.subr.bf16.mxu0 %v2903_v17  ;;  %v3803_v26 = vpack.c.bf16 %v121_v23, %v119_v21  ;;  %v163_v28 = vld [vmem:[#allocation7 + $0x40] sm:$0xff]  ;;  %v165_v29 = vld [vmem:[#allocation7 + $0x50] sm:$0xff]  ;;  %p3605_p6 = scmp.ne.s32.totalorder %s2796_s25, %s3604_s27  ;;  %p3610_p8 = scmp.lt.s32.totalorder %s3604_s27, %s3604_s27 }
  0x74   :  { %v2907_v27 = vpack.c.bf16 %v166_v25, %v164_v24  ;;  %v124_v30 = vld [vmem:[#allocation9 + $0x48] sm:$0xff]  ;;  %2920 = vmatprep.subr.bf16.mxu1 %v3801_v22  ;;  %v126_v31 = vld [vmem:[#allocation9 + $0x58] sm:$0xff]  ;;  %v123_v32 = vld [vmem:[#allocation9 + $0x40] sm:$0xff]  ;;  %v2909_v34 = vpack.c.bf16 %v165_v29, %v163_v28 }
  0x75   :  { %v125_v33 = vld [vmem:[#allocation9 + $0x50] sm:$0xff]  ;;  %2906 = vmatpush1.bf16.msra.mxu0 %v2905_v18  ;;  %v3806_v35 = vpack.c.bf16 %v126_v31, %v124_v30  ;;  %v168_v36 = vld [vmem:[#allocation7 + $0x68] sm:$0xff]  ;;  %v170_v37 = vld [vmem:[#allocation7 + $0x78] sm:$0xff]  ;;  %p3611_p9 = por %p3610_p8, %p3609_p7 }
  0x76   :  { %v167_v38 = vld [vmem:[#allocation7 + $0x60] sm:$0xff]  ;;  %2908 = vmatprep.subr.bf16.mxu0 %v2907_v27  ;;  %v3809_v39 = vpack.c.bf16 %v125_v33, %v123_v32  ;;  %v2911_v40 = vpack.c.bf16 %v170_v37, %v168_v36  ;;  %v169_v41 = vld [vmem:[#allocation7 + $0x70] sm:$0xff]  ;;  %v128_v42 = vld [vmem:[#allocation9 + $0x68] sm:$0xff] }
  0x77   :  { %2922 = vmatpush1.bf16.msra.mxu1 %v3803_v26  ;;  %v130_v43 = vld [vmem:[#allocation9 + $0x78] sm:$0xff]  ;;  %v127_v45 = vld [vmem:[#allocation9 + $0x60] sm:$0xff]  ;;  %v129_v46 = vld [vmem:[#allocation9 + $0x70] sm:$0xff]  ;;  %v2913_v47 = vpack.c.bf16 %v169_v41, %v167_v38  ;;  %p3612_p10 = pnand %p3611_p9, %p3605_p6 }
  0x78   :  { %2924 = vmatprep.subr.bf16.mxu1 %v3806_v35  ;;  %v3812_v44 = vpack.c.bf16 %v130_v43, %v128_v42  ;;  %v3815_v48 = vpack.c.bf16 %v129_v46, %v127_v45  ;;  %v147_v49 = vld [vmem:[#allocation4] sm:$0xff]  ;;  %v148_v50 = vld [vmem:[#allocation4 + $0x8] sm:$0xff]  ;;  %v149_v51 = vld [vmem:[#allocation4 + $0x10] sm:$0xff] }
  0x79   :  { %2910 = vmatpush1.bf16.msra.mxu0 %v2909_v34  ;;  %v150_v52 = vld [vmem:[#allocation4 + $0x18] sm:$0xff]  ;;  %v151_v53 = vld [vmem:[#allocation4 + $0x20] sm:$0xff]  ;;  %v152_v54 = vld [vmem:[#allocation4 + $0x28] sm:$0xff] }
  0x7a   :  { %2912 = vmatprep.subr.bf16.mxu0 %v2911_v40  ;;  %v153_v55 = vld [vmem:[#allocation4 + $0x30] sm:$0xff]  ;;  %v154_v56 = vld [vmem:[#allocation4 + $0x38] sm:$0xff]  ;;  %v171_v60 = vld [vmem:[%s4308_s2] sm:$0x3]  ;;  %s3647_s2 = smov 96  }
  0x7b   :  { %2926 = vmatpush1.bf16.msra.mxu1 %v3809_v39  ;;  %v176_v62 = vrot.slane %v171_v60, %v175_v59  ;;  %v180_v63 = vrot.slane %v171_v60, %v179_v61 }
  0x7c   :  { %2928 = vmatprep.subr.bf16.mxu1 %v3812_v44 }
  0x7d   :  { %2914 = vmatpush1.bf16.msra.mxu0 %v2913_v47 }
  0x7e   :  { %2948 = vmatprep.subr.bf16.mxu0 %v3795_v9 }
  0x7f   :  { %2930 = vmatpush1.bf16.msra.mxu1 %v3815_v48 }
  0x80   :  { %2932 = vmatprep.subr.bf16.mxu1 %v3795_v9  ;;  %2807 = vmatmul.mubr.msk.f32.vlgmr.msra.gmra.mrb[0].mxu0 %vm183_vm0, %v147_v49 }
  0x81   :  { %278 = vmatprep.mubr.f32.mxu0 %v3646_v0  ;;  %2950 = vmatpush1.bf16.msra.mxu0 %v3797_v13 }
  0x82   :  { %405 = vmatmul.mubr.f32.vlgmr.msra.gmra.mrb[0].mxu1 %v3646_v0  ;;  %2952 = vmatprep.subr.bf16.mxu0 %v3801_v22 }
  0x83   :  { %2934 = vmatpush1.bf16.msra.mxu1 %v3797_v13  ;;  %543 = vmatprep.mubr.f32.mxu1 %v3646_v0 }
  0x84   :  { %2936 = vmatprep.subr.bf16.mxu1 %v3801_v22  ;;  %2808 = vmatmul.mubr.msk.f32.gmra.mrb[2].mxu0 %vm183_vm0, %v148_v50 }
  0x85   :  { %284 = vmatprep.mubr.f32.mxu0 %v3646_v0  ;;  %2954 = vmatpush1.bf16.msra.mxu0 %v3803_v26 }
  0x86   :  { %2956 = vmatprep.subr.bf16.mxu0 %v3806_v35 }
  0x87   :  { %2938 = vmatpush1.bf16.msra.mxu1 %v3803_v26 }
  0x88   :  { %2940 = vmatprep.subr.bf16.mxu1 %v3806_v35  ;;  %2809 = vmatmul.mubr.msk.f32.gmra.mrb[4].mxu0 %vm183_vm0, %v149_v51 }
  0x89   :  { %290 = vmatprep.mubr.f32.mxu0 %v3646_v0  ;;  %2958 = vmatpush1.bf16.msra.mxu0 %v3809_v39 }
  0x8a   :  { %2960 = vmatprep.subr.bf16.mxu0 %v3812_v44 }
  0x8b   :  { %2942 = vmatpush1.bf16.msra.mxu1 %v3809_v39 }
  0x8c   :  { %2944 = vmatprep.subr.bf16.mxu1 %v3812_v44  ;;  %2810 = vmatmul.mubr.msk.f32.gmra.mrb[6].mxu0 %vm183_vm0, %v150_v52 }
  0x8d   :  { %296 = vmatprep.mubr.f32.mxu0 %v3646_v0  ;;  %2962 = vmatpush1.bf16.msra.mxu0 %v3815_v48 }
  0x8e   :  { %2980 = vmatprep.subr.bf16.mxu0 %v3795_v9 }
  0x8f   :  { %2946 = vmatpush1.bf16.msra.mxu1 %v3815_v48 }
  0x90   :  { %2964 = vmatprep.subr.bf16.mxu1 %v3795_v9  ;;  %2811 = vmatmul.mubr.msk.f32.gmra.mrb[8].mxu0 %vm183_vm0, %v151_v53 }
  0x91   :  { %302 = vmatprep.mubr.f32.mxu0 %v3646_v0 }
  0x94   :  { %2812 = vmatmul.mubr.msk.f32.gmra.mrb[10].mxu0 %vm183_vm0, %v152_v54 }
  0x95   :  { %308 = vmatprep.mubr.f32.mxu0 %v3646_v0 }
  0x98   :  { %2813 = vmatmul.mubr.msk.f32.gmra.mrb[12].mxu0 %vm183_vm0, %v153_v55 }
  0x99   :  { %314 = vmatprep.mubr.f32.mxu0 %v3646_v0 }
  0x9c   :  { %2814 = vmatmul.mubr.msk.f32.gmra.mrb[14].mxu0 %vm183_vm0, %v154_v56 }
  0x9d   :  { %680 = vmatprep.mubr.f32.mxu0 %v3646_v0 }
 0x153   :  { %v274_v1 = vpop.f32.mrb[0].mxu0 }
 0x154   :  { %v275_v2 = vadd.f32 %v274_v1, %v176_v62  ;;  %v276_v3 = vpop.f32.mrb[1].mxu0 }
 0x155   :  { %v406_v4 = vpop.f32.mrb[0].mxu1  ;;  %v3866_v5 = vadd.f32 %v276_v3, %v180_v63 }
 0x156   :  { %v408_v6 = vpop.f32.mrb[1].mxu1  ;;  %v412_v7 = vadd.f32 %v406_v4, %v275_v2 }
 0x157   :  { %v280_v8 = vpop.f32.mrb[2].mxu0 }
 0x158   :  { %3216 = vtanh.f32 %v412_v7  ;;  %v3868_v10 = vadd.f32 %v280_v8, %v176_v62  ;;  %v282_v11 = vpop.f32.mrb[3].mxu0  ;;  %v2815_v46 = vmul.f32 -1.442695, %v412_v7 }
 0x159   :  { %v3870_v12 = vadd.f32 %v282_v11, %v180_v63 }
 0x15b   :  { %v286_v14 = vpop.f32.mrb[4].mxu0 }
 0x15c   :  { %v3872_v15 = vadd.f32 %v286_v14, %v176_v62  ;;  %v288_v16 = vpop.f32.mrb[5].mxu0 }
 0x15d   :  { %v3874_v17 = vadd.f32 %v288_v16, %v180_v63 }
 0x15f   :  { %v292_v18 = vpop.f32.mrb[6].mxu0 }
 0x160   :  { %v3876_v19 = vadd.f32 %v292_v18, %v176_v62  ;;  %v294_v20 = vpop.f32.mrb[7].mxu0 }
 0x161   :  { %v3878_v21 = vadd.f32 %v294_v20, %v180_v63 }
 0x162   :  { %v3217_v23 = vpop.eup %3216 }
 0x163   :  { %v298_v24 = vpop.f32.mrb[8].mxu0  ;;  %424 = vrot.lane.b32.xlu0 %v3217_v23, %s3647_s2 }
 0x164   :  { %v3881_v25 = vadd.f32 %v298_v24, %v176_v62  ;;  %v300_v27 = vpop.f32.mrb[9].mxu0 }
 0x165   :  { %v3883_v28 = vadd.f32 %v300_v27, %v180_v63 }
 0x167   :  { %v304_v29 = vpop.f32.mrb[10].mxu0 }
 0x168   :  { %v3885_v30 = vadd.f32 %v304_v29, %v176_v62  ;;  %v306_v31 = vpop.f32.mrb[11].mxu0 }
 0x169   :  { %v3887_v32 = vadd.f32 %v306_v31, %v180_v63 }
 0x16b   :  { %v310_v33 = vpop.f32.mrb[12].mxu0 }
 0x16c   :  { %v3889_v34 = vadd.f32 %v310_v33, %v176_v62  ;;  %v312_v36 = vpop.f32.mrb[13].mxu0 }
 0x16d   :  { %v3891_v37 = vadd.f32 %v312_v36, %v180_v63 }
 0x16f   :  { %v316_v38 = vpop.f32.mrb[14].mxu0 }
 0x170   :  { %v3893_v40 = vadd.f32 %v316_v38, %v176_v62  ;;  %v318_v41 = vpop.f32.mrb[15].mxu0 }
 0x171   :  { %v319_v42 = vadd.f32 %v318_v41, %v180_v63 }
 0x173   :  { %v414_v43 = vadd.f32 %v408_v6, %v319_v42 }
 0x175   :  { %3218 = vtanh.f32 %v414_v43  ;;  %v2816_v50 = vmul.f32 -1.442695, %v414_v43 }
 0x176   :  { %3220 = vpow2.f32 %v2815_v46 }
 0x17f   :  { %v3219_v45 = vpop.eup %3218 }
 0x180   :  { %448 = vrot.lane.b32.xlu0 %v3219_v45, %s3647_s2  ;;  %v3221_v47 = vpop.eup %3220 }
 0x181   :  { %v418_v49 = vadd.f32 1.0, %v3221_v47 }
 0x183   :  { %3222 = vrcp.f32 %v418_v49 }
 0x184   :  { %3224 = vpow2.f32 %v2816_v50 }
 0x18d   :  { %v3223_v51 = vpop.eup %3222 }
 0x18e   :  { %v3225_v54 = vpop.eup %3224  ;;  %v422_v62 = vmul.f32 0.0, %v3223_v51 }
 0x18f   :  { %v442_v55 = vadd.f32 1.0, %v3225_v54 }
 0x191   :  { %3226 = vrcp.f32 %v442_v55 }
 0x19b   :  { %v3227_v56 = vpop.eup %3226 }
 0x19c   :  { %v446_v3 = vmul.f32 0.0, %v3227_v56 }
 0x1d5   :  { %v425_v52 = vpop.permute.xlu0 %424 }
 0x1d6   :  { %v427_v53 = vmul.f32 %v3223_v51, %v425_v52 }
 0x1d8   :  { %429 = vrot.lane.b32.xlu1 %v427_v53, %s3647_s2 }
 0x1f2   :  { %v449_v57 = vpop.permute.xlu0 %448 }
 0x1f3   :  { %v451_v60 = vmul.f32 %v3227_v56, %v449_v57 }
 0x1f5   :  { %453 = vrot.lane.b32.xlu1 %v451_v60, %s3647_s2 }
 0x24a   :  { %v430_v63 = vpop.permute.xlu1 %429 }
 0x24b   :  { %v3898_v1 = vadd.f32 %v430_v63, %v422_v62 }
 0x24d   :  { %3228 = vtanh.f32 %v3898_v1 }
 0x257   :  { %v3229_v2 = vpop.eup %3228 }
 0x258   :  { %435 = vrot.lane.b32.xlu0 %v3229_v2, %s3647_s2 }
 0x267   :  { %v454_v4 = vpop.permute.xlu1 %453 }
 0x268   :  { %v456_v6 = vadd.f32 %v454_v4, %v446_v3 }
 0x26a   :  { %3230 = vtanh.f32 %v456_v6 }
 0x274   :  { %v3231_v7 = vpop.eup %3230 }
 0x275   :  { %459 = vrot.lane.b32.xlu1 %v3231_v7, %s3647_s2 }
 0x2ca   :  { %v436_v8 = vpop.permute.xlu0 %435 }
 0x2cb   :  { %v438_v11 = vmul.f32 %v3223_v51, %v436_v8 }
 0x2cd   :  { %464 = vrot.lane.b32.xlu0 %v438_v11, %s3648_s4 }
 0x2e7   :  { %v460_v14 = vpop.permute.xlu1 %459 }
 0x2e8   :  { %v462_v16 = vmul.f32 %v3227_v56, %v460_v14 }
 0x2ea   :  { %470 = vrot.lane.b32.xlu1 %v462_v16, %s3649_s24 }
 0x33f   :  { %v465_v18 = vpop.permute.xlu0 %464 }
 0x340   :  { %468 = vst.msk [vmem:[#allocation3] sm:$0xff] %vm467_vm1, %v465_v18 }
 0x35c   :  { %v471_v20 = vpop.permute.xlu1 %470 }
 0x35d   :  { %474 = vst.msk [vmem:[#allocation3 + $0x38] sm:$0xff] %vm473_vm2, %v471_v20  ;;  %v475_v23 = vsel %vm467_vm1, %v465_v18, %v471_v20 }
 0x35e   :  { %2817 = vmatmul.mubr.msk.f32.vlgmr.msra.gmra.mrb[2].mxu1 %vm183_vm0, %v475_v23 }
 0x35f   :  { %2966 = vmatpush1.bf16.msra.mxu1 %v3797_v13  ;;  %817 = vmatprep.mubr.f32.mxu1 %v3646_v0 }
 0x360   :  { %2968 = vmatprep.subr.bf16.mxu1 %v3801_v22 }
 0x363   :  { %2970 = vmatpush1.bf16.msra.mxu1 %v3803_v26 }
 0x364   :  { %2972 = vmatprep.subr.bf16.mxu1 %v3806_v35 }
 0x367   :  { %2974 = vmatpush1.bf16.msra.mxu1 %v3809_v39 }
 0x368   :  { %2976 = vmatprep.subr.bf16.mxu1 %v3812_v44 }
 0x36b   :  { %2978 = vmatpush1.bf16.msra.mxu1 %v3815_v48 }
 0x36c   :  { %2996 = vmatprep.subr.bf16.mxu1 %v3795_v9 }
 0x431   :  { %v545_v24 = vpop.f32.mrb[2].mxu1 }
 0x432   :  { %v551_v27 = vadd.f32 %v545_v24, %v3868_v10  ;;  %v547_v29 = vpop.f32.mrb[3].mxu1 }
 0x433   :  { %v553_v31 = vadd.f32 %v547_v29, %v3891_v37 }
 0x434   :  { %3232 = vtanh.f32 %v551_v27  ;;  %v2818_v38 = vmul.f32 -1.442695, %v551_v27 }
 0x435   :  { %3234 = vtanh.f32 %v553_v31  ;;  %v2819_v41 = vmul.f32 -1.442695, %v553_v31 }
 0x436   :  { %3236 = vpow2.f32 %v2818_v38 }
 0x437   :  { %3238 = vpow2.f32 %v2819_v41 }
 0x43e   :  { %v3233_v33 = vpop.eup %3232 }
 0x43f   :  { %v3235_v36 = vpop.eup %3234  ;;  %563 = vrot.lane.b32.xlu0 %v3233_v33, %s3647_s2 }
 0x440   :  { %587 = vrot.lane.b32.xlu1 %v3235_v36, %s3647_s2  ;;  %v3237_v42 = vpop.eup %3236 }
 0x441   :  { %v3239_v43 = vpop.eup %3238  ;;  %v557_v45 = vadd.f32 1.0, %v3237_v42 }
 0x442   :  { %v581_v46 = vadd.f32 1.0, %v3239_v43 }
 0x443   :  { %3240 = vrcp.f32 %v557_v45 }
 0x444   :  { %3242 = vrcp.f32 %v581_v46 }
 0x44d   :  { %v3241_v10 = vpop.eup %3240 }
 0x44e   :  { %v3243_v47 = vpop.eup %3242  ;;  %v561_v52 = vmul.f32 %v3241_v10, %v3898_v1 }
 0x44f   :  { %v585_v54 = vmul.f32 %v3243_v47, %v456_v6 }
 0x4b1   :  { %v564_v37 = vpop.permute.xlu0 %563 }
 0x4b2   :  { %v566_v49 = vmul.f32 %v3241_v10, %v564_v37  ;;  %v588_v50 = vpop.permute.xlu1 %587 }
 0x4b3   :  { %v590_v51 = vmul.f32 %v3243_v47, %v588_v50 }
 0x4b4   :  { %568 = vrot.lane.b32.xlu0 %v566_v49, %s3647_s2 }
 0x4b5   :  { %592 = vrot.lane.b32.xlu1 %v590_v51, %s3647_s2 }
 0x526   :  { %v569_v53 = vpop.permute.xlu0 %568 }
 0x527   :  { %v571_v55 = vadd.f32 %v569_v53, %v561_v52  ;;  %v593_v56 = vpop.permute.xlu1 %592 }
 0x528   :  { %v595_v57 = vadd.f32 %v593_v56, %v585_v54 }
 0x529   :  { %3244 = vtanh.f32 %v571_v55 }
 0x52a   :  { %3246 = vtanh.f32 %v595_v57 }
 0x533   :  { %v3245_v60 = vpop.eup %3244 }
 0x534   :  { %v3247_v62 = vpop.eup %3246  ;;  %574 = vrot.lane.b32.xlu0 %v3245_v60, %s3647_s2 }
 0x535   :  { %598 = vrot.lane.b32.xlu1 %v3247_v62, %s3647_s2 }
 0x5a6   :  { %v575_v63 = vpop.permute.xlu0 %574 }
 0x5a7   :  { %v577_v2 = vmul.f32 %v3241_v10, %v575_v63  ;;  %v599_v3 = vpop.permute.xlu1 %598 }
 0x5a8   :  { %v601_v4 = vmul.f32 %v3243_v47, %v599_v3 }
 0x5a9   :  { %603 = vrot.lane.b32.xlu0 %v577_v2, %s3648_s4 }
 0x5aa   :  { %608 = vrot.lane.b32.xlu1 %v601_v4, %s3649_s24 }
 0x61b   :  { %v604_v1 = vpop.permute.xlu0 %603 }
 0x61c   :  { %606 = vst.msk [vmem:[#allocation3 + $0x8] sm:$0xff] %vm467_vm1, %v604_v1  ;;  %v609_v6 = vpop.permute.xlu1 %608 }
 0x61d   :  { %611 = vst.msk [vmem:[#allocation3 + $0x30] sm:$0xff] %vm473_vm2, %v609_v6  ;;  %v612_v7 = vsel %vm467_vm1, %v604_v1, %v609_v6 }
 0x61e   :  { %2820 = vmatmul.mubr.msk.f32.vlgmr.msra.gmra.mrb[16].mxu0 %vm183_vm0, %v612_v7 }
 0x61f   :  { %2982 = vmatpush1.bf16.msra.mxu0 %v3797_v13  ;;  %954 = vmatprep.mubr.f32.mxu0 %v3646_v0 }
 0x620   :  { %2984 = vmatprep.subr.bf16.mxu0 %v3801_v22 }
 0x623   :  { %2986 = vmatpush1.bf16.msra.mxu0 %v3803_v26 }
 0x624   :  { %2988 = vmatprep.subr.bf16.mxu0 %v3806_v35 }
 0x627   :  { %2990 = vmatpush1.bf16.msra.mxu0 %v3809_v39 }
 0x628   :  { %2992 = vmatprep.subr.bf16.mxu0 %v3812_v44 }
 0x62b   :  { %2994 = vmatpush1.bf16.msra.mxu0 %v3815_v48 }
 0x62c   :  { %3012 = vmatprep.subr.bf16.mxu0 %v3795_v9 }
 0x6f1   :  { %v682_v8 = vpop.f32.mrb[16].mxu0 }
 0x6f2   :  { %v688_v11 = vadd.f32 %v682_v8, %v3872_v15  ;;  %v684_v14 = vpop.f32.mrb[17].mxu0 }
 0x6f3   :  { %v690_v16 = vadd.f32 %v684_v14, %v3887_v32 }
 0x6f4   :  { %3248 = vtanh.f32 %v688_v11  ;;  %v2821_v23 = vmul.f32 -1.442695, %v688_v11 }
 0x6f5   :  { %3250 = vtanh.f32 %v690_v16  ;;  %v2822_v24 = vmul.f32 -1.442695, %v690_v16 }
 0x6f6   :  { %3252 = vpow2.f32 %v2821_v23 }
 0x6f7   :  { %3254 = vpow2.f32 %v2822_v24 }
 0x6fe   :  { %v3249_v18 = vpop.eup %3248 }
 0x6ff   :  { %v3251_v20 = vpop.eup %3250  ;;  %700 = vrot.lane.b32.xlu0 %v3249_v18, %s3647_s2 }
 0x700   :  { %724 = vrot.lane.b32.xlu1 %v3251_v20, %s3647_s2  ;;  %v3253_v27 = vpop.eup %3252 }
 0x701   :  { %v3255_v29 = vpop.eup %3254  ;;  %v694_v31 = vadd.f32 1.0, %v3253_v27 }
 0x702   :  { %v718_v33 = vadd.f32 1.0, %v3255_v29 }
 0x703   :  { %3256 = vrcp.f32 %v694_v31 }
 0x704   :  { %3258 = vrcp.f32 %v718_v33 }
 0x70d   :  { %v3257_v15 = vpop.eup %3256 }
 0x70e   :  { %v3259_v36 = vpop.eup %3258  ;;  %v698_v43 = vmul.f32 %v3257_v15, %v571_v55 }
 0x70f   :  { %v722_v46 = vmul.f32 %v3259_v36, %v595_v57 }
 0x771   :  { %v701_v32 = vpop.permute.xlu0 %700 }
 0x772   :  { %v703_v38 = vmul.f32 %v3257_v15, %v701_v32  ;;  %v725_v41 = vpop.permute.xlu1 %724 }
 0x773   :  { %v727_v42 = vmul.f32 %v3259_v36, %v725_v41 }
 0x774   :  { %705 = vrot.lane.b32.xlu0 %v703_v38, %s3647_s2 }
 0x775   :  { %729 = vrot.lane.b32.xlu1 %v727_v42, %s3647_s2 }
 0x7e6   :  { %v706_v45 = vpop.permute.xlu0 %705 }
 0x7e7   :  { %v708_v10 = vadd.f32 %v706_v45, %v698_v43  ;;  %v730_v37 = vpop.permute.xlu1 %729 }
 0x7e8   :  { %v732_v47 = vadd.f32 %v730_v37, %v722_v46 }
 0x7e9   :  { %3260 = vtanh.f32 %v708_v10 }
 0x7ea   :  { %3262 = vtanh.f32 %v732_v47 }
 0x7f3   :  { %v3261_v49 = vpop.eup %3260 }
 0x7f4   :  { %v3263_v50 = vpop.eup %3262  ;;  %711 = vrot.lane.b32.xlu0 %v3261_v49, %s3647_s2 }
 0x7f5   :  { %735 = vrot.lane.b32.xlu1 %v3263_v50, %s3647_s2 }
 0x866   :  { %v712_v51 = vpop.permute.xlu0 %711 }
 0x867   :  { %v714_v52 = vmul.f32 %v3257_v15, %v712_v51  ;;  %v736_v53 = vpop.permute.xlu1 %735 }
 0x868   :  { %v738_v54 = vmul.f32 %v3259_v36, %v736_v53 }
 0x869   :  { %740 = vrot.lane.b32.xlu0 %v714_v52, %s3648_s4 }
 0x86a   :  { %745 = vrot.lane.b32.xlu1 %v738_v54, %s3649_s24 }
 0x8db   :  { %v741_v55 = vpop.permute.xlu0 %740 }
 0x8dc   :  { %743 = vst.msk [vmem:[#allocation3 + $0x10] sm:$0xff] %vm467_vm1, %v741_v55  ;;  %v746_v56 = vpop.permute.xlu1 %745 }
 0x8dd   :  { %748 = vst.msk [vmem:[#allocation3 + $0x28] sm:$0xff] %vm473_vm2, %v746_v56  ;;  %v749_v57 = vsel %vm467_vm1, %v741_v55, %v746_v56 }
 0x8de   :  { %2823 = vmatmul.mubr.msk.f32.vlgmr.msra.gmra.mrb[4].mxu1 %vm183_vm0, %v749_v57 }
 0x8df   :  { %2998 = vmatpush1.bf16.msra.mxu1 %v3797_v13  ;;  %1091 = vmatprep.mubr.f32.mxu1 %v3646_v0 }
 0x8e0   :  { %3000 = vmatprep.subr.bf16.mxu1 %v3801_v22 }
 0x8e3   :  { %3002 = vmatpush1.bf16.msra.mxu1 %v3803_v26 }
 0x8e4   :  { %3004 = vmatprep.subr.bf16.mxu1 %v3806_v35 }
 0x8e7   :  { %3006 = vmatpush1.bf16.msra.mxu1 %v3809_v39 }
 0x8e8   :  { %3008 = vmatprep.subr.bf16.mxu1 %v3812_v44 }
 0x8eb   :  { %3010 = vmatpush1.bf16.msra.mxu1 %v3815_v48 }
 0x8ec   :  { %3028 = vmatprep.subr.bf16.mxu1 %v3795_v9 }
 0x9b1   :  { %v819_v60 = vpop.f32.mrb[4].mxu1 }
 0x9b2   :  { %v825_v62 = vadd.f32 %v819_v60, %v3876_v19  ;;  %v821_v63 = vpop.f32.mrb[5].mxu1 }
 0x9b3   :  { %v827_v2 = vadd.f32 %v821_v63, %v3883_v28 }
 0x9b4   :  { %3264 = vtanh.f32 %v825_v62  ;;  %v2824_v1 = vmul.f32 -1.442695, %v825_v62 }
 0x9b5   :  { %3266 = vtanh.f32 %v827_v2  ;;  %v2825_v6 = vmul.f32 -1.442695, %v827_v2 }
 0x9b6   :  { %3268 = vpow2.f32 %v2824_v1 }
 0x9b7   :  { %3270 = vpow2.f32 %v2825_v6 }
 0x9be   :  { %v3265_v3 = vpop.eup %3264 }
 0x9bf   :  { %v3267_v4 = vpop.eup %3266  ;;  %837 = vrot.lane.b32.xlu0 %v3265_v3, %s3647_s2 }
 0x9c0   :  { %861 = vrot.lane.b32.xlu1 %v3267_v4, %s3647_s2  ;;  %v3269_v7 = vpop.eup %3268 }
 0x9c1   :  { %v3271_v9 = vpop.eup %3270  ;;  %v831_v8 = vadd.f32 1.0, %v3269_v7 }
 0x9c2   :  { %v855_v11 = vadd.f32 1.0, %v3271_v9 }
 0x9c3   :  { %3272 = vrcp.f32 %v831_v8 }
 0x9c4   :  { %3274 = vrcp.f32 %v855_v11 }
 0x9cd   :  { %v3273_v19 = vpop.eup %3272 }
 0x9ce   :  { %v3275_v14 = vpop.eup %3274  ;;  %v835_v23 = vmul.f32 %v3273_v19, %v708_v10 }
 0x9cf   :  { %v859_v27 = vmul.f32 %v3275_v14, %v732_v47 }
 0xa31   :  { %v838_v28 = vpop.permute.xlu0 %837 }
 0xa32   :  { %v840_v16 = vmul.f32 %v3273_v19, %v838_v28  ;;  %v862_v18 = vpop.permute.xlu1 %861 }
 0xa33   :  { %v864_v20 = vmul.f32 %v3275_v14, %v862_v18 }
 0xa34   :  { %842 = vrot.lane.b32.xlu0 %v840_v16, %s3647_s2 }
 0xa35   :  { %866 = vrot.lane.b32.xlu1 %v864_v20, %s3647_s2 }
 0xaa6   :  { %v843_v24 = vpop.permute.xlu0 %842 }
 0xaa7   :  { %v845_v29 = vadd.f32 %v843_v24, %v835_v23  ;;  %v867_v31 = vpop.permute.xlu1 %866 }
 0xaa8   :  { %v869_v33 = vadd.f32 %v867_v31, %v859_v27 }
 0xaa9   :  { %3276 = vtanh.f32 %v845_v29 }
 0xaaa   :  { %3278 = vtanh.f32 %v869_v33 }
 0xab3   :  { %v3277_v15 = vpop.eup %3276 }
 0xab4   :  { %v3279_v32 = vpop.eup %3278  ;;  %848 = vrot.lane.b32.xlu0 %v3277_v15, %s3647_s2 }
 0xab5   :  { %872 = vrot.lane.b32.xlu1 %v3279_v32, %s3647_s2 }
 0xb26   :  { %v849_v36 = vpop.permute.xlu0 %848 }
 0xb27   :  { %v851_v38 = vmul.f32 %v3273_v19, %v849_v36  ;;  %v873_v41 = vpop.permute.xlu1 %872 }
 0xb28   :  { %v875_v42 = vmul.f32 %v3275_v14, %v873_v41 }
 0xb29   :  { %877 = vrot.lane.b32.xlu0 %v851_v38, %s3648_s4 }
 0xb2a   :  { %882 = vrot.lane.b32.xlu1 %v875_v42, %s3649_s24 }
 0xb9b   :  { %v878_v43 = vpop.permute.xlu0 %877 }
 0xb9c   :  { %880 = vst.msk [vmem:[#allocation3 + $0x18] sm:$0xff] %vm467_vm1, %v878_v43  ;;  %v883_v45 = vpop.permute.xlu1 %882 }
 0xb9d   :  { %885 = vst.msk [vmem:[#allocation3 + $0x20] sm:$0xff] %vm473_vm2, %v883_v45  ;;  %v886_v46 = vsel %vm467_vm1, %v878_v43, %v883_v45 }
 0xb9e   :  { %2826 = vmatmul.mubr.msk.f32.vlgmr.msra.gmra.mrb[18].mxu0 %vm183_vm0, %v886_v46 }
 0xb9f   :  { %3014 = vmatpush1.bf16.msra.mxu0 %v3797_v13  ;;  %1228 = vmatprep.mubr.f32.mxu0 %v3646_v0 }
 0xba0   :  { %3016 = vmatprep.subr.bf16.mxu0 %v3801_v22 }
 0xba3   :  { %3018 = vmatpush1.bf16.msra.mxu0 %v3803_v26 }
 0xba4   :  { %3020 = vmatprep.subr.bf16.mxu0 %v3806_v35 }
 0xba7   :  { %3022 = vmatpush1.bf16.msra.mxu0 %v3809_v39 }
 0xba8   :  { %3024 = vmatprep.subr.bf16.mxu0 %v3812_v44 }
 0xbab   :  { %3026 = vmatpush1.bf16.msra.mxu0 %v3815_v48 }
 0xc71   :  { %v956_v10 = vpop.f32.mrb[18].mxu0 }
 0xc72   :  { %v962_v37 = vadd.f32 %v956_v10, %v3881_v25  ;;  %v958_v47 = vpop.f32.mrb[19].mxu0 }
 0xc73   :  { %v964_v49 = vadd.f32 %v958_v47, %v3878_v21 }
 0xc74   :  { %3280 = vtanh.f32 %v962_v37  ;;  %v2827_v52 = vmul.f32 -1.442695, %v962_v37 }
 0xc75   :  { %3282 = vtanh.f32 %v964_v49  ;;  %v2828_v53 = vmul.f32 -1.442695, %v964_v49 }
 0xc76   :  { %3284 = vpow2.f32 %v2827_v52 }
 0xc77   :  { %3286 = vpow2.f32 %v2828_v53 }
 0xc7e   :  { %v3281_v50 = vpop.eup %3280 }
 0xc7f   :  { %v3283_v51 = vpop.eup %3282  ;;  %974 = vrot.lane.b32.xlu0 %v3281_v50, %s3647_s2 }
 0xc80   :  { %998 = vrot.lane.b32.xlu1 %v3283_v51, %s3647_s2  ;;  %v3285_v54 = vpop.eup %3284 }
 0xc81   :  { %v3287_v55 = vpop.eup %3286  ;;  %v968_v56 = vadd.f32 1.0, %v3285_v54 }
 0xc82   :  { %v992_v57 = vadd.f32 1.0, %v3287_v55 }
 0xc83   :  { %3288 = vrcp.f32 %v968_v56 }
 0xc84   :  { %3290 = vrcp.f32 %v992_v57 }
 0xc8d   :  { %v3289_v25 = vpop.eup %3288 }
 0xc8e   :  { %v3291_v60 = vpop.eup %3290  ;;  %v972_v3 = vmul.f32 %v3289_v25, %v845_v29 }
 0xc8f   :  { %v996_v1 = vmul.f32 %v3291_v60, %v869_v33 }
 0xcf1   :  { %v975_v21 = vpop.permute.xlu0 %974 }
 0xcf2   :  { %v977_v62 = vmul.f32 %v3289_v25, %v975_v21  ;;  %v999_v63 = vpop.permute.xlu1 %998 }
 0xcf3   :  { %v1001_v2 = vmul.f32 %v3291_v60, %v999_v63 }
 0xcf4   :  { %979 = vrot.lane.b32.xlu0 %v977_v62, %s3647_s2 }
 0xcf5   :  { %1003 = vrot.lane.b32.xlu1 %v1001_v2, %s3647_s2 }
 0xd66   :  { %v980_v4 = vpop.permute.xlu0 %979 }
 0xd67   :  { %v982_v6 = vadd.f32 %v980_v4, %v972_v3  ;;  %v1004_v7 = vpop.permute.xlu1 %1003 }
 0xd68   :  { %v1006_v9 = vadd.f32 %v1004_v7, %v996_v1 }
 0xd69   :  { %3292 = vtanh.f32 %v982_v6 }
 0xd6a   :  { %3294 = vtanh.f32 %v1006_v9 }
 0xd73   :  { %v3293_v8 = vpop.eup %3292 }
 0xd74   :  { %v3295_v11 = vpop.eup %3294  ;;  %985 = vrot.lane.b32.xlu0 %v3293_v8, %s3647_s2 }
 0xd75   :  { %1009 = vrot.lane.b32.xlu1 %v3295_v11, %s3647_s2 }
 0xde6   :  { %v986_v19 = vpop.permute.xlu0 %985 }
 0xde7   :  { %v988_v28 = vmul.f32 %v3289_v25, %v986_v19  ;;  %v1010_v14 = vpop.permute.xlu1 %1009 }
 0xde8   :  { %v1012_v16 = vmul.f32 %v3291_v60, %v1010_v14 }
 0xde9   :  { %1014 = vrot.lane.b32.xlu0 %v988_v28, %s3648_s4 }
 0xdea   :  { %1019 = vrot.lane.b32.xlu1 %v1012_v16, %s3649_s24 }
 0xe5b   :  { %v1015_v18 = vpop.permute.xlu0 %1014 }
 0xe5c   :  { %1017 = vst.msk [vmem:[#allocation3 + $0x20] sm:$0xff] %vm467_vm1, %v1015_v18  ;;  %v1020_v20 = vpop.permute.xlu1 %1019 }
 0xe5d   :  { %1022 = vst.msk [vmem:[#allocation3 + $0x18] sm:$0xff] %vm473_vm2, %v1020_v20  ;;  %v1023_v23 = vsel %vm467_vm1, %v1015_v18, %v1020_v20 }
 0xe5e   :  { %2829 = vmatmul.mubr.msk.f32.vlgmr.msra.gmra.mrb[6].mxu1 %vm183_vm0, %v1023_v23 }
 0xe5f   :  { %3030 = vmatpush1.bf16.msra.mxu1 %v3797_v13  ;;  %1365 = vmatprep.mubr.f32.mxu1 %v3646_v0 }
 0xe60   :  { %3032 = vmatprep.subr.bf16.mxu1 %v3801_v22 }
 0xe63   :  { %3034 = vmatpush1.bf16.msra.mxu1 %v3803_v26 }
 0xe64   :  { %3036 = vmatprep.subr.bf16.mxu1 %v3806_v35 }
 0xe67   :  { %3038 = vmatpush1.bf16.msra.mxu1 %v3809_v39 }
 0xe68   :  { %3040 = vmatprep.subr.bf16.mxu1 %v3812_v44 }
 0xe6b   :  { %3042 = vmatpush1.bf16.msra.mxu1 %v3815_v48 }
 0xf31   :  { %v1093_v24 = vpop.f32.mrb[6].mxu1 }
 0xf32   :  { %v1099_v27 = vadd.f32 %v1093_v24, %v3885_v30  ;;  %v1095_v29 = vpop.f32.mrb[7].mxu1 }
 0xf33   :  { %v1101_v13 = vadd.f32 %v1095_v29, %v3874_v17 }
 0xf34   :  { %3296 = vtanh.f32 %v1099_v27  ;;  %v2830_v26 = vmul.f32 -1.442695, %v1099_v27 }
 0xf35   :  { %3298 = vtanh.f32 %v1101_v13  ;;  %v2831_v35 = vmul.f32 -1.442695, %v1101_v13 }
 0xf36   :  { %3300 = vpow2.f32 %v2830_v26 }
 0xf37   :  { %3302 = vpow2.f32 %v2831_v35 }
 0xf3e   :  { %v3297_v31 = vpop.eup %3296 }
 0xf3f   :  { %v3299_v22 = vpop.eup %3298  ;;  %1111 = vrot.lane.b32.xlu0 %v3297_v31, %s3647_s2 }
 0xf40   :  { %1135 = vrot.lane.b32.xlu1 %v3299_v22, %s3647_s2  ;;  %v3301_v39 = vpop.eup %3300 }
 0xf41   :  { %v3303_v44 = vpop.eup %3302  ;;  %v1105_v48 = vadd.f32 1.0, %v3301_v39 }
 0xf42   :  { %v1129_v33 = vadd.f32 1.0, %v3303_v44 }
 0xf43   :  { %3304 = vrcp.f32 %v1105_v48 }
 0xf44   :  { %3306 = vrcp.f32 %v1129_v33 }
 0xf4d   :  { %v3305_v30 = vpop.eup %3304 }
 0xf4e   :  { %v3307_v15 = vpop.eup %3306  ;;  %v1109_v41 = vmul.f32 %v3305_v30, %v982_v6 }
 0xf4f   :  { %v1133_v43 = vmul.f32 %v3307_v15, %v1006_v9 }
 0xfb1   :  { %v1112_v17 = vpop.permute.xlu0 %1111 }
 0xfb2   :  { %v1114_v32 = vmul.f32 %v3305_v30, %v1112_v17  ;;  %v1136_v36 = vpop.permute.xlu1 %1135 }
 0xfb3   :  { %v1138_v38 = vmul.f32 %v3307_v15, %v1136_v36 }
 0xfb4   :  { %1116 = vrot.lane.b32.xlu0 %v1114_v32, %s3647_s2 }
 0xfb5   :  { %1140 = vrot.lane.b32.xlu1 %v1138_v38, %s3647_s2 }
0x1026   :  { %v1117_v42 = vpop.permute.xlu0 %1116 }
0x1027   :  { %v1119_v45 = vadd.f32 %v1117_v42, %v1109_v41  ;;  %v1141_v46 = vpop.permute.xlu1 %1140 }
0x1028   :  { %v1143_v10 = vadd.f32 %v1141_v46, %v1133_v43 }
0x1029   :  { %3308 = vtanh.f32 %v1119_v45 }
0x102a   :  { %3310 = vtanh.f32 %v1143_v10 }
0x1033   :  { %v3309_v37 = vpop.eup %3308 }
0x1034   :  { %v3311_v47 = vpop.eup %3310  ;;  %1122 = vrot.lane.b32.xlu0 %v3309_v37, %s3647_s2 }
0x1035   :  { %1146 = vrot.lane.b32.xlu1 %v3311_v47, %s3647_s2 }
0x10a6   :  { %v1123_v49 = vpop.permute.xlu0 %1122 }
0x10a7   :  { %v1125_v50 = vmul.f32 %v3305_v30, %v1123_v49  ;;  %v1147_v51 = vpop.permute.xlu1 %1146 }
0x10a8   :  { %v1149_v52 = vmul.f32 %v3307_v15, %v1147_v51 }
0x10a9   :  { %1151 = vrot.lane.b32.xlu0 %v1125_v50, %s3648_s4 }
0x10aa   :  { %1156 = vrot.lane.b32.xlu1 %v1149_v52, %s3649_s24 }
0x111b   :  { %v1152_v53 = vpop.permute.xlu0 %1151 }
0x111c   :  { %1154 = vst.msk [vmem:[#allocation3 + $0x28] sm:$0xff] %vm467_vm1, %v1152_v53  ;;  %v1157_v54 = vpop.permute.xlu1 %1156 }
0x111d   :  { %1159 = vst.msk [vmem:[#allocation3 + $0x10] sm:$0xff] %vm473_vm2, %v1157_v54  ;;  %v1160_v55 = vsel %vm467_vm1, %v1152_v53, %v1157_v54  ;;  %v1443_v53 = vld [vmem:[#allocation10 + $0x8] sm:$0xff]  ;;  %v1445_v54 = vld [vmem:[#allocation10 + $0x18] sm:$0xff] }
0x111e   :  { %2832 = vmatmul.mubr.msk.f32.vlgmr.msra.gmra.mrb[20].mxu0 %vm183_vm0, %v1160_v55  ;;  %v1442_v55 = vld [vmem:[#allocation10] sm:$0xff] }
0x111f   :  { %1558 = vmatprep.mubr.f32.mxu0 %v3646_v0 }
0x11f1   :  { %v1230_v56 = vpop.f32.mrb[20].mxu0 }
0x11f2   :  { %v1236_v57 = vadd.f32 %v1230_v56, %v3889_v34  ;;  %v1232_v25 = vpop.f32.mrb[21].mxu0  ;;  %v3043_v56 = vpack.c.bf16 %v1445_v54, %v1443_v53  ;;  %v1438_v53 = vld [vmem:[#allocation3 + $0x20] sm:$0xff]  ;;  %v1439_v54 = vld [vmem:[#allocation3 + $0x28] sm:$0xff] }
0x11f3   :  { %v1238_v21 = vadd.f32 %v1232_v25, %v3870_v12  ;;  %v132_v25 = vld [vmem:[#allocation12 + $0x8] sm:$0xff] }
0x11f4   :  { %3312 = vtanh.f32 %v1236_v57  ;;  %v2833_v63 = vmul.f32 -1.442695, %v1236_v57  ;;  %v1444_v57 = vld [vmem:[#allocation10 + $0x10] sm:$0xff]  ;;  %3044 = vmatprep.subr.bf16.mxu0 %v3043_v56 }
0x11f5   :  { %3314 = vtanh.f32 %v1238_v21  ;;  %v2834_v2 = vmul.f32 -1.442695, %v1238_v21  ;;  %v134_v21 = vld [vmem:[#allocation12 + $0x18] sm:$0xff] }
0x11f6   :  { %3316 = vpow2.f32 %v2833_v63  ;;  %v131_v63 = vld [vmem:[#allocation12] sm:$0xff] }
0x11f7   :  { %3318 = vpow2.f32 %v2834_v2  ;;  %v133_v2 = vld [vmem:[#allocation12 + $0x10] sm:$0xff] }
0x11fe   :  { %v3313_v60 = vpop.eup %3312 }
0x11ff   :  { %v3315_v62 = vpop.eup %3314  ;;  %1248 = vrot.lane.b32.xlu0 %v3313_v60, %s3647_s2  ;;  %v3045_v60 = vpack.c.bf16 %v1444_v57, %v1442_v55 }
0x1200   :  { %1272 = vrot.lane.b32.xlu1 %v3315_v62, %s3647_s2  ;;  %v3317_v3 = vpop.eup %3316  ;;  %v4053_v62 = vpack.c.bf16 %v134_v21, %v132_v25  ;;  %v1458_v21 = vld [vmem:[%s4311_s5] sm:$0x3] }
0x1201   :  { %v3319_v4 = vpop.eup %3318  ;;  %v1242_v1 = vadd.f32 1.0, %v3317_v3  ;;  %v1447_v3 = vld [vmem:[#allocation10 + $0x28] sm:$0xff]  ;;  %3046 = vmatpush1.bf16.msra.mxu0 %v3045_v60  ;;  %v1463_v60 = vrot.slane %v1458_v21, %v175_v59 }
0x1202   :  { %v1266_v6 = vadd.f32 1.0, %v3319_v4  ;;  %v4055_v4 = vpack.c.bf16 %v133_v2, %v131_v63  ;;  %3060 = vmatprep.subr.bf16.mxu1 %v4053_v62  ;;  %v1467_v63 = vrot.slane %v1458_v21, %v179_v61 }
0x1203   :  { %3320 = vrcp.f32 %v1242_v1  ;;  %v1449_v1 = vld [vmem:[#allocation10 + $0x38] sm:$0xff] }
0x1204   :  { %3322 = vrcp.f32 %v1266_v6  ;;  %v1446_v6 = vld [vmem:[#allocation10 + $0x20] sm:$0xff] }
0x120d   :  { %v3321_v34 = vpop.eup %3320 }
0x120e   :  { %v3323_v7 = vpop.eup %3322  ;;  %v1246_v19 = vmul.f32 %v3321_v34, %v1119_v45 }
0x120f   :  { %v1270_v14 = vmul.f32 %v3323_v7, %v1143_v10 }
0x1271   :  { %v1249_v12 = vpop.permute.xlu0 %1248 }
0x1272   :  { %v1251_v9 = vmul.f32 %v3321_v34, %v1249_v12  ;;  %v1273_v8 = vpop.permute.xlu1 %1272  ;;  %v3047_v12 = vpack.c.bf16 %v1449_v1, %v1447_v3 }
0x1273   :  { %v1275_v11 = vmul.f32 %v3323_v7, %v1273_v8  ;;  %v138_v8 = vld [vmem:[#allocation12 + $0x38] sm:$0xff] }
0x1274   :  { %1253 = vrot.lane.b32.xlu0 %v1251_v9, %s3647_s2  ;;  %v136_v9 = vld [vmem:[#allocation12 + $0x28] sm:$0xff]  ;;  %3048 = vmatprep.subr.bf16.mxu0 %v3047_v12 }
0x1275   :  { %1277 = vrot.lane.b32.xlu1 %v1275_v11, %s3647_s2  ;;  %v4059_v11 = vpack.c.bf16 %v138_v8, %v136_v9 }
0x12e6   :  { %v1254_v28 = vpop.permute.xlu0 %1253 }
0x12e7   :  { %v1256_v16 = vadd.f32 %v1254_v28, %v1246_v19  ;;  %v1278_v18 = vpop.permute.xlu1 %1277 }
0x12e8   :  { %v1280_v20 = vadd.f32 %v1278_v18, %v1270_v14  ;;  %v135_v14 = vld [vmem:[#allocation12 + $0x20] sm:$0xff] }
0x12e9   :  { %3324 = vtanh.f32 %v1256_v16 }
0x12ea   :  { %3326 = vtanh.f32 %v1280_v20 }
0x12f3   :  { %v3325_v23 = vpop.eup %3324 }
0x12f4   :  { %v3327_v24 = vpop.eup %3326  ;;  %1259 = vrot.lane.b32.xlu0 %v3325_v23, %s3647_s2  ;;  %v1453_v23 = vld [vmem:[#allocation10 + $0x58] sm:$0xff] }
0x12f5   :  { %1283 = vrot.lane.b32.xlu1 %v3327_v24, %s3647_s2 }
0x1366   :  { %v1260_v27 = vpop.permute.xlu0 %1259 }
0x1367   :  { %v1262_v29 = vmul.f32 %v3321_v34, %v1260_v27  ;;  %v1284_v13 = vpop.permute.xlu1 %1283  ;;  %v1448_v34 = vld [vmem:[#allocation10 + $0x30] sm:$0xff]  ;;  %v1450_v27 = vld [vmem:[#allocation10 + $0x40] sm:$0xff] }
0x1368   :  { %v1286_v31 = vmul.f32 %v3323_v7, %v1284_v13  ;;  %v3049_v7 = vpack.c.bf16 %v1448_v34, %v1446_v6 }
0x1369   :  { %1288 = vrot.lane.b32.xlu0 %v1262_v29, %s3648_s4  ;;  %v1452_v29 = vld [vmem:[#allocation10 + $0x50] sm:$0xff] }
0x136a   :  { %1293 = vrot.lane.b32.xlu1 %v1286_v31, %s3649_s24  ;;  %3050 = vmatpush1.bf16.msra.mxu0 %v3049_v7  ;;  %v3053_v13 = vpack.c.bf16 %v1452_v29, %v1450_v27  ;;  %v140_v31 = vld [vmem:[#allocation12 + $0x48] sm:$0xff] }
0x13db   :  { %v1289_v22 = vpop.permute.xlu0 %1288 }
0x13dc   :  { %1291 = vst.msk [vmem:[#allocation3 + $0x30] sm:$0xff] %vm467_vm1, %v1289_v22  ;;  %v1294_v26 = vpop.permute.xlu1 %1293 }
0x13dd   :  { %1296 = vst.msk [vmem:[#allocation3 + $0x8] sm:$0xff] %vm473_vm2, %v1294_v26  ;;  %v1297_v35 = vsel %vm467_vm1, %v1289_v22, %v1294_v26  ;;  %v142_v22 = vld [vmem:[#allocation12 + $0x58] sm:$0xff] }
0x13de   :  { %2835 = vmatmul.mubr.msk.f32.vlgmr.msra.gmra.mrb[8].mxu1 %vm183_vm0, %v1297_v35  ;;  %v4067_v26 = vpack.c.bf16 %v142_v22, %v140_v31  ;;  %v139_v35 = vld [vmem:[#allocation12 + $0x40] sm:$0xff] }
0x13df   :  { %1687 = vmatprep.mubr.f32.mxu1 %v3646_v0  ;;  %3062 = vmatpush1.bf16.msra.mxu1 %v4055_v4 }
0x13e0   :  { %3064 = vmatprep.subr.bf16.mxu1 %v4059_v11 }
0x13e3   :  { %v1440_v55 = vld [vmem:[#allocation3 + $0x30] sm:$0xff] }
0x14b1   :  { %v1367_v39 = vpop.f32.mrb[8].mxu1 }
0x14b2   :  { %v1373_v44 = vadd.f32 %v1367_v39, %v3893_v40  ;;  %v1369_v48 = vpop.f32.mrb[9].mxu1  ;;  %v141_v39 = vld [vmem:[#allocation12 + $0x50] sm:$0xff] }
0x14b3   :  { %v1375_v33 = vadd.f32 %v1369_v48, %v3866_v5  ;;  %v4069_v48 = vpack.c.bf16 %v141_v39, %v139_v35 }
0x14b4   :  { %3328 = vtanh.f32 %v1373_v44  ;;  %v2836_v15 = vmul.f32 -1.442695, %v1373_v44  ;;  %v1455_v44 = vld [vmem:[#allocation10 + $0x68] sm:$0xff] }
0x14b5   :  { %3330 = vtanh.f32 %v1375_v33  ;;  %v2837_v32 = vmul.f32 -1.442695, %v1375_v33  ;;  %v1457_v33 = vld [vmem:[#allocation10 + $0x78] sm:$0xff] }
0x14b6   :  { %3332 = vpow2.f32 %v2836_v15  ;;  %v3055_v15 = vpack.c.bf16 %v1457_v33, %v1455_v44 }
0x14b7   :  { %3334 = vpow2.f32 %v2837_v32 }
0x14be   :  { %v3329_v30 = vpop.eup %3328 }
0x14bf   :  { %v3331_v17 = vpop.eup %3330  ;;  %1385 = vrot.lane.b32.xlu1 %v3329_v30, %s3647_s2  ;;  %v1454_v30 = vld [vmem:[#allocation10 + $0x60] sm:$0xff] }
0x14c0   :  { %1409 = vrot.lane.b32.xlu0 %v3331_v17, %s3647_s2  ;;  %v3333_v36 = vpop.eup %3332  ;;  %v1456_v17 = vld [vmem:[#allocation10 + $0x70] sm:$0xff] }
0x14c1   :  { %v3335_v38 = vpop.eup %3334  ;;  %v1379_v41 = vadd.f32 1.0, %v3333_v36  ;;  %v3057_v32 = vpack.c.bf16 %v1456_v17, %v1454_v30  ;;  %v144_v36 = vld [vmem:[#allocation12 + $0x68] sm:$0xff] }
0x14c2   :  { %v1403_v42 = vadd.f32 1.0, %v3335_v38  ;;  %v146_v38 = vld [vmem:[#allocation12 + $0x78] sm:$0xff] }
0x14c3   :  { %3336 = vrcp.f32 %v1379_v41  ;;  %v143_v41 = vld [vmem:[#allocation12 + $0x60] sm:$0xff] }
0x14c4   :  { %3338 = vrcp.f32 %v1403_v42  ;;  %v4073_v42 = vpack.c.bf16 %v146_v38, %v144_v36 }
0x14cd   :  { %v4043_v40 = vpop.eup %3336 }
0x14ce   :  { %v4045_v43 = vpop.eup %3338  ;;  %v1383_v37 = vmul.f32 %v4043_v40, %v1256_v16  ;;  %v137_v16 = vld [vmem:[#allocation12 + $0x30] sm:$0xff] }
0x14cf   :  { %v1407_v49 = vmul.f32 %v4045_v43, %v1280_v20  ;;  %v4064_v18 = vpack.c.bf16 %v137_v16, %v135_v14  ;;  %v1451_v20 = vld [vmem:[#allocation10 + $0x48] sm:$0xff] }
0x14d0   :  { %v3051_v24 = vpack.c.bf16 %v1453_v23, %v1451_v20 }
0x14d1   :  { %3066 = vmatpush1.bf16.msra.mxu1 %v4064_v18 }
0x14d2   :  { %3052 = vmatprep.subr.bf16.mxu0 %v3051_v24  ;;  %3068 = vmatprep.subr.bf16.mxu1 %v4067_v26 }
0x14d3   :  { %3054 = vmatpush1.bf16.msra.mxu0 %v3053_v13 }
0x14d4   :  { %3056 = vmatprep.subr.bf16.mxu0 %v3055_v15 }
0x14d5   :  { %3070 = vmatpush1.bf16.msra.mxu1 %v4069_v48 }
0x14d6   :  { %3072 = vmatprep.subr.bf16.mxu1 %v4073_v42 }
0x14d7   :  { %3058 = vmatpush1.bf16.msra.mxu0 %v3057_v32 }
0x14d8   :  { %3092 = vmatprep.subr.bf16.mxu0 %v4053_v62 }
0x1531   :  { %v1386_v5 = vpop.permute.xlu1 %1385 }
0x1532   :  { %v1388_v45 = vmul.f32 %v4043_v40, %v1386_v5  ;;  %v1410_v46 = vpop.permute.xlu0 %1409  ;;  %v145_v5 = vld [vmem:[#allocation12 + $0x70] sm:$0xff] }
0x1533   :  { %v1412_v10 = vmul.f32 %v4045_v43, %v1410_v46 }
0x1534   :  { %1390 = vrot.lane.b32.xlu1 %v1388_v45, %s3647_s2  ;;  %v4075_v45 = vpack.c.bf16 %v145_v5, %v143_v41 }
0x1535   :  { %1414 = vrot.lane.b32.xlu0 %v1412_v10, %s3647_s2 }
0x1536   :  { %3074 = vmatpush1.bf16.msra.mxu1 %v4075_v45 }
0x1537   :  { %3076 = vmatprep.subr.bf16.mxu1 %v4053_v62 }
0x1539   :  { %1688 = vmatmul.mubr.f32.vlgmr.msra.gmra.mrb[10].mxu1 %v3646_v0 }
0x153a   :  { %3078 = vmatpush1.bf16.msra.mxu1 %v4055_v4  ;;  %1822 = vmatprep.mubr.f32.mxu1 %v3646_v0 }
0x153b   :  { %3080 = vmatprep.subr.bf16.mxu1 %v4059_v11 }
0x153e   :  { %3082 = vmatpush1.bf16.msra.mxu1 %v4064_v18 }
0x153f   :  { %3084 = vmatprep.subr.bf16.mxu1 %v4067_v26 }
0x1542   :  { %3086 = vmatpush1.bf16.msra.mxu1 %v4069_v48 }
0x1543   :  { %3088 = vmatprep.subr.bf16.mxu1 %v4073_v42 }
0x1546   :  { %3090 = vmatpush1.bf16.msra.mxu1 %v4075_v45 }
0x1547   :  { %3108 = vmatprep.subr.bf16.mxu1 %v4053_v62 }
0x15a6   :  { %v1391_v47 = vpop.permute.xlu1 %1390 }
0x15a7   :  { %v1393_v50 = vadd.f32 %v1391_v47, %v1383_v37  ;;  %v1415_v51 = vpop.permute.xlu0 %1414 }
0x15a8   :  { %v1417_v52 = vadd.f32 %v1415_v51, %v1407_v49  ;;  %v1436_v51 = vld [vmem:[#allocation3 + $0x10] sm:$0xff] }
0x15a9   :  { %3340 = vtanh.f32 %v1393_v50  ;;  %v1435_v50 = vld [vmem:[#allocation3 + $0x8] sm:$0xff] }
0x15aa   :  { %3342 = vtanh.f32 %v1417_v52  ;;  %v1437_v52 = vld [vmem:[#allocation3 + $0x18] sm:$0xff] }
0x15b3   :  { %v3341_v19 = vpop.eup %3340 }
0x15b4   :  { %v3343_v28 = vpop.eup %3342  ;;  %1396 = vrot.lane.b32.xlu1 %v3341_v19, %s3647_s2 }
0x15b5   :  { %1420 = vrot.lane.b32.xlu0 %v3343_v28, %s3647_s2 }
0x160c   :  { %v1689_v57 = vpop.f32.mrb[10].mxu1 }
0x160d   :  { %v1691_v25 = vpop.f32.mrb[11].mxu1 }
0x1626   :  { %v1397_v46 = vpop.permute.xlu1 %1396 }
0x1627   :  { %v1399_v10 = vmul.f32 %v4043_v40, %v1397_v46  ;;  %v1421_v37 = vpop.permute.xlu0 %1420 }
0x1628   :  { %v1423_v47 = vmul.f32 %v4045_v43, %v1421_v37 }
0x1629   :  { %1425 = vrot.lane.b32.xlu1 %v1399_v10, %s3648_s4 }
0x162a   :  { %1430 = vrot.lane.b32.xlu0 %v1423_v47, %s3649_s24 }
0x169b   :  { %v1426_v40 = vpop.permute.xlu1 %1425 }
0x169c   :  { %1428 = vst.msk [vmem:[#allocation3 + $0x38] sm:$0xff] %vm467_vm1, %v1426_v40  ;;  %v1431_v43 = vpop.permute.xlu0 %1430 }
0x169d   :  { %1433 = vst.msk [vmem:[#allocation3] sm:$0xff] %vm473_vm2, %v1431_v43 }
0x16a3   :  { %v1441_v56 = vld [vmem:[#allocation3 + $0x38] sm:$0xff] }
0x16a4   :  { %v1434_v49 = vld [vmem:[#allocation3] sm:$0xff] }
0x16a5   :  { %2838 = vmatmul.mubr.msk.f32.vlgmr.msra.gmra.mrb[22].mxu0 %vm183_vm0, %v1434_v49 }
0x16a6   :  { %1564 = vmatprep.mubr.f32.mxu0 %v3646_v0  ;;  %3094 = vmatpush1.bf16.msra.mxu0 %v4055_v4 }
0x16a7   :  { %3096 = vmatprep.subr.bf16.mxu0 %v4059_v11 }
0x16a9   :  { %2839 = vmatmul.mubr.msk.f32.gmra.mrb[24].mxu0 %vm183_vm0, %v1435_v50 }
0x16aa   :  { %1570 = vmatprep.mubr.f32.mxu0 %v3646_v0  ;;  %3098 = vmatpush1.bf16.msra.mxu0 %v4064_v18 }
0x16ab   :  { %3100 = vmatprep.subr.bf16.mxu0 %v4067_v26 }
0x16ad   :  { %2840 = vmatmul.mubr.msk.f32.gmra.mrb[26].mxu0 %vm183_vm0, %v1436_v51 }
0x16ae   :  { %1576 = vmatprep.mubr.f32.mxu0 %v3646_v0  ;;  %3102 = vmatpush1.bf16.msra.mxu0 %v4069_v48 }
0x16af   :  { %3104 = vmatprep.subr.bf16.mxu0 %v4073_v42 }
0x16b1   :  { %2841 = vmatmul.mubr.msk.f32.gmra.mrb[28].mxu0 %vm183_vm0, %v1437_v52 }
0x16b2   :  { %1582 = vmatprep.mubr.f32.mxu0 %v3646_v0  ;;  %3106 = vmatpush1.bf16.msra.mxu0 %v4075_v45 }
0x16b3   :  { %3124 = vmatprep.subr.bf16.mxu0 %v4053_v62 }
0x16b5   :  { %2842 = vmatmul.mubr.msk.f32.gmra.mrb[30].mxu0 %vm183_vm0, %v1438_v53 }
0x16b6   :  { %1588 = vmatprep.mubr.f32.mxu0 %v3646_v0 }
0x16b9   :  { %2843 = vmatmul.mubr.msk.f32.gmra.mrb[32].mxu0 %vm183_vm0, %v1439_v54 }
0x16ba   :  { %1594 = vmatprep.mubr.f32.mxu0 %v3646_v0 }
0x16bd   :  { %2844 = vmatmul.mubr.msk.f32.gmra.mrb[34].mxu0 %vm183_vm0, %v1440_v55 }
0x16be   :  { %1600 = vmatprep.mubr.f32.mxu0 %v3646_v0 }
0x16c1   :  { %2845 = vmatmul.mubr.msk.f32.gmra.mrb[36].mxu0 %vm183_vm0, %v1441_v56 }
0x16c2   :  { %1957 = vmatprep.mubr.f32.mxu0 %v3646_v0 }
0x1778   :  { %v1560_v2 = vpop.f32.mrb[22].mxu0 }
0x1779   :  { %v1561_v3 = vadd.f32 %v1560_v2, %v1463_v60  ;;  %v1562_v1 = vpop.f32.mrb[23].mxu0 }
0x177a   :  { %v4128_v6 = vadd.f32 %v1562_v1, %v1467_v63 }
0x177b   :  { %v1695_v34 = vadd.f32 %v1689_v57, %v1561_v3 }
0x177c   :  { %v1566_v12 = vpop.f32.mrb[24].mxu0 }
0x177d   :  { %3344 = vtanh.f32 %v1695_v34  ;;  %v4130_v7 = vadd.f32 %v1566_v12, %v1463_v60  ;;  %v1568_v9 = vpop.f32.mrb[25].mxu0  ;;  %v2846_v46 = vmul.f32 -1.442695, %v1695_v34 }
0x177e   :  { %v4132_v8 = vadd.f32 %v1568_v9, %v1467_v63 }
0x1780   :  { %v1572_v19 = vpop.f32.mrb[26].mxu0 }
0x1781   :  { %v4134_v28 = vadd.f32 %v1572_v19, %v1463_v60  ;;  %v1574_v59 = vpop.f32.mrb[27].mxu0 }
0x1782   :  { %v4136_v14 = vadd.f32 %v1574_v59, %v1467_v63 }
0x1784   :  { %v1578_v58 = vpop.f32.mrb[28].mxu0 }
0x1785   :  { %v4138_v61 = vadd.f32 %v1578_v58, %v1463_v60  ;;  %v1580_v16 = vpop.f32.mrb[29].mxu0 }
0x1786   :  { %v4140_v20 = vadd.f32 %v1580_v16, %v1467_v63 }
0x1787   :  { %v3345_v23 = vpop.eup %3344 }
0x1788   :  { %1707 = vrot.lane.b32.xlu0 %v3345_v23, %s3647_s2  ;;  %v1584_v24 = vpop.f32.mrb[30].mxu0 }
0x1789   :  { %v4143_v27 = vadd.f32 %v1584_v24, %v1463_v60  ;;  %v1586_v29 = vpop.f32.mrb[31].mxu0 }
0x178a   :  { %v4145_v13 = vadd.f32 %v1586_v29, %v1467_v63 }
0x178c   :  { %v1590_v31 = vpop.f32.mrb[32].mxu0 }
0x178d   :  { %v4147_v22 = vadd.f32 %v1590_v31, %v1463_v60  ;;  %v1592_v35 = vpop.f32.mrb[33].mxu0 }
0x178e   :  { %v4149_v39 = vadd.f32 %v1592_v35, %v1467_v63 }
0x1790   :  { %v1596_v44 = vpop.f32.mrb[34].mxu0 }
0x1791   :  { %v4151_v33 = vadd.f32 %v1596_v44, %v1463_v60  ;;  %v1598_v30 = vpop.f32.mrb[35].mxu0 }
0x1792   :  { %v1599_v17 = vadd.f32 %v1598_v30, %v1467_v63 }
0x1794   :  { %v1602_v15 = vpop.f32.mrb[36].mxu0 }
0x1795   :  { %v4153_v32 = vadd.f32 %v1602_v15, %v1463_v60  ;;  %v1604_v36 = vpop.f32.mrb[37].mxu0 }
0x1796   :  { %v1605_v38 = vadd.f32 %v1604_v36, %v1467_v63 }
0x1798   :  { %v1697_v41 = vadd.f32 %v1691_v25, %v1605_v38 }
0x179a   :  { %3346 = vtanh.f32 %v1697_v41  ;;  %v2847_v47 = vmul.f32 -1.442695, %v1697_v41 }
0x179b   :  { %3348 = vpow2.f32 %v2846_v46 }
0x17a4   :  { %v3347_v5 = vpop.eup %3346 }
0x17a5   :  { %1731 = vrot.lane.b32.xlu1 %v3347_v5, %s3647_s2  ;;  %v3349_v10 = vpop.eup %3348 }
0x17a6   :  { %v1701_v37 = vadd.f32 1.0, %v3349_v10 }
0x17a8   :  { %3350 = vrcp.f32 %v1701_v37 }
0x17a9   :  { %3352 = vpow2.f32 %v2847_v47 }
0x17b2   :  { %v3351_v40 = vpop.eup %3350 }
0x17b3   :  { %v3353_v50 = vpop.eup %3352  ;;  %v1705_v55 = vmul.f32 0.0, %v3351_v40 }
0x17b4   :  { %v1725_v51 = vadd.f32 1.0, %v3353_v50 }
0x17b6   :  { %3354 = vrcp.f32 %v1725_v51 }
0x17c0   :  { %v3355_v52 = vpop.eup %3354 }
0x17c1   :  { %v1729_v21 = vmul.f32 0.0, %v3355_v52 }
0x17fa   :  { %v1708_v43 = vpop.permute.xlu0 %1707 }
0x17fb   :  { %v1710_v49 = vmul.f32 %v3351_v40, %v1708_v43 }
0x17fd   :  { %1712 = vrot.lane.b32.xlu0 %v1710_v49, %s3647_s2 }
0x1817   :  { %v1732_v53 = vpop.permute.xlu1 %1731 }
0x1818   :  { %v1734_v54 = vmul.f32 %v3355_v52, %v1732_v53 }
0x181a   :  { %1736 = vrot.lane.b32.xlu1 %v1734_v54, %s3647_s2 }
0x186f   :  { %v1713_v56 = vpop.permute.xlu0 %1712 }
0x1870   :  { %v1715_v57 = vadd.f32 %v1713_v56, %v1705_v55 }
0x1872   :  { %3356 = vtanh.f32 %v1715_v57 }
0x187c   :  { %v3357_v25 = vpop.eup %3356 }
0x187d   :  { %1718 = vrot.lane.b32.xlu0 %v3357_v25, %s3647_s2 }
0x188c   :  { %v1737_v60 = vpop.permute.xlu1 %1736 }
0x188d   :  { %v1739_v63 = vadd.f32 %v1737_v60, %v1729_v21 }
0x188f   :  { %3358 = vtanh.f32 %v1739_v63 }
0x1899   :  { %v3359_v2 = vpop.eup %3358 }
0x189a   :  { %1742 = vrot.lane.b32.xlu1 %v3359_v2, %s3647_s2 }
0x18ef   :  { %v1719_v3 = vpop.permute.xlu0 %1718 }
0x18f0   :  { %v1721_v1 = vmul.f32 %v3351_v40, %v1719_v3 }
0x18f2   :  { %1747 = vrot.lane.b32.xlu0 %v1721_v1, %s3648_s4 }
0x190c   :  { %v1743_v34 = vpop.permute.xlu1 %1742 }
0x190d   :  { %v1745_v12 = vmul.f32 %v3355_v52, %v1743_v34 }
0x190f   :  { %1751 = vrot.lane.b32.xlu1 %v1745_v12, %s3649_s24 }
0x1964   :  { %v1748_v9 = vpop.permute.xlu0 %1747 }
0x1981   :  { %v1752_v19 = vpop.permute.xlu1 %1751 }
0x1982   :  { %v1754_v59 = vsel %vm467_vm1, %v1748_v9, %v1752_v19 }
0x1983   :  { %2848 = vmatmul.mubr.msk.f32.vlgmr.msra.gmra.mrb[12].mxu1 %vm183_vm0, %v1754_v59 }
0x1984   :  { %3110 = vmatpush1.bf16.msra.mxu1 %v4055_v4  ;;  %2092 = vmatprep.mubr.f32.mxu1 %v3646_v0 }
0x1985   :  { %3112 = vmatprep.subr.bf16.mxu1 %v4059_v11 }
0x1988   :  { %3114 = vmatpush1.bf16.msra.mxu1 %v4064_v18 }
0x1989   :  { %3116 = vmatprep.subr.bf16.mxu1 %v4067_v26 }
0x198c   :  { %3118 = vmatpush1.bf16.msra.mxu1 %v4069_v48 }
0x198d   :  { %3120 = vmatprep.subr.bf16.mxu1 %v4073_v42 }
0x1990   :  { %3122 = vmatpush1.bf16.msra.mxu1 %v4075_v45 }
0x1991   :  { %3140 = vmatprep.subr.bf16.mxu1 %v4053_v62 }
0x1a56   :  { %v1824_v58 = vpop.f32.mrb[12].mxu1 }
0x1a57   :  { %v1830_v16 = vadd.f32 %v1824_v58, %v4130_v7  ;;  %v1826_v23 = vpop.f32.mrb[13].mxu1 }
0x1a58   :  { %v1832_v24 = vadd.f32 %v1826_v23, %v1599_v17 }
0x1a59   :  { %3360 = vtanh.f32 %v1830_v16  ;;  %v2849_v35 = vmul.f32 -1.442695, %v1830_v16 }
0x1a5a   :  { %3362 = vtanh.f32 %v1832_v24  ;;  %v2850_v44 = vmul.f32 -1.442695, %v1832_v24 }
0x1a5b   :  { %3364 = vpow2.f32 %v2849_v35 }
0x1a5c   :  { %3366 = vpow2.f32 %v2850_v44 }
0x1a63   :  { %v3361_v29 = vpop.eup %3360 }
0x1a64   :  { %v3363_v31 = vpop.eup %3362  ;;  %1842 = vrot.lane.b32.xlu0 %v3361_v29, %s3647_s2 }
0x1a65   :  { %1866 = vrot.lane.b32.xlu1 %v3363_v31, %s3647_s2  ;;  %v3365_v30 = vpop.eup %3364 }
0x1a66   :  { %v3367_v15 = vpop.eup %3366  ;;  %v1836_v36 = vadd.f32 1.0, %v3365_v30 }
0x1a67   :  { %v1860_v38 = vadd.f32 1.0, %v3367_v15 }
0x1a68   :  { %3368 = vrcp.f32 %v1836_v36 }
0x1a69   :  { %3370 = vrcp.f32 %v1860_v38 }
0x1a72   :  { %v3369_v7 = vpop.eup %3368 }
0x1a73   :  { %v3371_v41 = vpop.eup %3370  ;;  %v1840_v37 = vmul.f32 %v3369_v7, %v1715_v57 }
0x1a74   :  { %v1864_v40 = vmul.f32 %v3371_v41, %v1739_v63 }
0x1ad6   :  { %v1843_v17 = vpop.permute.xlu0 %1842 }
0x1ad7   :  { %v1845_v5 = vmul.f32 %v3369_v7, %v1843_v17  ;;  %v1867_v46 = vpop.permute.xlu1 %1866 }
0x1ad8   :  { %v1869_v10 = vmul.f32 %v3371_v41, %v1867_v46 }
0x1ad9   :  { %1847 = vrot.lane.b32.xlu0 %v1845_v5, %s3647_s2 }
0x1ada   :  { %1871 = vrot.lane.b32.xlu1 %v1869_v10, %s3647_s2 }
0x1b4b   :  { %v1848_v47 = vpop.permute.xlu0 %1847 }
0x1b4c   :  { %v1850_v43 = vadd.f32 %v1848_v47, %v1840_v37  ;;  %v1872_v49 = vpop.permute.xlu1 %1871 }
0x1b4d   :  { %v1874_v50 = vadd.f32 %v1872_v49, %v1864_v40 }
0x1b4e   :  { %3372 = vtanh.f32 %v1850_v43 }
0x1b4f   :  { %3374 = vtanh.f32 %v1874_v50 }
0x1b58   :  { %v3373_v51 = vpop.eup %3372 }
0x1b59   :  { %v3375_v52 = vpop.eup %3374  ;;  %1853 = vrot.lane.b32.xlu0 %v3373_v51, %s3647_s2 }
0x1b5a   :  { %1877 = vrot.lane.b32.xlu1 %v3375_v52, %s3647_s2 }
0x1bcb   :  { %v1854_v53 = vpop.permute.xlu0 %1853 }
0x1bcc   :  { %v1856_v54 = vmul.f32 %v3369_v7, %v1854_v53  ;;  %v1878_v55 = vpop.permute.xlu1 %1877 }
0x1bcd   :  { %v1880_v56 = vmul.f32 %v3371_v41, %v1878_v55 }
0x1bce   :  { %1882 = vrot.lane.b32.xlu0 %v1856_v54, %s3648_s4 }
0x1bcf   :  { %1886 = vrot.lane.b32.xlu1 %v1880_v56, %s3649_s24 }
0x1c40   :  { %v1883_v57 = vpop.permute.xlu0 %1882 }
0x1c41   :  { %v1887_v25 = vpop.permute.xlu1 %1886 }
0x1c42   :  { %v1889_v21 = vsel %vm467_vm1, %v1883_v57, %v1887_v25 }
0x1c43   :  { %2851 = vmatmul.mubr.msk.f32.vlgmr.msra.gmra.mrb[38].mxu0 %vm183_vm0, %v1889_v21 }
0x1c44   :  { %3126 = vmatpush1.bf16.msra.mxu0 %v4055_v4  ;;  %2227 = vmatprep.mubr.f32.mxu0 %v3646_v0 }
0x1c45   :  { %3128 = vmatprep.subr.bf16.mxu0 %v4059_v11 }
0x1c48   :  { %3130 = vmatpush1.bf16.msra.mxu0 %v4064_v18 }
0x1c49   :  { %3132 = vmatprep.subr.bf16.mxu0 %v4067_v26 }
0x1c4c   :  { %3134 = vmatpush1.bf16.msra.mxu0 %v4069_v48 }
0x1c4d   :  { %3136 = vmatprep.subr.bf16.mxu0 %v4073_v42 }
0x1c50   :  { %3138 = vmatpush1.bf16.msra.mxu0 %v4075_v45 }
0x1c51   :  { %3156 = vmatprep.subr.bf16.mxu0 %v4053_v62 }
0x1d16   :  { %v1959_v60 = vpop.f32.mrb[38].mxu0 }
0x1d17   :  { %v1965_v63 = vadd.f32 %v1959_v60, %v4134_v28  ;;  %v1961_v2 = vpop.f32.mrb[39].mxu0 }
0x1d18   :  { %v1967_v3 = vadd.f32 %v1961_v2, %v4149_v39 }
0x1d19   :  { %3376 = vtanh.f32 %v1965_v63  ;;  %v2852_v12 = vmul.f32 -1.442695, %v1965_v63 }
0x1d1a   :  { %3378 = vtanh.f32 %v1967_v3  ;;  %v2853_v9 = vmul.f32 -1.442695, %v1967_v3 }
0x1d1b   :  { %3380 = vpow2.f32 %v2852_v12 }
0x1d1c   :  { %3382 = vpow2.f32 %v2853_v9 }
0x1d23   :  { %v3377_v1 = vpop.eup %3376 }
0x1d24   :  { %v3379_v34 = vpop.eup %3378  ;;  %1977 = vrot.lane.b32.xlu0 %v3377_v1, %s3647_s2 }
0x1d25   :  { %2001 = vrot.lane.b32.xlu1 %v3379_v34, %s3647_s2  ;;  %v3381_v19 = vpop.eup %3380 }
0x1d26   :  { %v3383_v59 = vpop.eup %3382  ;;  %v1971_v58 = vadd.f32 1.0, %v3381_v19 }
0x1d27   :  { %v1995_v16 = vadd.f32 1.0, %v3383_v59 }
0x1d28   :  { %3384 = vrcp.f32 %v1971_v58 }
0x1d29   :  { %3386 = vrcp.f32 %v1995_v16 }
0x1d32   :  { %v3385_v28 = vpop.eup %3384 }
0x1d33   :  { %v3387_v23 = vpop.eup %3386  ;;  %v1975_v35 = vmul.f32 %v3385_v28, %v1850_v43 }
0x1d34   :  { %v1999_v30 = vmul.f32 %v3387_v23, %v1874_v50 }
0x1d96   :  { %v1978_v39 = vpop.permute.xlu0 %1977 }
0x1d97   :  { %v1980_v24 = vmul.f32 %v3385_v28, %v1978_v39  ;;  %v2002_v29 = vpop.permute.xlu1 %2001 }
0x1d98   :  { %v2004_v31 = vmul.f32 %v3387_v23, %v2002_v29 }
0x1d99   :  { %1982 = vrot.lane.b32.xlu0 %v1980_v24, %s3647_s2 }
0x1d9a   :  { %2006 = vrot.lane.b32.xlu1 %v2004_v31, %s3647_s2 }
0x1e0b   :  { %v1983_v44 = vpop.permute.xlu0 %1982 }
0x1e0c   :  { %v1985_v15 = vadd.f32 %v1983_v44, %v1975_v35  ;;  %v2007_v36 = vpop.permute.xlu1 %2006 }
0x1e0d   :  { %v2009_v38 = vadd.f32 %v2007_v36, %v1999_v30 }
0x1e0e   :  { %3388 = vtanh.f32 %v1985_v15 }
0x1e0f   :  { %3390 = vtanh.f32 %v2009_v38 }
0x1e18   :  { %v3389_v7 = vpop.eup %3388 }
0x1e19   :  { %v3391_v17 = vpop.eup %3390  ;;  %1988 = vrot.lane.b32.xlu0 %v3389_v7, %s3647_s2 }
0x1e1a   :  { %2012 = vrot.lane.b32.xlu1 %v3391_v17, %s3647_s2 }
0x1e8b   :  { %v1989_v41 = vpop.permute.xlu0 %1988 }
0x1e8c   :  { %v1991_v5 = vmul.f32 %v3385_v28, %v1989_v41  ;;  %v2013_v46 = vpop.permute.xlu1 %2012 }
0x1e8d   :  { %v2015_v10 = vmul.f32 %v3387_v23, %v2013_v46 }
0x1e8e   :  { %2017 = vrot.lane.b32.xlu0 %v1991_v5, %s3648_s4 }
0x1e8f   :  { %2021 = vrot.lane.b32.xlu1 %v2015_v10, %s3649_s24 }
0x1f00   :  { %v2018_v37 = vpop.permute.xlu0 %2017 }
0x1f01   :  { %v2022_v47 = vpop.permute.xlu1 %2021 }
0x1f02   :  { %v2024_v40 = vsel %vm467_vm1, %v2018_v37, %v2022_v47 }
0x1f03   :  { %2854 = vmatmul.mubr.msk.f32.vlgmr.msra.gmra.mrb[14].mxu1 %vm183_vm0, %v2024_v40 }
0x1f04   :  { %3142 = vmatpush1.bf16.msra.mxu1 %v4055_v4  ;;  %2362 = vmatprep.mubr.f32.mxu1 %v3646_v0 }
0x1f05   :  { %3144 = vmatprep.subr.bf16.mxu1 %v4059_v11 }
0x1f08   :  { %3146 = vmatpush1.bf16.msra.mxu1 %v4064_v18 }
0x1f09   :  { %3148 = vmatprep.subr.bf16.mxu1 %v4067_v26 }
0x1f0c   :  { %3150 = vmatpush1.bf16.msra.mxu1 %v4069_v48 }
0x1f0d   :  { %3152 = vmatprep.subr.bf16.mxu1 %v4073_v42 }
0x1f10   :  { %3154 = vmatpush1.bf16.msra.mxu1 %v4075_v45 }
0x1f11   :  { %3172 = vmatprep.subr.bf16.mxu1 %v4053_v62 }
0x1fd6   :  { %v2094_v43 = vpop.f32.mrb[14].mxu1 }
0x1fd7   :  { %v2100_v49 = vadd.f32 %v2094_v43, %v4138_v61  ;;  %v2096_v50 = vpop.f32.mrb[15].mxu1 }
0x1fd8   :  { %v2102_v51 = vadd.f32 %v2096_v50, %v4145_v13 }
0x1fd9   :  { %3392 = vtanh.f32 %v2100_v49  ;;  %v2855_v54 = vmul.f32 -1.442695, %v2100_v49 }
0x1fda   :  { %3394 = vtanh.f32 %v2102_v51  ;;  %v2856_v55 = vmul.f32 -1.442695, %v2102_v51 }
0x1fdb   :  { %3396 = vpow2.f32 %v2855_v54 }
0x1fdc   :  { %3398 = vpow2.f32 %v2856_v55 }
0x1fe3   :  { %v3393_v52 = vpop.eup %3392 }
0x1fe4   :  { %v3395_v53 = vpop.eup %3394  ;;  %2112 = vrot.lane.b32.xlu0 %v3393_v52, %s3647_s2 }
0x1fe5   :  { %2136 = vrot.lane.b32.xlu1 %v3395_v53, %s3647_s2  ;;  %v3397_v56 = vpop.eup %3396 }
0x1fe6   :  { %v3399_v62 = vpop.eup %3398  ;;  %v2106_v57 = vadd.f32 1.0, %v3397_v56 }
0x1fe7   :  { %v2130_v25 = vadd.f32 1.0, %v3399_v62 }
0x1fe8   :  { %3400 = vrcp.f32 %v2106_v57 }
0x1fe9   :  { %3402 = vrcp.f32 %v2130_v25 }
0x1ff2   :  { %v3401_v61 = vpop.eup %3400 }
0x1ff3   :  { %v3403_v21 = vpop.eup %3402  ;;  %v2110_v3 = vmul.f32 %v3401_v61, %v1985_v15 }
0x1ff4   :  { %v2134_v34 = vmul.f32 %v3403_v21, %v2009_v38 }
0x2056   :  { %v2113_v13 = vpop.permute.xlu0 %2112 }
0x2057   :  { %v2115_v60 = vmul.f32 %v3401_v61, %v2113_v13  ;;  %v2137_v63 = vpop.permute.xlu1 %2136 }
0x2058   :  { %v2139_v2 = vmul.f32 %v3403_v21, %v2137_v63 }
0x2059   :  { %2117 = vrot.lane.b32.xlu0 %v2115_v60, %s3647_s2 }
0x205a   :  { %2141 = vrot.lane.b32.xlu1 %v2139_v2, %s3647_s2 }
0x20cb   :  { %v2118_v1 = vpop.permute.xlu0 %2117 }
0x20cc   :  { %v2120_v12 = vadd.f32 %v2118_v1, %v2110_v3  ;;  %v2142_v9 = vpop.permute.xlu1 %2141 }
0x20cd   :  { %v2144_v19 = vadd.f32 %v2142_v9, %v2134_v34 }
0x20ce   :  { %3404 = vtanh.f32 %v2120_v12 }
0x20cf   :  { %3406 = vtanh.f32 %v2144_v19 }
0x20d8   :  { %v3405_v59 = vpop.eup %3404 }
0x20d9   :  { %v3407_v58 = vpop.eup %3406  ;;  %2123 = vrot.lane.b32.xlu0 %v3405_v59, %s3647_s2 }
0x20da   :  { %2147 = vrot.lane.b32.xlu1 %v3407_v58, %s3647_s2 }
0x214b   :  { %v2124_v16 = vpop.permute.xlu0 %2123 }
0x214c   :  { %v2126_v28 = vmul.f32 %v3401_v61, %v2124_v16  ;;  %v2148_v39 = vpop.permute.xlu1 %2147 }
0x214d   :  { %v2150_v23 = vmul.f32 %v3403_v21, %v2148_v39 }
0x214e   :  { %2152 = vrot.lane.b32.xlu0 %v2126_v28, %s3648_s4 }
0x214f   :  { %2156 = vrot.lane.b32.xlu1 %v2150_v23, %s3649_s24 }
0x21c0   :  { %v2153_v24 = vpop.permute.xlu0 %2152 }
0x21c1   :  { %v2157_v29 = vpop.permute.xlu1 %2156 }
0x21c2   :  { %v2159_v31 = vsel %vm467_vm1, %v2153_v24, %v2157_v29 }
0x21c3   :  { %2857 = vmatmul.mubr.msk.f32.vlgmr.msra.gmra.mrb[40].mxu0 %vm183_vm0, %v2159_v31 }
0x21c4   :  { %3158 = vmatpush1.bf16.msra.mxu0 %v4055_v4  ;;  %2497 = vmatprep.mubr.f32.mxu0 %v3646_v0 }
0x21c5   :  { %3160 = vmatprep.subr.bf16.mxu0 %v4059_v11 }
0x21c8   :  { %3162 = vmatpush1.bf16.msra.mxu0 %v4064_v18 }
0x21c9   :  { %3164 = vmatprep.subr.bf16.mxu0 %v4067_v26 }
0x21cc   :  { %3166 = vmatpush1.bf16.msra.mxu0 %v4069_v48 }
0x21cd   :  { %3168 = vmatprep.subr.bf16.mxu0 %v4073_v42 }
0x21d0   :  { %3170 = vmatpush1.bf16.msra.mxu0 %v4075_v45 }
0x2296   :  { %v2229_v35 = vpop.f32.mrb[40].mxu0 }
0x2297   :  { %v2235_v44 = vadd.f32 %v2229_v35, %v4143_v27  ;;  %v2231_v30 = vpop.f32.mrb[41].mxu0 }
0x2298   :  { %v2237_v15 = vadd.f32 %v2231_v30, %v4140_v20 }
0x2299   :  { %3408 = vtanh.f32 %v2235_v44  ;;  %v2858_v7 = vmul.f32 -1.442695, %v2235_v44 }
0x229a   :  { %3410 = vtanh.f32 %v2237_v15  ;;  %v2859_v17 = vmul.f32 -1.442695, %v2237_v15 }
0x229b   :  { %3412 = vpow2.f32 %v2858_v7 }
0x229c   :  { %3414 = vpow2.f32 %v2859_v17 }
0x22a3   :  { %v3409_v36 = vpop.eup %3408 }
0x22a4   :  { %v3411_v38 = vpop.eup %3410  ;;  %2247 = vrot.lane.b32.xlu0 %v3409_v36, %s3647_s2 }
0x22a5   :  { %2271 = vrot.lane.b32.xlu1 %v3411_v38, %s3647_s2  ;;  %v3413_v41 = vpop.eup %3412 }
0x22a6   :  { %v3415_v5 = vpop.eup %3414  ;;  %v2241_v46 = vadd.f32 1.0, %v3413_v41 }
0x22a7   :  { %v2265_v10 = vadd.f32 1.0, %v3415_v5 }
0x22a8   :  { %3416 = vrcp.f32 %v2241_v46 }
0x22a9   :  { %3418 = vrcp.f32 %v2265_v10 }
0x22b2   :  { %v3417_v27 = vpop.eup %3416 }
0x22b3   :  { %v3419_v37 = vpop.eup %3418  ;;  %v2245_v49 = vmul.f32 %v3417_v27, %v2120_v12 }
0x22b4   :  { %v2269_v51 = vmul.f32 %v3419_v37, %v2144_v19 }
0x2316   :  { %v2248_v20 = vpop.permute.xlu0 %2247 }
0x2317   :  { %v2250_v47 = vmul.f32 %v3417_v27, %v2248_v20  ;;  %v2272_v40 = vpop.permute.xlu1 %2271 }
0x2318   :  { %v2274_v43 = vmul.f32 %v3419_v37, %v2272_v40 }
0x2319   :  { %2252 = vrot.lane.b32.xlu0 %v2250_v47, %s3647_s2 }
0x231a   :  { %2276 = vrot.lane.b32.xlu1 %v2274_v43, %s3647_s2 }
0x238b   :  { %v2253_v50 = vpop.permute.xlu0 %2252 }
0x238c   :  { %v2255_v52 = vadd.f32 %v2253_v50, %v2245_v49  ;;  %v2277_v53 = vpop.permute.xlu1 %2276 }
0x238d   :  { %v2279_v54 = vadd.f32 %v2277_v53, %v2269_v51 }
0x238e   :  { %3420 = vtanh.f32 %v2255_v52 }
0x238f   :  { %3422 = vtanh.f32 %v2279_v54 }
0x2398   :  { %v3421_v55 = vpop.eup %3420 }
0x2399   :  { %v3423_v56 = vpop.eup %3422  ;;  %2258 = vrot.lane.b32.xlu0 %v3421_v55, %s3647_s2 }
0x239a   :  { %2282 = vrot.lane.b32.xlu1 %v3423_v56, %s3647_s2 }
0x240b   :  { %v2259_v62 = vpop.permute.xlu0 %2258 }
0x240c   :  { %v2261_v57 = vmul.f32 %v3417_v27, %v2259_v62  ;;  %v2283_v25 = vpop.permute.xlu1 %2282 }
0x240d   :  { %v2285_v61 = vmul.f32 %v3419_v37, %v2283_v25 }
0x240e   :  { %2287 = vrot.lane.b32.xlu0 %v2261_v57, %s3648_s4 }
0x240f   :  { %2291 = vrot.lane.b32.xlu1 %v2285_v61, %s3649_s24 }
0x2480   :  { %v2288_v13 = vpop.permute.xlu0 %2287 }
0x2481   :  { %v2292_v21 = vpop.permute.xlu1 %2291 }
0x2482   :  { %v2294_v60 = vsel %vm467_vm1, %v2288_v13, %v2292_v21 }
0x2483   :  { %2860 = vmatmul.mubr.msk.f32.vlgmr.msra.gmra.mrb[16].mxu1 %vm183_vm0, %v2294_v60 }
0x2484   :  { %3174 = vmatpush1.bf16.msra.mxu1 %v4055_v4  ;;  %2632 = vmatprep.mubr.f32.mxu1 %v3646_v0 }
0x2485   :  { %3176 = vmatprep.subr.bf16.mxu1 %v4059_v11 }
0x2488   :  { %3178 = vmatpush1.bf16.msra.mxu1 %v4064_v18 }
0x2489   :  { %3180 = vmatprep.subr.bf16.mxu1 %v4067_v26 }
0x248c   :  { %3182 = vmatpush1.bf16.msra.mxu1 %v4069_v48 }
0x248d   :  { %3184 = vmatprep.subr.bf16.mxu1 %v4073_v42 }
0x2490   :  { %3186 = vmatpush1.bf16.msra.mxu1 %v4075_v45 }
0x2556   :  { %v2364_v63 = vpop.f32.mrb[16].mxu1 }
0x2557   :  { %v2370_v2 = vadd.f32 %v2364_v63, %v4147_v22  ;;  %v2366_v3 = vpop.f32.mrb[17].mxu1 }
0x2558   :  { %v2372_v4 = vadd.f32 %v2366_v3, %v4136_v14 }
0x2559   :  { %3424 = vtanh.f32 %v2370_v2  ;;  %v2861_v18 = vmul.f32 -1.442695, %v2370_v2 }
0x255a   :  { %3426 = vtanh.f32 %v2372_v4  ;;  %v2862_v26 = vmul.f32 -1.442695, %v2372_v4 }
0x255b   :  { %3428 = vpow2.f32 %v2861_v18 }
0x255c   :  { %3430 = vpow2.f32 %v2862_v26 }
0x2563   :  { %v3425_v1 = vpop.eup %3424 }
0x2564   :  { %v3427_v11 = vpop.eup %3426  ;;  %2382 = vrot.lane.b32.xlu0 %v3425_v1, %s3647_s2 }
0x2565   :  { %2406 = vrot.lane.b32.xlu1 %v3427_v11, %s3647_s2  ;;  %v3429_v48 = vpop.eup %3428 }
0x2566   :  { %v3431_v42 = vpop.eup %3430  ;;  %v2376_v45 = vadd.f32 1.0, %v3429_v48 }
0x2567   :  { %v2400_v34 = vadd.f32 1.0, %v3431_v42 }
0x2568   :  { %3432 = vrcp.f32 %v2376_v45 }
0x2569   :  { %3434 = vrcp.f32 %v2400_v34 }
0x2572   :  { %v3433_v22 = vpop.eup %3432 }
0x2573   :  { %v3435_v12 = vpop.eup %3434  ;;  %v2380_v58 = vmul.f32 %v3433_v22, %v2255_v52 }
0x2574   :  { %v2404_v28 = vmul.f32 %v3435_v12, %v2279_v54 }
0x25d6   :  { %v2383_v14 = vpop.permute.xlu0 %2382 }
0x25d7   :  { %v2385_v9 = vmul.f32 %v3433_v22, %v2383_v14  ;;  %v2407_v19 = vpop.permute.xlu1 %2406 }
0x25d8   :  { %v2409_v59 = vmul.f32 %v3435_v12, %v2407_v19 }
0x25d9   :  { %2387 = vrot.lane.b32.xlu0 %v2385_v9, %s3647_s2 }
0x25da   :  { %2411 = vrot.lane.b32.xlu1 %v2409_v59, %s3647_s2 }
0x264b   :  { %v2388_v16 = vpop.permute.xlu0 %2387 }
0x264c   :  { %v2390_v39 = vadd.f32 %v2388_v16, %v2380_v58  ;;  %v2412_v23 = vpop.permute.xlu1 %2411 }
0x264d   :  { %v2414_v24 = vadd.f32 %v2412_v23, %v2404_v28 }
0x264e   :  { %3436 = vtanh.f32 %v2390_v39 }
0x264f   :  { %3438 = vtanh.f32 %v2414_v24 }
0x2658   :  { %v3437_v29 = vpop.eup %3436 }
0x2659   :  { %v3439_v31 = vpop.eup %3438  ;;  %2393 = vrot.lane.b32.xlu0 %v3437_v29, %s3647_s2 }
0x265a   :  { %2417 = vrot.lane.b32.xlu1 %v3439_v31, %s3647_s2 }
0x26cb   :  { %v2394_v35 = vpop.permute.xlu0 %2393 }
0x26cc   :  { %v2396_v44 = vmul.f32 %v3433_v22, %v2394_v35  ;;  %v2418_v30 = vpop.permute.xlu1 %2417 }
0x26cd   :  { %v2420_v15 = vmul.f32 %v3435_v12, %v2418_v30  ;;  %v2701_v30 = vld [vmem:[#allocation13 + $0x8] sm:$0xff] }
0x26ce   :  { %2422 = vrot.lane.b32.xlu0 %v2396_v44, %s3648_s4  ;;  %v2700_v44 = vld [vmem:[#allocation13] sm:$0xff] }
0x26cf   :  { %2426 = vrot.lane.b32.xlu1 %v2420_v15, %s3649_s24  ;;  %v2702_v15 = vld [vmem:[#allocation13 + $0x10] sm:$0xff] }
0x2740   :  { %v2423_v36 = vpop.permute.xlu0 %2422 }
0x2741   :  { %v2427_v38 = vpop.permute.xlu1 %2426 }
0x2742   :  { %v2429_v7 = vsel %vm467_vm1, %v2423_v36, %v2427_v38  ;;  %v3650_v36 = vmov 0.0|0.0   ;;  %v3188_v38 = vpack.c.bf16 %v2701_v30, %v2700_v44 }
0x2743   :  { %2863 = vmatmul.mubr.msk.f32.vlgmr.msra.gmra.mrb[42].mxu0 %vm183_vm0, %v2429_v7  ;;  %3187 = vmatprep.subr.bf16.mxu0 %v3650_v36  ;;  %v2703_v7 = vld [vmem:[#allocation13 + $0x18] sm:$0xff] }
0x2744   :  { %3189 = vmatpush3.bf16.msra.mxu0 %v3188_v38  ;;  %2896 = vmatprep.mubr.msk.f32.mxu0 %vm3651_vm3, %v3646_v0 }
0x2745   :  { %3190 = vmatprep.subr.bf16.mxu0 %v3650_v36 }
0x2816   :  { %v2499_v17 = vpop.f32.mrb[42].mxu0 }
0x2817   :  { %v2505_v41 = vadd.f32 %v2499_v17, %v4151_v33  ;;  %v2501_v5 = vpop.f32.mrb[43].mxu0  ;;  %v3191_v17 = vpack.c.bf16 %v2703_v7, %v2702_v15 }
0x2818   :  { %v2507_v46 = vadd.f32 %v2501_v5, %v4132_v8  ;;  %v2705_v5 = vld [vmem:[#allocation13 + $0x28] sm:$0xff] }
0x2819   :  { %3440 = vtanh.f32 %v2505_v41  ;;  %v2864_v20 = vmul.f32 -1.442695, %v2505_v41  ;;  %v2704_v41 = vld [vmem:[#allocation13 + $0x20] sm:$0xff]  ;;  %3192 = vmatpush3.bf16.msra.mxu0 %v3191_v17 }
0x281a   :  { %3442 = vtanh.f32 %v2507_v46  ;;  %v2865_v37 = vmul.f32 -1.442695, %v2507_v46  ;;  %v3194_v46 = vpack.c.bf16 %v2705_v5, %v2704_v41  ;;  %3193 = vmatprep.subr.bf16.mxu0 %v3650_v36 }
0x281b   :  { %3444 = vpow2.f32 %v2864_v20 }
0x281c   :  { %3446 = vpow2.f32 %v2865_v37 }
0x281d   :  { %3195 = vmatpush3.bf16.msra.mxu0 %v3194_v46 }
0x281e   :  { %3196 = vmatprep.subr.bf16.mxu0 %v3650_v36 }
0x2823   :  { %v3441_v10 = vpop.eup %3440 }
0x2824   :  { %v3443_v27 = vpop.eup %3442  ;;  %2517 = vrot.lane.b32.xlu0 %v3441_v10, %s3647_s2  ;;  %v2706_v10 = vld [vmem:[#allocation13 + $0x30] sm:$0xff] }
0x2825   :  { %2541 = vrot.lane.b32.xlu1 %v3443_v27, %s3647_s2  ;;  %v3445_v47 = vpop.eup %3444  ;;  %v2707_v27 = vld [vmem:[#allocation13 + $0x38] sm:$0xff] }
0x2826   :  { %v3447_v40 = vpop.eup %3446  ;;  %v2511_v43 = vadd.f32 1.0, %v3445_v47  ;;  %v3197_v47 = vpack.c.bf16 %v2707_v27, %v2706_v10 }
0x2827   :  { %v2535_v49 = vadd.f32 1.0, %v3447_v40 }
0x2828   :  { %3448 = vrcp.f32 %v2511_v43  ;;  %3198 = vmatpush3.bf16.msra.mxu0 %v3197_v47 }
0x2829   :  { %3450 = vrcp.f32 %v2535_v49 }
0x2832   :  { %v3449_v33 = vpop.eup %3448 }
0x2833   :  { %v3451_v50 = vpop.eup %3450  ;;  %v2515_v54 = vmul.f32 %v3449_v33, %v2390_v39 }
0x2834   :  { %v2539_v56 = vmul.f32 %v3451_v50, %v2414_v24 }
0x2896   :  { %v2518_v8 = vpop.permute.xlu0 %2517 }
0x2897   :  { %v2520_v51 = vmul.f32 %v3449_v33, %v2518_v8  ;;  %v2542_v52 = vpop.permute.xlu1 %2541 }
0x2898   :  { %v2544_v53 = vmul.f32 %v3451_v50, %v2542_v52  ;;  %v2869_v52 = vld [vmem:[%s4314_s8] ss:$0 sm:$0xff] }
0x2899   :  { %2522 = vrot.lane.b32.xlu0 %v2520_v51, %s3647_s2 }
0x289a   :  { %2546 = vrot.lane.b32.xlu1 %v2544_v53, %s3647_s2 }
0x290b   :  { %v2523_v55 = vpop.permute.xlu0 %2522 }
0x290c   :  { %v2525_v62 = vadd.f32 %v2523_v55, %v2515_v54  ;;  %v2547_v57 = vpop.permute.xlu1 %2546 }
0x290d   :  { %v2549_v25 = vadd.f32 %v2547_v57, %v2539_v56 }
0x290e   :  { %3452 = vtanh.f32 %v2525_v62 }
0x290f   :  { %3454 = vtanh.f32 %v2549_v25 }
0x2918   :  { %v3453_v61 = vpop.eup %3452 }
0x2919   :  { %v3455_v13 = vpop.eup %3454  ;;  %2528 = vrot.lane.b32.xlu0 %v3453_v61, %s3647_s2 }
0x291a   :  { %2552 = vrot.lane.b32.xlu1 %v3455_v13, %s3647_s2 }
0x298b   :  { %v2529_v21 = vpop.permute.xlu0 %2528 }
0x298c   :  { %v2531_v60 = vmul.f32 %v3449_v33, %v2529_v21  ;;  %v2553_v63 = vpop.permute.xlu1 %2552 }
0x298d   :  { %v2555_v2 = vmul.f32 %v3451_v50, %v2553_v63 }
0x298e   :  { %2557 = vrot.lane.b32.xlu0 %v2531_v60, %s3648_s4 }
0x298f   :  { %2561 = vrot.lane.b32.xlu1 %v2555_v2, %s3649_s24 }
0x2a00   :  { %v2558_v3 = vpop.permute.xlu0 %2557 }
0x2a01   :  { %v2562_v4 = vpop.permute.xlu1 %2561 }
0x2a02   :  { %v2564_v1 = vsel %vm467_vm1, %v2558_v3, %v2562_v4 }
0x2a03   :  { %2866 = vmatmul.mubr.msk.f32.vlgmr.msra.gmra.mrb[18].mxu1 %vm183_vm0, %v2564_v1 }
0x2ad6   :  { %v2634_v11 = vpop.f32.mrb[18].mxu1 }
0x2ad7   :  { %v2640_v18 = vadd.f32 %v2634_v11, %v4153_v32  ;;  %v2636_v26 = vpop.f32.mrb[19].mxu1 }
0x2ad8   :  { %v2642_v48 = vadd.f32 %v2636_v26, %v4128_v6 }
0x2ad9   :  { %3456 = vtanh.f32 %v2640_v18  ;;  %v2867_v34 = vmul.f32 -1.442695, %v2640_v18 }
0x2ada   :  { %3458 = vtanh.f32 %v2642_v48  ;;  %v2868_v22 = vmul.f32 -1.442695, %v2642_v48 }
0x2adb   :  { %3460 = vpow2.f32 %v2867_v34 }
0x2adc   :  { %3462 = vpow2.f32 %v2868_v22 }
0x2ae3   :  { %v3457_v42 = vpop.eup %3456 }
0x2ae4   :  { %v3459_v45 = vpop.eup %3458  ;;  %2652 = vrot.lane.b32.xlu0 %v3457_v42, %s3647_s2 }
0x2ae5   :  { %2676 = vrot.lane.b32.xlu1 %v3459_v45, %s3647_s2  ;;  %v3461_v14 = vpop.eup %3460 }
0x2ae6   :  { %v3463_v12 = vpop.eup %3462  ;;  %v2646_v9 = vadd.f32 1.0, %v3461_v14 }
0x2ae7   :  { %v2670_v19 = vadd.f32 1.0, %v3463_v12 }
0x2ae8   :  { %3464 = vrcp.f32 %v2646_v9 }
0x2ae9   :  { %3466 = vrcp.f32 %v2670_v19 }
0x2af2   :  { %v3465_v32 = vpop.eup %3464 }
0x2af3   :  { %v3467_v59 = vpop.eup %3466  ;;  %v2650_v39 = vmul.f32 %v3465_v32, %v2525_v62 }
0x2af4   :  { %v2674_v24 = vmul.f32 %v3467_v59, %v2549_v25 }
0x2b56   :  { %v2653_v6 = vpop.permute.xlu0 %2652 }
0x2b57   :  { %v2655_v58 = vmul.f32 %v3465_v32, %v2653_v6  ;;  %v2677_v16 = vpop.permute.xlu1 %2676 }
0x2b58   :  { %v2679_v28 = vmul.f32 %v3467_v59, %v2677_v16 }
0x2b59   :  { %2657 = vrot.lane.b32.xlu0 %v2655_v58, %s3647_s2 }
0x2b5a   :  { %2681 = vrot.lane.b32.xlu1 %v2679_v28, %s3647_s2 }
0x2bcb   :  { %v2658_v23 = vpop.permute.xlu0 %2657 }
0x2bcc   :  { %v2660_v29 = vadd.f32 %v2658_v23, %v2650_v39  ;;  %v2682_v31 = vpop.permute.xlu1 %2681 }
0x2bcd   :  { %v2684_v35 = vadd.f32 %v2682_v31, %v2674_v24 }
0x2bce   :  { %3468 = vtanh.f32 %v2660_v29 }
0x2bcf   :  { %3470 = vtanh.f32 %v2684_v35 }
0x2bd8   :  { %v3469_v20 = vpop.eup %3468 }
0x2bd9   :  { %v3471_v37 = vpop.eup %3470  ;;  %2663 = vrot.lane.b32.xlu0 %v3469_v20, %s3647_s2 }
0x2bda   :  { %2687 = vrot.lane.b32.xlu1 %v3471_v37, %s3647_s2 }
0x2c4b   :  { %v2664_v40 = vpop.permute.xlu0 %2663 }
0x2c4c   :  { %v2666_v43 = vmul.f32 %v3465_v32, %v2664_v40  ;;  %v2688_v49 = vpop.permute.xlu1 %2687 }
0x2c4d   :  { %v2690_v33 = vmul.f32 %v3467_v59, %v2688_v49 }
0x2c4e   :  { %2692 = vrot.lane.b32.xlu0 %v2666_v43, %s3648_s4 }
0x2c4f   :  { %2696 = vrot.lane.b32.xlu1 %v2690_v33, %s3649_s24 }
0x2cc0   :  { %v2693_v8 = vpop.permute.xlu0 %2692 }
0x2cc1   :  { %v2697_v50 = vpop.permute.xlu1 %2696 }
0x2cc2   :  { %v2699_v51 = vsel %vm467_vm1, %v2693_v8, %v2697_v50 }
0x2cc3   :  { %2897 = vmatmul.mubr.msk.f32.vlgmr.msra.gmra.mrb[44].mxu0 %vm183_vm0, %v2699_v51 }
0x2d96   :  { %v2784_v0 = vpop.f32.mrb[44].mxu0 }
0x2d97   :  { %v2785_v53 = vadd.f32 %v2869_v52, %v2784_v0  ;;  %v2898_v54 = vpop.f32.mrb[45].mxu0 }
0x2d99   :  { %2788 = vst [vmem:[#allocation15] sm:$0xff] %v2785_v53 }
0x2d9a   :  { %3615 = shalt.err (!%p3612_p10)
}
0x2d9b   :  { %s3616_s11 = scalar_lea.hbm %s4315_s9, 128 }
0x2d9c   :  { %p3617_p11 = scmp.ne.s32.totalorder %s4315_s9, %s3616_s11  ;;  %p3620_p12 = scmp.lt.u32.totalorder %s3616_s11, %s4315_s9 }
0x2d9e   :  { %p3622_p13 = pnand %p3620_p12, %p3617_p11 }
0x2da0   :  { %3625 = shalt.err (!%p3622_p13)
}
0x2da1   :  { %2798 = dma.vmem_to_hbm [thread:$0]  %s2796_s25, 128, %s4315_s9, [#allocation6]  }
0x2da2   :  { %3634 = dma.done.wait [#allocation6], 128  }
0x2da3   :  { %3635 = vsyncadd [#allocation6], 4294967168 }
0x2da4   :  { %2802 = vsyncpa [#allocation5], 1 }
0x2da5   :  { %2803 = vsyncpa [#allocation8], 1 }
0x2da6   :  { %2804 = vsyncpa [#allocation11], 1 }
0x2da7   :  { %2805 = vsyncpa [#allocation14], 1 }
0x2da8   :  { %2806 = vsyncpa [#allocation6], 1 }

</bundles_post_ra>
